<compile_context>
chip_gen: v6e
topology: v6e:2x2x1
jax: 0.10.0
libtpu: 0.0.40
codegen_flags: <defaults>
</compile_context>

<pallas_src>
import jax
import jax.numpy as jnp
from jax.experimental import pallas as pl
from jax.experimental.pallas import tpu as pltpu


def _fused_kernel(x_ref, s_ref, w1_ref, g_ref, b_ref, w2_ref, o_ref):
    """One grid step: produce one (TN, P) block of the final output.

    Channel-major layout (channels on sublanes, flattened spatial on lanes):
      x_ref : (C_in, P)   f32   x202 flattened (zero-copy from NCHW, N==1)
      s_ref : (1, C_in)   f32   per-channel scale x207
      w1_ref: (C1, C_in)  f32   conv2d67 weight (PyTorch (Cout, Cin) layout)
      g_ref : (1, C1)     f32   batchnorm gamma (lane-major row)
      b_ref : (1, C1)     f32   batchnorm beta  (lane-major row)
      w2_ref: (TN, C1)    f32   one output-channel block of conv2d68 weight
      o_ref : (TN, P)     f32   one block of output x211
    """
    # x208 = x207 * x202 folded into conv2d67:
    #   W1 @ (diag(s) @ x) == (W1 * s[None, :]) @ x
    w1s = (w1_ref[...] * s_ref[...]).astype(jnp.bfloat16)          # (C1, C_in)
    x_bf = x_ref[...].astype(jnp.bfloat16)                         # (C_in, P)

    # x209 = conv2d67(x208): 1x1 conv == (C1, C_in) @ (C_in, P) on the MXU.
    y1 = jnp.dot(w1s, x_bf, preferred_element_type=jnp.float32)    # (C1, P) f32

    # x210 = batchnorm2d39(x209), training mode -> batch statistics.
    # Single pass: E[y] and E[y^2] computed concurrently (independent reduces).
    p = y1.shape[1]
    inv_p = 1.0 / p
    mean = jnp.sum(y1, axis=1, keepdims=True) * inv_p               # (C1, 1)
    ex2 = jnp.sum(y1 * y1, axis=1, keepdims=True) * inv_p           # (C1, 1)
    var = jnp.maximum(ex2 - mean * mean, 0.0)        # guard tiny cancellation
    inv_std = jax.lax.rsqrt(var + 0.001)             # module eps = 0.001 (EUP)
    z = ((y1 - mean) * inv_std).astype(jnp.bfloat16)                # (C1, P)

    # x211 block = conv2d68(x210) block, with the BN affine folded into W2:
    #   W2 @ (gamma*z + beta) == (W2 * gamma_row) @ z + (W2 * beta_row).sum(1)
    w2f = w2_ref[...]                                               # (TN, C1)
    w2g = (w2f * g_ref[...]).astype(jnp.bfloat16)                   # (TN, C1)
    bias = jnp.sum(w2f * b_ref[...], axis=1, keepdims=True)         # (TN, 1) f32

    o_ref[...] = (
        jnp.dot(w2g, z, preferred_element_type=jnp.float32) + bias
    ).astype(o_ref.dtype)


def _num_tensorcores() -> int:
    """2 on megacore v7x (grid axis shards across TCs), else 1 (serial loop)."""
    try:
        kind = jax.devices()[0].device_kind.lower()
    except Exception:
        return 1
    return 2 if "v7" in kind else 1


@jax.jit
def fused_forward(x207, x202, w67, gamma39, beta39, w68):
    """x207: (1, C_in, 1, 1), x202: (1, C_in, H, W) NCHW float32.
    w67: (C1, C_in, 1, 1), w68: (C2, C1, 1, 1) PyTorch conv weights.
    gamma39/beta39: (C1,).  Returns (1, C2, H, W) float32."""
    n, c_in, h, w = x202.shape
    # The source module runs with batch size 1; the zero-copy (C, P) layout and
    # the single per-channel scale row rely on it.
    assert n == 1, "kernel assumes batch size 1 (as in the source module)"
    c1 = w67.shape[0]
    c2 = w68.shape[0]
    p = h * w

    # Zero-copy reshapes only; everything stays f32 (casts happen in-kernel).
    x_cp = x202.reshape(c_in, p)                            # (C_in, P)
    s_row = x207.reshape(1, c_in)                           # (1, C_in)
    w1 = w67.reshape(c1, c_in)                              # (C1, C_in)
    w2 = w68.reshape(c2, c1)                                # (C2, C1)
    g_row = gamma39.reshape(1, c1)                          # (1, C1)
    b_row = beta39.reshape(1, c1)                           # (1, C1)

    # Chip-aware split of conv2's output channels:
    #   v5e/v6e (1 TC): single step, w2 resident in full (tn = C2).
    #   v7x     (2 TC): 2 independent blocks, one per TensorCore.
    ncores = _num_tensorcores()
    tn = c2 // ncores if (ncores > 1 and c2 % ncores == 0) else c2
    grid = (c2 // tn,)

    flops = 2 * p * (c1 * c_in + c2 * c1)
    bytes_accessed = 4 * (c_in * p + c1 * c_in + c2 * c1 + c2 * p
                          + c_in + 2 * c1)

    out_cp = pl.pallas_call(
        _fused_kernel,
        out_shape=jax.ShapeDtypeStruct((c2, p), jnp.float32),
        grid=grid,
        in_specs=[
            pl.BlockSpec((c_in, p), lambda j: (0, 0)),      # x (resident)
            pl.BlockSpec((1, c_in), lambda j: (0, 0)),      # scale x207
            pl.BlockSpec((c1, c_in), lambda j: (0, 0)),     # w1
            pl.BlockSpec((1, c1), lambda j: (0, 0)),        # gamma row
            pl.BlockSpec((1, c1), lambda j: (0, 0)),        # beta row
            pl.BlockSpec((tn, c1), lambda j: (j, 0)),       # w2 block
        ],
        out_specs=pl.BlockSpec((tn, p), lambda j: (j, 0)),
        compiler_params=pltpu.CompilerParams(
            dimension_semantics=("parallel",),
            vmem_limit_bytes=16 << 20,
        ),
        cost_estimate=pl.CostEstimate(
            flops=flops, transcendentals=c1, bytes_accessed=bytes_accessed),
    )(x_cp, s_row, w1, g_row, b_row, w2)

    # (C2, P) -> (1, C2, H, W): zero-copy reshape.
    return out_cp.reshape(n, c2, h, w)


def _reference(x207, x202, w67, gamma39, beta39, w68, eps=0.001):
    """Pure-JAX f32 reference matching the PyTorch module's forward."""
    n, c_in, h, w = x202.shape
    c1, c2 = w67.shape[0], w68.shape[0]
    xm = (x207 * x202).reshape(c_in, h * w)
    y1 = w67.reshape(c1, c_in) @ xm
    mean = jnp.mean(y1, axis=1, keepdims=True)
    var = jnp.mean((y1 - mean) ** 2, axis=1, keepdims=True)
    y1n = (y1 - mean) * jax.lax.rsqrt(var + eps) * gamma39[:, None] + beta39[:, None]
    y2 = w68.reshape(c2, c1) @ y1n
    return y2.reshape(n, c2, h, w)


if __name__ == "__main__":
    key = jax.random.PRNGKey(0)
    k1, k2, k3, k4, k5, k6 = jax.random.split(key, 6)

    # Shapes implied by the module's forward.
    N, C_IN, H, W = 1, 384, 14, 14
    C1, C2 = 128, 768

    x202 = jax.random.normal(k1, (N, C_IN, H, W), dtype=jnp.float32)
    x207 = jax.random.normal(k2, (N, C_IN, 1, 1), dtype=jnp.float32)

    # Deterministic synthetic parameters (not a checkpoint load).
    w67 = jax.random.normal(k3, (C1, C_IN, 1, 1), dtype=jnp.float32) * 0.05
    w68 = jax.random.normal(k4, (C2, C1, 1, 1), dtype=jnp.float32) * 0.05
    gamma39 = 1.0 + 0.1 * jax.random.normal(k5, (C1,), dtype=jnp.float32)
    beta39 = 0.1 * jax.random.normal(k6, (C1,), dtype=jnp.float32)

    out = fused_forward(x207, x202, w67, gamma39, beta39, w68)
    out = jax.block_until_ready(out)
    assert out.shape == (N, C2, H, W), out.shape

    # Correctness vs f32 reference (kernel uses bf16 MXU operands -> loose tol).
    ref = _reference(x207, x202, w67, gamma39, beta39, w68)
    max_err = float(jnp.max(jnp.abs(out - ref)))
    assert max_err < 0.15, f"max abs error too large: {max_err}"

    print("KERNEL_OK")
</pallas_src>

<mosaic_0001>
module attributes {stable_mosaic.version = 11 : i64} {
  func.func @_fused_kernel(%arg0: i32, %arg1: memref<384x196xf32, #tpu.memory_space<vmem>>, %arg2: memref<1x384xf32, #tpu.memory_space<vmem>>, %arg3: memref<128x384xf32, #tpu.memory_space<vmem>>, %arg4: memref<1x128xf32, #tpu.memory_space<vmem>>, %arg5: memref<1x128xf32, #tpu.memory_space<vmem>>, %arg6: memref<768x128xf32, #tpu.memory_space<vmem>>, %arg7: memref<768x196xf32, #tpu.memory_space<vmem>>) attributes {dimension_semantics = [#tpu.dimension_semantics<parallel>], iteration_bounds = array<i64: 1>, scalar_prefetch = 0 : i64, scratch_operands = 0 : i64, tpu.core_type = #tpu.core_type<tc>, window_params = [{pipeline_mode = #tpu.pipeline_mode<synchronous>, transform_indices = @transform_0, window_bounds = array<i64: 384, 196>}, {pipeline_mode = #tpu.pipeline_mode<synchronous>, transform_indices = @transform_1, window_bounds = array<i64: 1, 384>}, {pipeline_mode = #tpu.pipeline_mode<synchronous>, transform_indices = @transform_2, window_bounds = array<i64: 128, 384>}, {pipeline_mode = #tpu.pipeline_mode<synchronous>, transform_indices = @transform_3, window_bounds = array<i64: 1, 128>}, {pipeline_mode = #tpu.pipeline_mode<synchronous>, transform_indices = @transform_4, window_bounds = array<i64: 1, 128>}, {transform_indices = @transform_5, window_bounds = array<i64: 768, 128>}, {transform_indices = @transform_6, window_bounds = array<i64: 768, 196>}]} {
    %c0 = arith.constant 0 : index
    %c0_0 = arith.constant 0 : index
    %0 = vector.load %arg3[%c0, %c0_0] : memref<128x384xf32, #tpu.memory_space<vmem>>, vector<128x384xf32>
    %c0_1 = arith.constant 0 : index
    %c0_2 = arith.constant 0 : index
    %1 = vector.load %arg2[%c0_1, %c0_2] : memref<1x384xf32, #tpu.memory_space<vmem>>, vector<1x384xf32>
    %2 = vector.broadcast %1 : vector<1x384xf32> to vector<128x384xf32>
    %3 = arith.mulf %0, %2 : vector<128x384xf32>
    %4 = arith.truncf %3 : vector<128x384xf32> to vector<128x384xbf16>
    %c0_3 = arith.constant 0 : index
    %c0_4 = arith.constant 0 : index
    %5 = vector.load %arg1[%c0_3, %c0_4] : memref<384x196xf32, #tpu.memory_space<vmem>>, vector<384x196xf32>
    %6 = arith.truncf %5 : vector<384x196xf32> to vector<384x196xbf16>
    %cst = arith.constant dense<0.000000e+00> : vector<128x196xf32>
    %7 = tpu.matmul %4, %6, %cst {dimension_numbers = #tpu.dot_dimension_numbers<[1], [0], [0], [1], [0, 0, 1, 1], [], []>} : vector<128x384xbf16>, vector<384x196xbf16>, vector<128x196xf32> -> vector<128x196xf32>
    %cst_5 = arith.constant dense<0.000000e+00> : vector<128xf32>
    %8 = vector.multi_reduction <add>, %7, %cst_5 [1] : vector<128x196xf32> to vector<128xf32>
    %9 = vector.shape_cast %8 : vector<128xf32> to vector<128x1xf32>
    %cst_6 = arith.constant 0.00510204071 : f32
    %10 = vector.broadcast %cst_6 : f32 to vector<128x1xf32>
    %11 = arith.mulf %9, %10 : vector<128x1xf32>
    %12 = arith.mulf %7, %7 : vector<128x196xf32>
    %cst_7 = arith.constant dense<0.000000e+00> : vector<128xf32>
    %13 = vector.multi_reduction <add>, %12, %cst_7 [1] : vector<128x196xf32> to vector<128xf32>
    %14 = vector.shape_cast %13 : vector<128xf32> to vector<128x1xf32>
    %cst_8 = arith.constant 0.00510204071 : f32
    %15 = vector.broadcast %cst_8 : f32 to vector<128x1xf32>
    %16 = arith.mulf %14, %15 : vector<128x1xf32>
    %17 = arith.mulf %11, %11 : vector<128x1xf32>
    %18 = arith.subf %16, %17 : vector<128x1xf32>
    %cst_9 = arith.constant 0.000000e+00 : f32
    %19 = vector.broadcast %cst_9 : f32 to vector<128x1xf32>
    %20 = arith.maximumf %18, %19 : vector<128x1xf32>
    %cst_10 = arith.constant 1.000000e-03 : f32
    %21 = vector.broadcast %cst_10 : f32 to vector<128x1xf32>
    %22 = arith.addf %20, %21 : vector<128x1xf32>
    %23 = math.rsqrt %22 : vector<128x1xf32>
    %24 = vector.broadcast %11 : vector<128x1xf32> to vector<128x196xf32>
    %25 = arith.subf %7, %24 : vector<128x196xf32>
    %26 = vector.broadcast %23 : vector<128x1xf32> to vector<128x196xf32>
    %27 = arith.mulf %25, %26 : vector<128x196xf32>
    %28 = arith.truncf %27 : vector<128x196xf32> to vector<128x196xbf16>
    %c0_11 = arith.constant 0 : index
    %c0_12 = arith.constant 0 : index
    %29 = vector.load %arg6[%c0_11, %c0_12] : memref<768x128xf32, #tpu.memory_space<vmem>>, vector<768x128xf32>
    %c0_13 = arith.constant 0 : index
    %c0_14 = arith.constant 0 : index
    %30 = vector.load %arg4[%c0_13, %c0_14] : memref<1x128xf32, #tpu.memory_space<vmem>>, vector<1x128xf32>
    %31 = vector.broadcast %30 : vector<1x128xf32> to vector<768x128xf32>
    %32 = arith.mulf %29, %31 : vector<768x128xf32>
    %33 = arith.truncf %32 : vector<768x128xf32> to vector<768x128xbf16>
    %c0_15 = arith.constant 0 : index
    %c0_16 = arith.constant 0 : index
    %34 = vector.load %arg5[%c0_15, %c0_16] : memref<1x128xf32, #tpu.memory_space<vmem>>, vector<1x128xf32>
    %35 = vector.broadcast %34 : vector<1x128xf32> to vector<768x128xf32>
    %36 = arith.mulf %29, %35 : vector<768x128xf32>
    %cst_17 = arith.constant dense<0.000000e+00> : vector<768xf32>
    %37 = vector.multi_reduction <add>, %36, %cst_17 [1] : vector<768x128xf32> to vector<768xf32>
    %38 = vector.shape_cast %37 : vector<768xf32> to vector<768x1xf32>
    %cst_18 = arith.constant dense<0.000000e+00> : vector<768x196xf32>
    %39 = tpu.matmul %33, %28, %cst_18 {dimension_numbers = #tpu.dot_dimension_numbers<[1], [0], [0], [1], [0, 0, 1, 1], [], []>} : vector<768x128xbf16>, vector<128x196xbf16>, vector<768x196xf32> -> vector<768x196xf32>
    %40 = vector.broadcast %38 : vector<768x1xf32> to vector<768x196xf32>
    %41 = arith.addf %39, %40 : vector<768x196xf32>
    %c0_19 = arith.constant 0 : index
    %c0_20 = arith.constant 0 : index
    %42 = vector.load %arg7[%c0_19, %c0_20] : memref<768x196xf32, #tpu.memory_space<vmem>>, vector<768x196xf32>
    tpu.vector_store %arg7[%c0_19, %c0_20], %41 {strides = array<i32>} : memref<768x196xf32, #tpu.memory_space<vmem>>, vector<768x196xf32>,
    return
  }
  func.func @transform_0(%arg0: i32) -> (i32, i32) {
    %c0_i32 = arith.constant 0 : i32
    %c0_i32_0 = arith.constant 0 : i32
    %c0_i32_1 = arith.constant 0 : i32
    return %c0_i32, %c0_i32_0 : i32, i32
  }
  func.func @transform_1(%arg0: i32) -> (i32, i32) {
    %c0_i32 = arith.constant 0 : i32
    %c0_i32_0 = arith.constant 0 : i32
    %c0_i32_1 = arith.constant 0 : i32
    return %c0_i32, %c0_i32_0 : i32, i32
  }
  func.func @transform_2(%arg0: i32) -> (i32, i32) {
    %c0_i32 = arith.constant 0 : i32
    %c0_i32_0 = arith.constant 0 : i32
    %c0_i32_1 = arith.constant 0 : i32
    return %c0_i32, %c0_i32_0 : i32, i32
  }
  func.func @transform_3(%arg0: i32) -> (i32, i32) {
    %c0_i32 = arith.constant 0 : i32
    %c0_i32_0 = arith.constant 0 : i32
    %c0_i32_1 = arith.constant 0 : i32
    return %c0_i32, %c0_i32_0 : i32, i32
  }
  func.func @transform_4(%arg0: i32) -> (i32, i32) {
    %c0_i32 = arith.constant 0 : i32
    %c0_i32_0 = arith.constant 0 : i32
    %c0_i32_1 = arith.constant 0 : i32
    return %c0_i32, %c0_i32_0 : i32, i32
  }
  func.func @transform_5(%arg0: i32) -> (i32, i32) {
    %c0_i32 = arith.constant 0 : i32
    %c0_i32_0 = arith.constant 0 : i32
    return %arg0, %c0_i32 : i32, i32
  }
  func.func @transform_6(%arg0: i32) -> (i32, i32) {
    %c0_i32 = arith.constant 0 : i32
    %c0_i32_0 = arith.constant 0 : i32
    return %arg0, %c0_i32 : i32, i32
  }
}

</mosaic_0001>

<bundles_post_ra>
// kernel: fused_forward.1
= control target key start
LH: loop header
LB: loop body
LE: loop exit
PB: predicated region body
PF: predicated region fallthrough
CT: control target
= control target key end

     0   :  { %v5321_v3 = vmov 0   ;;  %vm531_vm0 = vcmask 556032   ;;  %s5314_s0 = inlined_call_operand.vmem [shape: f32[384,196], index: 0, kind: input, shape index: {}]   ;;  %s5315_s1 = inlined_call_operand.vmem [shape: f32[1,384], index: 1, kind: input, shape index: {}]   ;;  %s5316_s2 = inlined_call_operand.vmem [shape: f32[128,384], index: 2, kind: input, shape index: {}]   ;;  %s5317_s4 = inlined_call_operand.vmem [shape: f32[1,128], index: 4, kind: input, shape index: {}]   ;;  %s5318_s5 = inlined_call_operand.vmem [shape: f32[768,128], index: 5, kind: input, shape index: {}]   ;;  %s5319_s3 = inlined_call_operand.vmem [shape: f32[1,128], index: 3, kind: input, shape index: {}]   ;;  %s5320_s6 = inlined_call_operand.vmem [shape: f32[768,196], index: 6, kind: output, shape index: {}]  }
   0x1   :  { %v190_v0 = vld [vmem:[%s5314_s0 + $0xe8] sm:$0xff]  ;;  %v192_v1 = vld [vmem:[%s5314_s0 + $0xf8] sm:$0xff]  ;;  %v189_v2 = vld [vmem:[%s5314_s0 + $0xe0] sm:$0xff]  ;;  %450 = vmatprep.mubr.bf16.mxu1 %v5321_v3 }
   0x2   :  { %v272_v4 = vpack.c.bf16 %v192_v1, %v190_v0  ;;  %v191_v5 = vld [vmem:[%s5314_s0 + $0xf0] sm:$0xff]  ;;  %v186_v6 = vld [vmem:[%s5314_s0 + $0xc8] sm:$0xff]  ;;  %v188_v7 = vld [vmem:[%s5314_s0 + $0xd8] sm:$0xff]  ;;  %v74_v0 = vlaneseq }
   0x3   :  { %v271_v8 = vpack.c.bf16 %v191_v5, %v189_v2  ;;  %v270_v9 = vpack.c.bf16 %v188_v7, %v186_v6  ;;  %v185_v10 = vld [vmem:[%s5314_s0 + $0xc0] sm:$0xff]  ;;  %v187_v11 = vld [vmem:[%s5314_s0 + $0xd0] sm:$0xff]  ;;  %v182_v12 = vld [vmem:[%s5314_s0 + $0xa8] sm:$0xff] }
   0x4   :  { %305 = vmatprep.subr.bf16.mxu0 %v272_v4  ;;  %v184_v13 = vld [vmem:[%s5314_s0 + $0xb8] sm:$0xff]  ;;  %v269_v14 = vpack.c.bf16 %v187_v11, %v185_v10  ;;  %v181_v16 = vld [vmem:[%s5314_s0 + $0xa0] sm:$0xff]  ;;  %v183_v17 = vld [vmem:[%s5314_s0 + $0xb0] sm:$0xff] }
   0x5   :  { %306 = vmatpush1.bf16.msra.mxu0 %v271_v8  ;;  %v268_v15 = vpack.c.bf16 %v184_v13, %v182_v12  ;;  %v178_v18 = vld [vmem:[%s5314_s0 + $0x88] sm:$0xff]  ;;  %v180_v19 = vld [vmem:[%s5314_s0 + $0x98] sm:$0xff]  ;;  %v267_v20 = vpack.c.bf16 %v183_v17, %v181_v16  ;;  %v177_v21 = vld [vmem:[%s5314_s0 + $0x80] sm:$0xff] }
   0x6   :  { %307 = vmatprep.subr.bf16.mxu0 %v270_v9  ;;  %v179_v22 = vld [vmem:[%s5314_s0 + $0x90] sm:$0xff]  ;;  %v266_v23 = vpack.c.bf16 %v180_v19, %v178_v18  ;;  %v174_v24 = vld [vmem:[%s5314_s0 + $0x68] sm:$0xff]  ;;  %v256_v26 = vld [vmem:[%s5314_s0 + $0x2f8] sm:$0xff] }
   0x7   :  { %v254_v25 = vld [vmem:[%s5314_s0 + $0x2e8] sm:$0xff]  ;;  %v176_v27 = vld [vmem:[%s5314_s0 + $0x78] sm:$0xff]  ;;  %v253_v29 = vld [vmem:[%s5314_s0 + $0x2e0] sm:$0xff]  ;;  %v265_v32 = vpack.c.bf16 %v179_v22, %v177_v21 }
   0x8   :  { %v304_v28 = vpack.c.bf16 %v256_v26, %v254_v25  ;;  %v255_v30 = vld [vmem:[%s5314_s0 + $0x2f0] sm:$0xff]  ;;  %v250_v33 = vld [vmem:[%s5314_s0 + $0x2c8] sm:$0xff]  ;;  %v252_v34 = vld [vmem:[%s5314_s0 + $0x2d8] sm:$0xff]  ;;  %v264_v36 = vpack.c.bf16 %v176_v27, %v174_v24 }
   0x9   :  { %308 = vmatpush1.bf16.msra.mxu0 %v269_v14  ;;  %v303_v31 = vpack.c.bf16 %v255_v30, %v253_v29  ;;  %v249_v35 = vld [vmem:[%s5314_s0 + $0x2c0] sm:$0xff]  ;;  %v175_v38 = vld [vmem:[%s5314_s0 + $0x70] sm:$0xff]  ;;  %v302_v39 = vpack.c.bf16 %v252_v34, %v250_v33  ;;  %v170_v41 = vld [vmem:[%s5314_s0 + $0x48] sm:$0xff]  ;;  %v2381_v14 = vshrl.u32 %v74_v0, 7 }
   0xa   :  { %309 = vmatprep.subr.bf16.mxu0 %v268_v15  ;;  %418 = vmatprep.subr.bf16.mxu1 %v304_v28  ;;  %v173_v37 = vld [vmem:[%s5314_s0 + $0x60] sm:$0xff]  ;;  %v251_v40 = vld [vmem:[%s5314_s0 + $0x2d0] sm:$0xff]  ;;  %v172_v42 = vld [vmem:[%s5314_s0 + $0x58] sm:$0xff] }
   0xb   :  { %419 = vmatpush1.bf16.msra.mxu1 %v303_v31  ;;  %v301_v43 = vpack.c.bf16 %v251_v40, %v249_v35  ;;  %v246_v44 = vld [vmem:[%s5314_s0 + $0x2a8] sm:$0xff]  ;;  %v248_v45 = vld [vmem:[%s5314_s0 + $0x2b8] sm:$0xff]  ;;  %v245_v46 = vld [vmem:[%s5314_s0 + $0x2a0] sm:$0xff]  ;;  %v263_v48 = vpack.c.bf16 %v175_v38, %v173_v37  ;;  %v262_v52 = vpack.c.bf16 %v172_v42, %v170_v41  ;;  %v84_v27 = vsub.s32 2, %v2381_v14 }
   0xc   :  { %420 = vmatprep.subr.bf16.mxu1 %v302_v39  ;;  %v247_v47 = vld [vmem:[%s5314_s0 + $0x2b0] sm:$0xff]  ;;  %v169_v49 = vld [vmem:[%s5314_s0 + $0x40] sm:$0xff]  ;;  %v300_v51 = vpack.c.bf16 %v248_v45, %v246_v44  ;;  %v166_v53 = vld [vmem:[%s5314_s0 + $0x28] sm:$0xff]  ;;  %v80_v28 = vsub.s32 1, %v2381_v14 }
   0xd   :  { %310 = vmatpush1.bf16.msra.mxu0 %v267_v20  ;;  %v171_v50 = vld [vmem:[%s5314_s0 + $0x50] sm:$0xff]  ;;  %v299_v54 = vpack.c.bf16 %v247_v47, %v245_v46  ;;  %v242_v55 = vld [vmem:[%s5314_s0 + $0x288] sm:$0xff]  ;;  %v244_v56 = vld [vmem:[%s5314_s0 + $0x298] sm:$0xff] }
   0xe   :  { %311 = vmatprep.subr.bf16.mxu0 %v266_v23  ;;  %v168_v57 = vld [vmem:[%s5314_s0 + $0x38] sm:$0xff]  ;;  %v298_v58 = vpack.c.bf16 %v244_v56, %v242_v55  ;;  %v241_v59 = vld [vmem:[%s5314_s0 + $0x280] sm:$0xff]  ;;  %v243_v60 = vld [vmem:[%s5314_s0 + $0x290] sm:$0xff]  ;;  %v261_v61 = vpack.c.bf16 %v171_v50, %v169_v49 }
   0xf   :  { %421 = vmatpush1.bf16.msra.mxu1 %v301_v43  ;;  %v238_v62 = vld [vmem:[%s5314_s0 + $0x268] sm:$0xff]  ;;  %v240_v63 = vld [vmem:[%s5314_s0 + $0x278] sm:$0xff]  ;;  %v260_v1 = vpack.c.bf16 %v168_v57, %v166_v53  ;;  %v165_v2 = vld [vmem:[%s5314_s0 + $0x20] sm:$0xff]  ;;  %v297_v6 = vpack.c.bf16 %v243_v60, %v241_v59 }
  0x10   :  { %422 = vmatprep.subr.bf16.mxu1 %v300_v51  ;;  %v167_v4 = vld [vmem:[%s5314_s0 + $0x30] sm:$0xff]  ;;  %v162_v5 = vld [vmem:[%s5314_s0 + $0x8] sm:$0xff]  ;;  %v164_v7 = vld [vmem:[%s5314_s0 + $0x18] sm:$0xff]  ;;  %v296_v8 = vpack.c.bf16 %v240_v63, %v238_v62 }
  0x11   :  { %312 = vmatpush1.bf16.msra.mxu0 %v265_v32  ;;  %v237_v9 = vld [vmem:[%s5314_s0 + $0x260] sm:$0xff]  ;;  %v239_v10 = vld [vmem:[%s5314_s0 + $0x270] sm:$0xff]  ;;  %v234_v11 = vld [vmem:[%s5314_s0 + $0x248] sm:$0xff]  ;;  %v259_v13 = vpack.c.bf16 %v167_v4, %v165_v2  ;;  %v258_v15 = vpack.c.bf16 %v164_v7, %v162_v5 }
  0x12   :  { %313 = vmatprep.subr.bf16.mxu0 %v264_v36  ;;  %v236_v12 = vld [vmem:[%s5314_s0 + $0x258] sm:$0xff]  ;;  %v161_v16 = vld [vmem:[%s5314_s0] sm:$0xff]  ;;  %v163_v17 = vld [vmem:[%s5314_s0 + $0x10] sm:$0xff]  ;;  %v295_v19 = vpack.c.bf16 %v239_v10, %v237_v9 }
  0x13   :  { %423 = vmatpush1.bf16.msra.mxu1 %v299_v54  ;;  %v222_v18 = vld [vmem:[%s5314_s0 + $0x1e8] sm:$0xff]  ;;  %v224_v20 = vld [vmem:[%s5314_s0 + $0x1f8] sm:$0xff]  ;;  %v294_v21 = vpack.c.bf16 %v236_v12, %v234_v11  ;;  %v233_v22 = vld [vmem:[%s5314_s0 + $0x240] sm:$0xff]  ;;  %v257_v26 = vpack.c.bf16 %v163_v17, %v161_v16 }
  0x14   :  { %424 = vmatprep.subr.bf16.mxu1 %v298_v58  ;;  %v235_v23 = vld [vmem:[%s5314_s0 + $0x250] sm:$0xff]  ;;  %v230_v24 = vld [vmem:[%s5314_s0 + $0x228] sm:$0xff]  ;;  %v232_v25 = vld [vmem:[%s5314_s0 + $0x238] sm:$0xff]  ;;  %v288_v29 = vpack.c.bf16 %v224_v20, %v222_v18 }
  0x15   :  { %314 = vmatpush1.bf16.msra.mxu0 %v263_v48  ;;  %v221_v30 = vld [vmem:[%s5314_s0 + $0x1e0] sm:$0xff]  ;;  %v223_v31 = vld [vmem:[%s5314_s0 + $0x1f0] sm:$0xff]  ;;  %v218_v32 = vld [vmem:[%s5314_s0 + $0x1c8] sm:$0xff]  ;;  %v293_v33 = vpack.c.bf16 %v235_v23, %v233_v22  ;;  %v292_v35 = vpack.c.bf16 %v232_v25, %v230_v24 }
  0x16   :  { %315 = vmatprep.subr.bf16.mxu0 %v262_v52  ;;  %v220_v34 = vld [vmem:[%s5314_s0 + $0x1d8] sm:$0xff]  ;;  %v229_v36 = vld [vmem:[%s5314_s0 + $0x220] sm:$0xff]  ;;  %v231_v37 = vld [vmem:[%s5314_s0 + $0x230] sm:$0xff]  ;;  %v287_v42 = vpack.c.bf16 %v223_v31, %v221_v30 }
  0x17   :  { %425 = vmatpush1.bf16.msra.mxu1 %v297_v6  ;;  %v217_v38 = vld [vmem:[%s5314_s0 + $0x1c0] sm:$0xff]  ;;  %v226_v39 = vld [vmem:[%s5314_s0 + $0x208] sm:$0xff]  ;;  %v228_v40 = vld [vmem:[%s5314_s0 + $0x218] sm:$0xff]  ;;  %v286_v48 = vpack.c.bf16 %v220_v34, %v218_v32  ;;  %v291_v49 = vpack.c.bf16 %v231_v37, %v229_v36 }
  0x18   :  { %426 = vmatprep.subr.bf16.mxu1 %v296_v8  ;;  %v2439_v41 = vld [vmem:[%s5315_s1] sm:$0x7]  ;;  %v219_v43 = vld [vmem:[%s5314_s0 + $0x1d0] sm:$0xff]  ;;  %v214_v44 = vld [vmem:[%s5314_s0 + $0x1a8] sm:$0xff]  ;;  %v290_v54 = vpack.c.bf16 %v228_v40, %v226_v39  ;;  %v76_v39 = vsub.s32 0, %v2381_v14 }
  0x19   :  { %316 = vmatpush1.bf16.msra.mxu0 %v261_v61  ;;  %v26_v45 = vld [vmem:[%s5316_s2 + $0x10] sm:$0xff]  ;;  %v2451_v46 = vrot.slane %v2439_v41, %v84_v27  ;;  %v2454_v47 = vrot.slane %v2439_v41, %v80_v28  ;;  %v29_v50 = vld [vmem:[%s5316_s2 + $0x28] sm:$0xff]  ;;  %v28_v52 = vld [vmem:[%s5316_s2 + $0x20] sm:$0xff]  ;;  %v285_v59 = vpack.c.bf16 %v219_v43, %v217_v38 }
  0x1a   :  { %317 = vmatprep.subr.bf16.mxu0 %v260_v1  ;;  %v25_v51 = vld [vmem:[%s5316_s2 + $0x8] sm:$0xff]  ;;  %v216_v53 = vld [vmem:[%s5314_s0 + $0x1b8] sm:$0xff]  ;;  %v225_v55 = vld [vmem:[%s5314_s0 + $0x200] sm:$0xff] }
  0x1b   :  { %427 = vmatpush1.bf16.msra.mxu1 %v295_v19  ;;  %v227_v56 = vld [vmem:[%s5314_s0 + $0x210] sm:$0xff]  ;;  %v90_v57 = vmul.f32 %v2454_v47, %v25_v51  ;;  %v93_v58 = vmul.f32 %v2454_v47, %v28_v52  ;;  %v91_v60 = vmul.f32 %v2451_v46, %v26_v45  ;;  %v94_v61 = vmul.f32 %v2451_v46, %v29_v50  ;;  %v213_v0 = vld [vmem:[%s5314_s0 + $0x1a0] sm:$0xff]  ;;  %v210_v4 = vld [vmem:[%s5314_s0 + $0x188] sm:$0xff] }
  0x1c   :  { %428 = vmatprep.subr.bf16.mxu1 %v294_v21  ;;  %v284_v63 = vpack.c.bf16 %v216_v53, %v214_v44  ;;  %v215_v1 = vld [vmem:[%s5314_s0 + $0x1b0] sm:$0xff]  ;;  %v289_v2 = vpack.c.bf16 %v227_v56, %v225_v55  ;;  %v212_v5 = vld [vmem:[%s5314_s0 + $0x198] sm:$0xff]  ;;  %v209_v7 = vld [vmem:[%s5314_s0 + $0x180] sm:$0xff]  ;;  %v2592_v56 = vrot.slane %v2439_v41, %v76_v39 }
  0x1d   :  { %318 = vmatpush1.bf16.msra.mxu0 %v259_v13  ;;  %v138_v62 = vpack.c.bf16 %v93_v58, %v90_v57  ;;  %v283_v6 = vpack.c.bf16 %v215_v1, %v213_v0  ;;  %v139_v8 = vpack.c.bf16 %v94_v61, %v91_v60  ;;  %v282_v9 = vpack.c.bf16 %v212_v5, %v210_v4  ;;  %v211_v10 = vld [vmem:[%s5314_s0 + $0x190] sm:$0xff]  ;;  %v32_v11 = vld [vmem:[%s5316_s2 + $0x40] sm:$0xff]  ;;  %v35_v12 = vld [vmem:[%s5316_s2 + $0x58] sm:$0xff] }
  0x1e   :  { %319 = vmatprep.subr.bf16.mxu0 %v258_v15  ;;  %v206_v13 = vld [vmem:[%s5314_s0 + $0x168] sm:$0xff]  ;;  %v208_v15 = vld [vmem:[%s5314_s0 + $0x178] sm:$0xff]  ;;  %v281_v16 = vpack.c.bf16 %v211_v10, %v209_v7  ;;  %v97_v17 = vmul.f32 %v2451_v46, %v32_v11  ;;  %v100_v18 = vmul.f32 %v2451_v46, %v35_v12  ;;  %v205_v20 = vld [vmem:[%s5314_s0 + $0x160] sm:$0xff] }
  0x1f   :  { %429 = vmatpush1.bf16.msra.mxu1 %v293_v33  ;;  %337 = vmatprep.mubr.bf16.mxu0 %v138_v62  ;;  %v280_v19 = vpack.c.bf16 %v208_v15, %v206_v13  ;;  %v207_v21 = vld [vmem:[%s5314_s0 + $0x170] sm:$0xff]  ;;  %v61_v22 = vld [vmem:[%s5316_s2 + $0x128] sm:$0xff]  ;;  %v204_v24 = vld [vmem:[%s5314_s0 + $0x158] sm:$0xff] }
  0x20   :  { %430 = vmatprep.subr.bf16.mxu1 %v292_v35  ;;  %v202_v23 = vld [vmem:[%s5314_s0 + $0x148] sm:$0xff]  ;;  %v64_v25 = vld [vmem:[%s5316_s2 + $0x140] sm:$0xff]  ;;  %v142_v28 = vpack.c.bf16 %v100_v18, %v97_v17  ;;  %v67_v30 = vld [vmem:[%s5316_s2 + $0x158] sm:$0xff] }
  0x21   :  { %320 = vmatpush1.bf16.msra.mxu0 %v257_v26  ;;  %v279_v26 = vpack.c.bf16 %v207_v21, %v205_v20  ;;  %v201_v27 = vld [vmem:[%s5314_s0 + $0x140] sm:$0xff]  ;;  %v70_v31 = vld [vmem:[%s5316_s2 + $0x170] sm:$0xff]  ;;  %v278_v32 = vpack.c.bf16 %v204_v24, %v202_v23  ;;  %v41_v35 = vld [vmem:[%s5316_s2 + $0x88] sm:$0xff]  ;;  %v2551_v36 = vmul.f32 %v2454_v47, %v64_v25 }
  0x22   :  { %321 = vmatprep.subr.bf16.mxu0 %v288_v29  ;;  %v2533_v29 = vmul.f32 %v2454_v47, %v61_v22  ;;  %v203_v33 = vld [vmem:[%s5314_s0 + $0x150] sm:$0xff]  ;;  %v198_v37 = vld [vmem:[%s5314_s0 + $0x128] sm:$0xff]  ;;  %v200_v38 = vld [vmem:[%s5314_s0 + $0x138] sm:$0xff]  ;;  %v2566_v43 = vmul.f32 %v2454_v47, %v70_v31 }
  0x23   :  { %431 = vmatpush1.bf16.msra.mxu1 %v291_v49  ;;  %v38_v34 = vld [vmem:[%s5316_s2 + $0x70] sm:$0xff]  ;;  %v277_v44 = vpack.c.bf16 %v203_v33, %v201_v27  ;;  %v276_v49 = vpack.c.bf16 %v200_v38, %v198_v37  ;;  %v197_v14 = vld [vmem:[%s5314_s0 + $0x120] sm:$0xff]  ;;  %v194_v52 = vld [vmem:[%s5314_s0 + $0x108] sm:$0xff] }
  0x24   :  { %432 = vmatprep.subr.bf16.mxu1 %v290_v54  ;;  %v156_v40 = vpack.c.bf16 %v2551_v36, %v2533_v29  ;;  %v103_v45 = vmul.f32 %v2451_v46, %v38_v34  ;;  %v199_v50 = vld [vmem:[%s5314_s0 + $0x130] sm:$0xff]  ;;  %v196_v53 = vld [vmem:[%s5314_s0 + $0x118] sm:$0xff]  ;;  %v193_v54 = vld [vmem:[%s5314_s0 + $0x100] sm:$0xff] }
  0x25   :  { %322 = vmatpush2.bf16.msra.mxu0 %v287_v42  ;;  %v2563_v42 = vmul.f32 %v2454_v47, %v67_v30  ;;  %v195_v55 = vld [vmem:[%s5314_s0 + $0x110] sm:$0xff]  ;;  %v275_v57 = vpack.c.bf16 %v199_v50, %v197_v14  ;;  %v24_v58 = vld [vmem:[%s5316_s2] sm:$0xff]  ;;  %v31_v60 = vld [vmem:[%s5316_s2 + $0x38] sm:$0xff]  ;;  %v274_v62 = vpack.c.bf16 %v196_v53, %v194_v52 }
  0x26   :  { %323 = vmatprep.subr.bf16.mxu0 %v286_v48  ;;  %v106_v48 = vmul.f32 %v2451_v46, %v41_v35  ;;  %v34_v41 = vld [vmem:[%s5316_s2 + $0x50] sm:$0xff]  ;;  %v47_v0 = vld [vmem:[%s5316_s2 + $0xb8] sm:$0xff]  ;;  %v273_v1 = vpack.c.bf16 %v195_v55, %v193_v54  ;;  %v96_v5 = vmul.f32 %v2454_v47, %v31_v60  ;;  %v33_v12 = vld [vmem:[%s5316_s2 + $0x48] sm:$0xff] }
  0x27   :  { %433 = vmatpush1.bf16.msra.mxu1 %v289_v2  ;;  %v159_v51 = vpack.c.bf16 %v2566_v43, %v2563_v42  ;;  %v89_v2 = vmul.f32 %v2592_v56, %v24_v58  ;;  %v30_v11 = vld [vmem:[%s5316_s2 + $0x30] sm:$0xff]  ;;  %v37_v13 = vld [vmem:[%s5316_s2 + $0x68] sm:$0xff]  ;;  %v98_v20 = vmul.f32 %v2592_v56, %v33_v12  ;;  %v36_v27 = vld [vmem:[%s5316_s2 + $0x60] sm:$0xff] }
  0x28   :  { %v145_v61 = vpack.c.bf16 %v106_v48, %v103_v45  ;;  %v50_v17 = vld [vmem:[%s5316_s2 + $0xd0] sm:$0xff]  ;;  %v53_v18 = vld [vmem:[%s5316_s2 + $0xe8] sm:$0xff]  ;;  %v102_v21 = vmul.f32 %v2454_v47, %v37_v13  ;;  %v43_v30 = vld [vmem:[%s5316_s2 + $0x98] sm:$0xff]  ;;  %v101_v35 = vmul.f32 %v2592_v56, %v36_v27 }
  0x29   :  { %324 = vmatpush2.bf16.msra.mxu0 %v285_v59  ;;  %v27_v59 = vld [vmem:[%s5316_s2 + $0x18] sm:$0xff]  ;;  %v115_v23 = vmul.f32 %v2451_v46, %v50_v17  ;;  %v118_v24 = vmul.f32 %v2451_v46, %v53_v18  ;;  %v56_v33 = vld [vmem:[%s5316_s2 + $0x100] sm:$0xff]  ;;  %v108_v38 = vmul.f32 %v2454_v47, %v43_v30  ;;  %v42_v14 = vld [vmem:[%s5316_s2 + $0x90] sm:$0xff] }
  0x2a   :  { %325 = vmatprep.subr.bf16.mxu0 %v284_v63  ;;  %451 = vmatmul.mubr.bf16.vlgmr.msra.gmra.mxu1 %v139_v8  ;;  %v44_v63 = vld [vmem:[%s5316_s2 + $0xa0] sm:$0xff]  ;;  %v92_v4 = vmul.f32 %v2592_v56, %v27_v59  ;;  %v112_v8 = vmul.f32 %v2451_v46, %v47_v0  ;;  %v59_v34 = vld [vmem:[%s5316_s2 + $0x118] sm:$0xff]  ;;  %v45_v50 = vld [vmem:[%s5316_s2 + $0xa8] sm:$0xff]  ;;  %v107_v58 = vmul.f32 %v2592_v56, %v42_v14 }
  0x2b   :  { %460 = vmatprep.mubr.bf16.mxu1 %v5321_v3  ;;  %v109_v7 = vmul.f32 %v2451_v46, %v44_v63  ;;  %v151_v31 = vpack.c.bf16 %v118_v24, %v115_v23  ;;  %v124_v45 = vmul.f32 %v2451_v46, %v59_v34  ;;  %v49_v52 = vld [vmem:[%s5316_s2 + $0xc8] sm:$0xff]  ;;  %v52_v54 = vld [vmem:[%s5316_s2 + $0xe0] sm:$0xff]  ;;  %v62_v55 = vld [vmem:[%s5316_s2 + $0x130] sm:$0xff]  ;;  %v110_v59 = vmul.f32 %v2592_v56, %v45_v50 }
  0x2c   :  { %v114_v60 = vmul.f32 %v2454_v47, %v49_v52  ;;  %v54_v18 = vld [vmem:[%s5316_s2 + $0xf0] sm:$0xff]  ;;  %v63_v23 = vld [vmem:[%s5316_s2 + $0x138] sm:$0xff] }
  0x2d   :  { %326 = vmatpush2.bf16.msra.mxu0 %v283_v6  ;;  %v99_v6 = vmul.f32 %v2454_v47, %v34_v41  ;;  %v148_v15 = vpack.c.bf16 %v112_v8, %v109_v7  ;;  %v146_v63 = vpack.c.bf16 %v110_v59, %v107_v58  ;;  %v68_v7 = vld [vmem:[%s5316_s2 + $0x160] sm:$0xff]  ;;  %v71_v8 = vld [vmem:[%s5316_s2 + $0x178] sm:$0xff]  ;;  %v66_v27 = vld [vmem:[%s5316_s2 + $0x150] sm:$0xff] }
  0x2e   :  { %327 = vmatprep.subr.bf16.mxu0 %v282_v9  ;;  %v137_v9 = vpack.c.bf16 %v92_v4, %v89_v2  ;;  %v51_v2 = vld [vmem:[%s5316_s2 + $0xd8] sm:$0xff]  ;;  %v133_v13 = vmul.f32 %v2451_v46, %v68_v7  ;;  %v131_v30 = vmul.f32 %v2592_v56, %v66_v27 }
  0x2f   :  { %v141_v10 = vpack.c.bf16 %v99_v6, %v96_v5  ;;  %v55_v4 = vld [vmem:[%s5316_s2 + $0xf8] sm:$0xff]  ;;  %v58_v6 = vld [vmem:[%s5316_s2 + $0x110] sm:$0xff] }
  0x30   :  { %v123_v12 = vmul.f32 %v2454_v47, %v58_v6 }
  0x31   :  { %328 = vmatpush2.bf16.msra.mxu0 %v281_v16  ;;  %v40_v16 = vld [vmem:[%s5316_s2 + $0x80] sm:$0xff] }
  0x32   :  { %329 = vmatprep.subr.bf16.mxu0 %v280_v19  ;;  %461 = vmatmul.mubr.bf16.gmra.mxu1 %v142_v28  ;;  %v95_v19 = vmul.f32 %v2592_v56, %v30_v11  ;;  %v105_v22 = vmul.f32 %v2454_v47, %v40_v16  ;;  %v39_v28 = vld [vmem:[%s5316_s2 + $0x78] sm:$0xff]  ;;  %v120_v11 = vmul.f32 %v2454_v47, %v55_v4 }
  0x33   :  { %470 = vmatprep.mubr.bf16.mxu1 %v5321_v3  ;;  %v104_v37 = vmul.f32 %v2592_v56, %v39_v28  ;;  %v69_v28 = vld [vmem:[%s5316_s2 + $0x168] sm:$0xff] }
  0x34   :  { %v140_v25 = vpack.c.bf16 %v98_v20, %v95_v19  ;;  %v153_v17 = vpack.c.bf16 %v123_v12, %v120_v11  ;;  %v57_v19 = vld [vmem:[%s5316_s2 + $0x108] sm:$0xff] }
  0x35   :  { %330 = vmatpush2.bf16.msra.mxu0 %v279_v26  ;;  %v144_v26 = vpack.c.bf16 %v105_v22, %v102_v21  ;;  %v143_v48 = vpack.c.bf16 %v104_v37, %v101_v35  ;;  %v122_v21 = vmul.f32 %v2592_v56, %v57_v19  ;;  %v60_v22 = vld [vmem:[%s5316_s2 + $0x120] sm:$0xff] }
  0x36   :  { %331 = vmatprep.subr.bf16.mxu0 %v278_v32  ;;  %v46_v32 = vld [vmem:[%s5316_s2 + $0xb0] sm:$0xff]  ;;  %v125_v24 = vmul.f32 %v2592_v56, %v60_v22 }
  0x37   :  { %v111_v39 = vmul.f32 %v2454_v47, %v46_v32 }
  0x39   :  { %332 = vmatpush2.bf16.msra.mxu0 %v277_v44  ;;  %v121_v44 = vmul.f32 %v2451_v46, %v56_v33 }
  0x3a   :  { %333 = vmatprep.subr.bf16.mxu0 %v276_v49  ;;  %471 = vmatmul.mubr.bf16.gmra.mxu1 %v145_v61  ;;  %v147_v49 = vpack.c.bf16 %v111_v39, %v108_v38  ;;  %v117_v61 = vmul.f32 %v2454_v47, %v52_v54  ;;  %v119_v47 = vmul.f32 %v2592_v56, %v54_v18 }
  0x3b   :  { %480 = vmatprep.mubr.bf16.mxu1 %v5321_v3  ;;  %v154_v53 = vpack.c.bf16 %v124_v45, %v121_v44 }
  0x3c   :  { %v150_v0 = vpack.c.bf16 %v117_v61, %v114_v60 }
  0x3d   :  { %334 = vmatpush2.bf16.msra.mxu0 %v275_v57  ;;  %v65_v57 = vld [vmem:[%s5316_s2 + $0x148] sm:$0xff] }
  0x3e   :  { %335 = vmatprep.subr.bf16.mxu0 %v274_v62  ;;  %v127_v62 = vmul.f32 %v2451_v46, %v62_v55  ;;  %v130_v41 = vmul.f32 %v2451_v46, %v65_v57 }
  0x40   :  { %v157_v5 = vpack.c.bf16 %v130_v41, %v127_v62 }
  0x41   :  { %336 = vmatpush2.bf16.msra.mxu0 %v273_v1  ;;  %v48_v1 = vld [vmem:[%s5316_s2 + $0xc0] sm:$0xff] }
  0x42   :  { %481 = vmatmul.mubr.bf16.gmra.mxu1 %v148_v15  ;;  %v136_v15 = vmul.f32 %v2451_v46, %v71_v8  ;;  %v152_v46 = vpack.c.bf16 %v122_v21, %v119_v47 }
  0x43   :  { %490 = vmatprep.mubr.bf16.mxu1 %v5321_v3 }
  0x44   :  { %338 = vmatmul.mubr.bf16.vlgmr.msra.gmra.mxu0 %v137_v9  ;;  %v113_v9 = vmul.f32 %v2592_v56, %v48_v1  ;;  %v160_v20 = vpack.c.bf16 %v136_v15, %v133_v13 }
  0x45   :  { %347 = vmatprep.mubr.bf16.mxu0 %v141_v10  ;;  %v116_v10 = vmul.f32 %v2592_v56, %v51_v2 }
  0x47   :  { %v149_v16 = vpack.c.bf16 %v116_v10, %v113_v9 }
  0x4a   :  { %491 = vmatmul.mubr.bf16.gmra.mxu1 %v151_v31  ;;  %v134_v31 = vmul.f32 %v2592_v56, %v69_v28 }
  0x4b   :  { %500 = vmatprep.mubr.bf16.mxu1 %v5321_v3 }
  0x4c   :  { %348 = vmatmul.mubr.bf16.gmra.mxu0 %v140_v25  ;;  %v128_v25 = vmul.f32 %v2592_v56, %v63_v23  ;;  %v158_v29 = vpack.c.bf16 %v134_v31, %v131_v30 }
  0x4d   :  { %357 = vmatprep.mubr.bf16.mxu0 %v144_v26 }
  0x4e   :  { %v155_v26 = vpack.c.bf16 %v128_v25, %v125_v24 }
  0x52   :  { %501 = vmatmul.mubr.bf16.gmra.mxu1 %v154_v53 }
  0x53   :  { %510 = vmatprep.mubr.bf16.mxu1 %v5321_v3 }
  0x54   :  { %358 = vmatmul.mubr.bf16.gmra.mxu0 %v143_v48 }
  0x55   :  { %367 = vmatprep.mubr.bf16.mxu0 %v147_v49 }
  0x5a   :  { %511 = vmatmul.mubr.bf16.gmra.mxu1 %v157_v5 }
  0x5b   :  { %520 = vmatprep.mubr.bf16.mxu1 %v5321_v3 }
  0x5c   :  { %368 = vmatmul.mubr.bf16.gmra.mxu0 %v146_v63 }
  0x5d   :  { %377 = vmatprep.mubr.bf16.mxu0 %v150_v0 }
  0x62   :  { %521 = vmatmul.mubr.bf16.gmra.mxu1 %v160_v20 }
  0x63   :  { %1678 = vmatprep.mubr.bf16.mxu1 %v5321_v3 }
  0x64   :  { %378 = vmatmul.mubr.bf16.gmra.mxu0 %v149_v16 }
  0x65   :  { %387 = vmatprep.mubr.bf16.mxu0 %v153_v17 }
  0x6c   :  { %388 = vmatmul.mubr.bf16.gmra.mxu0 %v152_v46 }
  0x6d   :  { %397 = vmatprep.mubr.bf16.mxu0 %v156_v40 }
  0x74   :  { %398 = vmatmul.mubr.bf16.gmra.mxu0 %v155_v26 }
  0x75   :  { %407 = vmatprep.mubr.bf16.mxu0 %v159_v51 }
  0x7c   :  { %408 = vmatmul.mubr.bf16.gmra.mxu0 %v158_v29 }
  0x7d   :  { %1458 = vmatprep.mubr.bf16.mxu0 %v5321_v3  ;;  %v3192_v3 = vld [vmem:[%s5318_s5 + $0xc0] sm:$0xff] }
  0xea   :  { %v452_v36 = vpop.f32.mrf.mxu1 }
  0xec   :  { %v454_v40 = vpop.f32.mrf.mxu1 }
  0xee   :  { %v456_v32 = vpop.f32.mrf.mxu1 }
  0xf0   :  { %v2751_v33 = vpop.f32.mrf.mxu1 }
  0xf2   :  { %v462_v34 = vpop.f32.mrf.mxu1 }
  0xf4   :  { %v464_v35 = vpop.f32.mrf.mxu1 }
  0xf6   :  { %v466_v37 = vpop.f32.mrf.mxu1 }
  0xf8   :  { %v2753_v38 = vpop.f32.mrf.mxu1 }
  0xfa   :  { %v2755_v39 = vpop.f32.mrf.mxu1 }
  0xfc   :  { %v2757_v56 = vpop.f32.mrf.mxu1 }
  0xfe   :  { %v2759_v42 = vpop.f32.mrf.mxu1 }
 0x100   :  { %v2761_v43 = vpop.f32.mrf.mxu1 }
 0x102   :  { %v2765_v45 = vpop.f32.mrf.mxu1 }
 0x104   :  { %v339_v51 = vpop.f32.mrf.mxu0  ;;  %v2769_v14 = vpop.f32.mrf.mxu1 }
 0x105   :  { %v2763_v44 = vadd.f32 %v452_v36, %v339_v51 }
 0x106   :  { %v341_v48 = vpop.f32.mrf.mxu0  ;;  %v2773_v53 = vpop.f32.mrf.mxu1 }
 0x107   :  { %5413 = vst [vmem:[#allocation2_spill] sm:$0xff] %v2763_v44  ;;  %v2767_v49 = vadd.f32 %v454_v40, %v341_v48 }
 0x108   :  { %v343_v50 = vpop.f32.mrf.mxu0  ;;  %v2777_v55 = vpop.f32.mrf.mxu1 }
 0x109   :  { %5414 = vst [vmem:[#allocation3_spill] sm:$0xff] %v2767_v49  ;;  %v2771_v52 = vadd.f32 %v456_v32, %v343_v50 }
 0x10a   :  { %v2775_v54 = vpop.f32.mrf.mxu0  ;;  %v492_v59 = vpop.f32.mrf.mxu1 }
 0x10b   :  { %5415 = vst [vmem:[#allocation4_spill] sm:$0xff] %v2771_v52 }
 0x10c   :  { %v349_v57 = vpop.f32.mrf.mxu0  ;;  %v494_v62 = vpop.f32.mrf.mxu1 }
 0x10d   :  { %v2779_v58 = vadd.f32 %v462_v34, %v349_v57 }
 0x10e   :  { %v351_v60 = vpop.f32.mrf.mxu0  ;;  %v496_v0 = vpop.f32.mrf.mxu1 }
 0x10f   :  { %5416 = vst [vmem:[#allocation5_spill] sm:$0xff] %v2779_v58  ;;  %v2781_v61 = vadd.f32 %v464_v35, %v351_v60 }
 0x110   :  { %v353_v41 = vpop.f32.mrf.mxu0  ;;  %v498_v4 = vpop.f32.mrf.mxu1 }
 0x111   :  { %5417 = vst [vmem:[#allocation6_spill] sm:$0xff] %v2781_v61  ;;  %v2783_v63 = vadd.f32 %v466_v37, %v353_v41 }
 0x112   :  { %v2785_v1 = vpop.f32.mrf.mxu0  ;;  %v502_v7 = vpop.f32.mrf.mxu1 }
 0x113   :  { %5418 = vst [vmem:[#allocation7_spill] sm:$0xff] %v2783_v63 }
 0x114   :  { %v2787_v2 = vpop.f32.mrf.mxu0  ;;  %v504_v10 = vpop.f32.mrf.mxu1 }
 0x116   :  { %v2789_v5 = vpop.f32.mrf.mxu0  ;;  %v506_v13 = vpop.f32.mrf.mxu1 }
 0x118   :  { %v2791_v6 = vpop.f32.mrf.mxu0  ;;  %v508_v17 = vpop.f32.mrf.mxu1 }
 0x11a   :  { %v2793_v8 = vpop.f32.mrf.mxu0  ;;  %v512_v21 = vpop.f32.mrf.mxu1 }
 0x11c   :  { %v2795_v9 = vpop.f32.mrf.mxu0  ;;  %v514_v30 = vpop.f32.mrf.mxu1 }
 0x11e   :  { %v2797_v11 = vpop.f32.mrf.mxu0  ;;  %v516_v50 = vpop.f32.mrf.mxu1 }
 0x120   :  { %v2799_v12 = vpop.f32.mrf.mxu0 }
 0x122   :  { %v2801_v15 = vpop.f32.mrf.mxu0 }
 0x124   :  { %v379_v16 = vpop.f32.mrf.mxu0 }
 0x125   :  { %v2805_v20 = vadd.f32 %v492_v59, %v379_v16  ;;  %v518_v16 = vpop.f32.mrf.mxu1 }
 0x126   :  { %v381_v18 = vpop.f32.mrf.mxu0 }
 0x127   :  { %v2803_v19 = vadd.f32 %v494_v62, %v381_v18  ;;  %v628_v31 = vmul.f32 %v2805_v20, %v2805_v20 }
 0x128   :  { %v383_v47 = vpop.f32.mrf.mxu0 }
 0x129   :  { %v564_v46 = vsel %vm531_vm0, %v2803_v19, 0.0  ;;  %v629_v22 = vmul.f32 %v2803_v19, %v2803_v19  ;;  %v2815_v27 = vadd.f32 %v496_v0, %v383_v47 }
 0x12a   :  { %v385_v23 = vpop.f32.mrf.mxu0  ;;  %v565_v24 = vadd.f32 %v564_v46, %v2805_v20 }
 0x12b   :  { %v2812_v25 = vadd.f32 %v498_v4, %v385_v23  ;;  %v676_v26 = vsel %vm531_vm0, %v629_v22, 0.0  ;;  %v630_v57 = vmul.f32 %v2815_v27, %v2815_v27 }
 0x12c   :  { %566 = vadd.xlane.f32.xlu0 %v565_v24  ;;  %v389_v28 = vpop.f32.mrf.mxu0  ;;  %v677_v32 = vadd.f32 %v676_v26, %v628_v31 }
 0x12d   :  { %v568_v29 = vsel %vm531_vm0, %v2812_v25, 0.0  ;;  %v631_v36 = vmul.f32 %v2812_v25, %v2812_v25  ;;  %v2827_v51 = vadd.f32 %v502_v7, %v389_v28 }
 0x12e   :  { %v391_v40 = vpop.f32.mrf.mxu0  ;;  %v569_v34 = vadd.f32 %v568_v29, %v2815_v27 }
 0x12f   :  { %v2824_v35 = vadd.f32 %v504_v10, %v391_v40  ;;  %v680_v37 = vsel %vm531_vm0, %v631_v36, 0.0  ;;  %v632_v47 = vmul.f32 %v2827_v51, %v2827_v51 }
 0x130   :  { %678 = vadd.xlane.f32.xlu0 %v677_v32  ;;  %570 = vadd.xlane.f32.xlu1 %v569_v34  ;;  %v393_v48 = vpop.f32.mrf.mxu0  ;;  %v681_v41 = vadd.f32 %v680_v37, %v630_v57 }
 0x131   :  { %v572_v59 = vsel %vm531_vm0, %v2824_v35, 0.0  ;;  %v633_v60 = vmul.f32 %v2824_v35, %v2824_v35  ;;  %v2839_v10 = vadd.f32 %v506_v13, %v393_v48 }
 0x132   :  { %v395_v62 = vpop.f32.mrf.mxu0  ;;  %v573_v0 = vadd.f32 %v572_v59, %v2827_v51 }
 0x133   :  { %v2836_v4 = vadd.f32 %v508_v17, %v395_v62  ;;  %v684_v7 = vsel %vm531_vm0, %v633_v60, 0.0  ;;  %v522_v17 = vpop.f32.mrf.mxu1  ;;  %v634_v36 = vmul.f32 %v2839_v10, %v2839_v10 }
 0x134   :  { %682 = vadd.xlane.f32.xlu1 %v681_v41  ;;  %574 = vadd.xlane.f32.xlu0 %v573_v0  ;;  %v399_v18 = vpop.f32.mrf.mxu0  ;;  %v685_v24 = vadd.f32 %v684_v7, %v632_v47 }
 0x135   :  { %v576_v46 = vsel %vm531_vm0, %v2836_v4, 0.0  ;;  %v635_v22 = vmul.f32 %v2836_v4, %v2836_v4  ;;  %v2851_v31 = vadd.f32 %v512_v21, %v399_v18  ;;  %v524_v37 = vpop.f32.mrf.mxu1 }
 0x136   :  { %v401_v23 = vpop.f32.mrf.mxu0  ;;  %v577_v26 = vadd.f32 %v576_v46, %v2839_v10 }
 0x137   :  { %v2848_v13 = vadd.f32 %v514_v30, %v401_v23  ;;  %v688_v28 = vsel %vm531_vm0, %v635_v22, 0.0  ;;  %v636_v62 = vmul.f32 %v2851_v31, %v2851_v31  ;;  %v526_v7 = vpop.f32.mrf.mxu1 }
 0x138   :  { %686 = vadd.xlane.f32.xlu0 %v685_v24  ;;  %578 = vadd.xlane.f32.xlu1 %v577_v26  ;;  %v403_v29 = vpop.f32.mrf.mxu0  ;;  %v689_v30 = vadd.f32 %v688_v28, %v634_v36 }
 0x139   :  { %v580_v40 = vsel %vm531_vm0, %v2848_v13, 0.0  ;;  %v637_v32 = vmul.f32 %v2848_v13, %v2848_v13  ;;  %v2863_v59 = vadd.f32 %v516_v50, %v403_v29  ;;  %v528_v28 = vpop.f32.mrf.mxu1 }
 0x13a   :  { %v405_v34 = vpop.f32.mrf.mxu0  ;;  %v581_v48 = vadd.f32 %v580_v40, %v2851_v31 }
 0x13b   :  { %v2860_v57 = vadd.f32 %v518_v16, %v405_v34  ;;  %v692_v21 = vsel %vm531_vm0, %v637_v32, 0.0  ;;  %v638_v24 = vmul.f32 %v2863_v59, %v2863_v59  ;;  %v2888_v34 = vadd.f32 %v2769_v14, %v2797_v11 }
 0x13c   :  { %690 = vadd.xlane.f32.xlu1 %v689_v30  ;;  %582 = vadd.xlane.f32.xlu0 %v581_v48  ;;  %v409_v60 = vpop.f32.mrf.mxu0  ;;  %v693_v47 = vadd.f32 %v692_v21, %v636_v62 }
 0x13d   :  { %v584_v41 = vsel %vm531_vm0, %v2860_v57, 0.0  ;;  %v639_v0 = vmul.f32 %v2860_v57, %v2860_v57  ;;  %v2871_v18 = vadd.f32 %v522_v17, %v409_v60  ;;  %5420 = vst [vmem:[#allocation9_spill] sm:$0xff] %v2888_v34 }
 0x13e   :  { %v411_v16 = vpop.f32.mrf.mxu0  ;;  %v585_v50 = vadd.f32 %v584_v41, %v2863_v59 }
 0x13f   :  { %v2874_v46 = vadd.f32 %v524_v37, %v411_v16  ;;  %v696_v22 = vsel %vm531_vm0, %v639_v0, 0.0  ;;  %v640_v32 = vmul.f32 %v2871_v18, %v2871_v18  ;;  %v2892_v37 = vadd.f32 %v2777_v55, %v2801_v15 }
 0x140   :  { %694 = vadd.xlane.f32.xlu0 %v693_v47  ;;  %586 = vadd.xlane.f32.xlu1 %v585_v50  ;;  %v413_v23 = vpop.f32.mrf.mxu0  ;;  %v697_v36 = vadd.f32 %v696_v22, %v638_v24  ;;  %v556_v55 = vsel %vm531_vm0, %v2888_v34, 0.0  ;;  %v625_v15 = vmul.f32 %v2888_v34, %v2888_v34  ;;  %v2912_v0 = vadd.f32 %v2765_v45, %v2795_v9 }
 0x141   :  { %5419 = vst [vmem:[#allocation8_spill] sm:$0xff] %v2874_v46  ;;  %v588_v26 = vsel %vm531_vm0, %v2874_v46, 0.0  ;;  %v641_v17 = vmul.f32 %v2874_v46, %v2874_v46  ;;  %5421 = vst [vmem:[#allocation10_spill] sm:$0xff] %v2892_v37  ;;  %v2897_v21 = vadd.f32 %v526_v7, %v413_v23  ;;  %v560_v14 = vsel %vm531_vm0, %v2892_v37, 0.0 }
 0x142   :  { %v415_v29 = vpop.f32.mrf.mxu0  ;;  %v589_v40 = vadd.f32 %v588_v26, %v2871_v18  ;;  %5424 = vst [vmem:[#allocation13_spill] sm:$0xff] %v2912_v0  ;;  %v2916_v7 = vadd.f32 %v2773_v53, %v2799_v12  ;;  %v557_v47 = vadd.f32 %v556_v55, %v2912_v0  ;;  %v2922_v50 = vadd.f32 %v2757_v56, %v2789_v5 }
 0x143   :  { %v2894_v30 = vadd.f32 %v528_v28, %v415_v29  ;;  %v700_v48 = vsel %vm531_vm0, %v641_v17, 0.0  ;;  %5423 = vst [vmem:[#allocation12_spill] sm:$0xff] %v2897_v21  ;;  %v668_v23 = vsel %vm531_vm0, %v625_v15, 0.0  ;;  %v627_v45 = vmul.f32 %v2892_v37, %v2892_v37 }
 0x144   :  { %698 = vadd.xlane.f32.xlu1 %v697_v36  ;;  %590 = vadd.xlane.f32.xlu0 %v589_v40  ;;  %v701_v62 = vadd.f32 %v700_v48, %v640_v32  ;;  %5425 = vst [vmem:[#allocation14_spill] sm:$0xff] %v2916_v7  ;;  %v561_v16 = vadd.f32 %v560_v14, %v2916_v7  ;;  %5426 = vst [vmem:[#allocation15_spill] sm:$0xff] %v2922_v50  ;;  %v548_v26 = vsel %vm531_vm0, %v2922_v50, 0.0 }
 0x145   :  { %5422 = vst [vmem:[#allocation11_spill] sm:$0xff] %v2894_v30  ;;  %v592_v60 = vsel %vm531_vm0, %v2894_v30, 0.0  ;;  %v643_v11 = vmul.f32 %v2894_v30, %v2894_v30  ;;  %v642_v53 = vmul.f32 %v2897_v21, %v2897_v21  ;;  %v624_v9 = vmul.f32 %v2912_v0, %v2912_v0 }
 0x146   :  { %v593_v41 = vadd.f32 %v592_v60, %v2897_v21  ;;  %v2934_v56 = vadd.f32 %v2761_v43, %v2793_v8  ;;  %v672_v5 = vsel %vm531_vm0, %v627_v45, 0.0  ;;  %v621_v17 = vmul.f32 %v2922_v50, %v2922_v50 }
 0x147   :  { %v704_v22 = vsel %vm531_vm0, %v643_v11, 0.0  ;;  %v669_v24 = vadd.f32 %v668_v23, %v624_v9  ;;  %v2943_v28 = vadd.f32 %v2755_v39, %v2787_v2  ;;  %v626_v29 = vmul.f32 %v2916_v7, %v2916_v7 }
 0x148   :  { %702 = vadd.xlane.f32.xlu1 %v701_v62  ;;  %594 = vadd.xlane.f32.xlu0 %v593_v41  ;;  %v705_v12 = vadd.f32 %v704_v22, %v642_v53  ;;  %5427 = vst [vmem:[#allocation16_spill] sm:$0xff] %v2934_v56  ;;  %v552_v8 = vsel %vm531_vm0, %v2934_v56, 0.0  ;;  %v660_v40 = vsel %vm531_vm0, %v621_v17, 0.0  ;;  %v623_v32 = vmul.f32 %v2934_v56, %v2934_v56 }
 0x149   :  { %5428 = vst [vmem:[#allocation17_spill] sm:$0xff] %v2943_v28  ;;  %v673_v36 = vadd.f32 %v672_v5, %v626_v29  ;;  %v549_v43 = vadd.f32 %v548_v26, %v2943_v28  ;;  %v2955_v39 = vadd.f32 %v2759_v42, %v2791_v6  ;;  %v620_v2 = vmul.f32 %v2943_v28, %v2943_v28 }
 0x14a   :  { %v2962_v62 = vadd.f32 %v2753_v38, %v2785_v1  ;;  %v664_v41 = vsel %vm531_vm0, %v623_v32, 0.0  ;;  %v540_v14 = vsel %vm531_vm0, %v2781_v61, 0.0  ;;  %v617_v42 = vmul.f32 %v2781_v61, %v2781_v61  ;;  %v3006_v32 = vld [vmem:[%s5317_s4] ss:$0 sm:$0xff] }
 0x14b   :  { %5429 = vst [vmem:[#allocation18_spill] sm:$0xff] %v2955_v39  ;;  %v553_v48 = vadd.f32 %v552_v8, %v2955_v39  ;;  %v661_v60 = vadd.f32 %v660_v40, %v620_v2  ;;  %v622_v6 = vmul.f32 %v2955_v39, %v2955_v39  ;;  %v541_v11 = vadd.f32 %v540_v14, %v2779_v58  ;;  %v884_v2 = vld [vmem:[%s5318_s5] sm:$0xff] }
 0x14c   :  { %562 = vadd.xlane.f32.xlu1 %v561_v16  ;;  %558 = vadd.xlane.f32.xlu0 %v557_v47  ;;  %5430 = vst [vmem:[#allocation19_spill] sm:$0xff] %v2962_v62  ;;  %v544_v38 = vsel %vm531_vm0, %v2962_v62, 0.0  ;;  %v652_v1 = vsel %vm531_vm0, %v617_v42, 0.0  ;;  %v619_v15 = vmul.f32 %v2962_v62, %v2962_v62  ;;  %v616_v16 = vmul.f32 %v2779_v58, %v2779_v58 }
 0x14d   :  { %v665_v55 = vadd.f32 %v664_v41, %v622_v6  ;;  %v545_v47 = vadd.f32 %v544_v38, %v2783_v63  ;;  %v2982_v23 = vadd.f32 %v2751_v33, %v2775_v54  ;;  %v532_v53 = vsel %vm531_vm0, %v2767_v49, 0.0  ;;  %v886_v41 = vld [vmem:[%s5318_s5 + $0x10] sm:$0xff]  ;;  %v887_v6 = vld [vmem:[%s5318_s5 + $0x18] sm:$0xff] }
 0x14e   :  { %v653_v22 = vadd.f32 %v652_v1, %v616_v16  ;;  %v656_v45 = vsel %vm531_vm0, %v619_v15, 0.0  ;;  %v613_v9 = vmul.f32 %v2767_v49, %v2767_v49  ;;  %v533_v5 = vadd.f32 %v532_v53, %v2763_v44  ;;  %v889_v1 = vld [vmem:[%s5318_s5 + $0x28] sm:$0xff]  ;;  %v3034_v15 = vld [vmem:[%s5318_s5 + $0x30] sm:$0xff] }
 0x14f   :  { %5431 = vst [vmem:[#allocation20_spill] sm:$0xff] %v2982_v23  ;;  %v536_v33 = vsel %vm531_vm0, %v2982_v23, 0.0  ;;  %v615_v26 = vmul.f32 %v2982_v23, %v2982_v23  ;;  %v612_v17 = vmul.f32 %v2763_v44, %v2763_v44  ;;  %v614_v8 = vmul.f32 %v2771_v52, %v2771_v52  ;;  %v3322_v49 = vld [vmem:[%s5318_s5 + $0x130] sm:$0xff] }
 0x150   :  { %706 = vadd.xlane.f32.xlu1 %v705_v12  ;;  %670 = vadd.xlane.f32.xlu0 %v669_v24  ;;  %v618_v12 = vmul.f32 %v2783_v63, %v2783_v63  ;;  %v644_v54 = vsel %vm531_vm0, %v613_v9, 0.0  ;;  %v537_v29 = vadd.f32 %v536_v33, %v2771_v52  ;;  %v1140_v42 = vmul.f32 %v3006_v32, %v886_v41 }
 0x151   :  { %v1143_v16 = vmul.f32 %v3006_v32, %v889_v1  ;;  %5452 = vst [vmem:[#allocation41_spill] sm:$0xff] %v3322_v49 }
 0x152   :  { %v657_v24 = vadd.f32 %v656_v45, %v618_v12  ;;  %v3045_v45 = vld [vmem:[%s5318_s5 + $0x40] sm:$0xff]  ;;  %v3053_v12 = vld [vmem:[%s5318_s5 + $0x48] sm:$0xff] }
 0x153   :  { %v1146_v9 = vmul.f32 %v3006_v32, %v3045_v45 }
 0x154   :  { %674 = vadd.xlane.f32.xlu1 %v673_v36  ;;  %550 = vadd.xlane.f32.xlu0 %v549_v43  ;;  %v645_v36 = vadd.f32 %v644_v54, %v612_v17  ;;  %v648_v43 = vsel %vm531_vm0, %v615_v26, 0.0  ;;  %v3067_v54 = vld [vmem:[%s5318_s5 + $0x58] sm:$0xff]  ;;  %v3072_v26 = vld [vmem:[%s5318_s5 + $0x60] sm:$0xff] }
 0x155   :  { %v649_v40 = vadd.f32 %v648_v43, %v614_v8  ;;  %v1149_v17 = vmul.f32 %v3006_v32, %v3067_v54  ;;  %v3086_v43 = vld [vmem:[%s5318_s5 + $0x70] sm:$0xff] }
 0x158   :  { %554 = vadd.xlane.f32.xlu1 %v553_v48  ;;  %662 = vadd.xlane.f32.xlu0 %v661_v60  ;;  %v1138_v48 = vmul.f32 %v3006_v32, %v884_v2  ;;  %v885_v60 = vld [vmem:[%s5318_s5 + $0x8] sm:$0xff] }
 0x159   :  { %v1139_v14 = vmul.f32 %v3006_v32, %v885_v60 }
 0x15c   :  { %666 = vadd.xlane.f32.xlu1 %v665_v55  ;;  %542 = vadd.xlane.f32.xlu0 %v541_v11  ;;  %v888_v55 = vld [vmem:[%s5318_s5 + $0x20] sm:$0xff]  ;;  %v1141_v11 = vmul.f32 %v3006_v32, %v887_v6 }
 0x15d   :  { %v1142_v38 = vmul.f32 %v3006_v32, %v888_v55 }
 0x160   :  { %546 = vadd.xlane.f32.xlu1 %v545_v47  ;;  %654 = vadd.xlane.f32.xlu0 %v653_v22  ;;  %v1144_v47 = vmul.f32 %v3006_v32, %v3034_v15  ;;  %v891_v22 = vld [vmem:[%s5318_s5 + $0x38] sm:$0xff] }
 0x161   :  { %v1145_v53 = vmul.f32 %v3006_v32, %v891_v22 }
 0x164   :  { %658 = vadd.xlane.f32.xlu1 %v657_v24  ;;  %534 = vadd.xlane.f32.xlu0 %v533_v5  ;;  %v3058_v24 = vld [vmem:[%s5318_s5 + $0x50] sm:$0xff]  ;;  %v1147_v5 = vmul.f32 %v3006_v32, %v3053_v12 }
 0x165   :  { %v1148_v33 = vmul.f32 %v3006_v32, %v3058_v24 }
 0x168   :  { %538 = vadd.xlane.f32.xlu1 %v537_v29  ;;  %646 = vadd.xlane.f32.xlu0 %v645_v36  ;;  %v1150_v29 = vmul.f32 %v3006_v32, %v3072_v26  ;;  %v3081_v36 = vld [vmem:[%s5318_s5 + $0x68] sm:$0xff] }
 0x169   :  { %v1151_v8 = vmul.f32 %v3006_v32, %v3081_v36 }
 0x16c   :  { %650 = vadd.xlane.f32.xlu1 %v649_v40  ;;  %1234 = vadd.xlane.f32.xlu0 %v1138_v48  ;;  %v1152_v40 = vmul.f32 %v3006_v32, %v3086_v43  ;;  %v3095_v48 = vld [vmem:[%s5319_s3] ss:$0 sm:$0xff] }
 0x170   :  { %1236 = vadd.xlane.f32.xlu1 %v1139_v14  ;;  %1238 = vadd.xlane.f32.xlu0 %v1140_v42  ;;  %v3098_v14 = vmul.f32 %v3095_v48, %v885_v60  ;;  %v3101_v42 = vmul.f32 %v3095_v48, %v884_v2  ;;  %v1162_v2 = vmul.f32 %v3006_v32, %v3192_v3 }
 0x172   :  { %5432 = vst [vmem:[#allocation21_spill] sm:$0xff] %v3098_v14  ;;  %5433 = vst [vmem:[#allocation22_spill] sm:$0xff] %v3101_v42  ;;  %v3284_v42 = vld [vmem:[%s5318_s5 + $0x110] sm:$0xff] }
 0x173   :  { %5446 = vst [vmem:[#allocation35_spill] sm:$0xff] %v3284_v42 }
 0x174   :  { %1240 = vadd.xlane.f32.xlu1 %v1141_v11  ;;  %1242 = vadd.xlane.f32.xlu0 %v1142_v38  ;;  %v3106_v11 = vld [vmem:[%s5318_s5 + $0x78] sm:$0xff]  ;;  %v3111_v38 = vld [vmem:[%s5318_s5 + $0x80] sm:$0xff] }
 0x175   :  { %v1154_v60 = vmul.f32 %v3006_v32, %v3111_v38 }
 0x178   :  { %1244 = vadd.xlane.f32.xlu1 %v1143_v16  ;;  %1246 = vadd.xlane.f32.xlu0 %v1144_v47  ;;  %v1153_v16 = vmul.f32 %v3006_v32, %v3106_v11  ;;  %v3120_v47 = vmul.f32 %v3095_v48, %v887_v6 }
 0x17a   :  { %5434 = vst [vmem:[#allocation23_spill] sm:$0xff] %v3120_v47 }
 0x17c   :  { %1248 = vadd.xlane.f32.xlu1 %v1145_v53  ;;  %1250 = vadd.xlane.f32.xlu0 %v1146_v9  ;;  %v3123_v53 = vmul.f32 %v3095_v48, %v886_v41 }
 0x17e   :  { %5435 = vst [vmem:[#allocation24_spill] sm:$0xff] %v3123_v53 }
 0x180   :  { %1252 = vadd.xlane.f32.xlu1 %v1147_v5  ;;  %1254 = vadd.xlane.f32.xlu0 %v1148_v33  ;;  %v3130_v5 = vld [vmem:[%s5318_s5 + $0x88] sm:$0xff]  ;;  %v3135_v33 = vld [vmem:[%s5318_s5 + $0x90] sm:$0xff] }
 0x181   :  { %v1155_v6 = vmul.f32 %v3006_v32, %v3130_v5  ;;  %v1156_v41 = vmul.f32 %v3006_v32, %v3135_v33 }
 0x184   :  { %1256 = vadd.xlane.f32.xlu1 %v1149_v17  ;;  %1258 = vadd.xlane.f32.xlu0 %v1150_v29  ;;  %v3142_v17 = vmul.f32 %v3095_v48, %v889_v1  ;;  %v3145_v29 = vmul.f32 %v3095_v48, %v888_v55  ;;  %v3178_v55 = vmul.f32 %v3095_v48, %v891_v22 }
 0x186   :  { %5436 = vst [vmem:[#allocation25_spill] sm:$0xff] %v3142_v17  ;;  %5437 = vst [vmem:[#allocation26_spill] sm:$0xff] %v3145_v29 }
 0x187   :  { %5438 = vst [vmem:[#allocation27_spill] sm:$0xff] %v3178_v55 }
 0x188   :  { %1260 = vadd.xlane.f32.xlu1 %v1151_v8  ;;  %1262 = vadd.xlane.f32.xlu0 %v1152_v40  ;;  %v3150_v8 = vld [vmem:[%s5318_s5 + $0x98] sm:$0xff]  ;;  %v3155_v40 = vld [vmem:[%s5318_s5 + $0xa0] sm:$0xff] }
 0x189   :  { %v1158_v1 = vmul.f32 %v3006_v32, %v3155_v40 }
 0x18c   :  { %1264 = vadd.xlane.f32.xlu1 %v1153_v16  ;;  %1266 = vadd.xlane.f32.xlu0 %v1154_v60  ;;  %v1157_v16 = vmul.f32 %v3006_v32, %v3150_v8  ;;  %v3166_v60 = vld [vmem:[%s5318_s5 + $0xa8] sm:$0xff] }
 0x190   :  { %1268 = vadd.xlane.f32.xlu1 %v1155_v6  ;;  %1270 = vadd.xlane.f32.xlu0 %v1156_v41  ;;  %v3171_v6 = vld [vmem:[%s5318_s5 + $0xb0] sm:$0xff]  ;;  %v1159_v41 = vmul.f32 %v3006_v32, %v3166_v60 }
 0x191   :  { %v1160_v9 = vmul.f32 %v3006_v32, %v3171_v6 }
 0x194   :  { %1272 = vadd.xlane.f32.xlu1 %v1157_v16  ;;  %1274 = vadd.xlane.f32.xlu0 %v1158_v1  ;;  %v3182_v16 = vmul.f32 %v3095_v48, %v3034_v15  ;;  %v3187_v1 = vld [vmem:[%s5318_s5 + $0xb8] sm:$0xff] }
 0x195   :  { %v1161_v22 = vmul.f32 %v3006_v32, %v3187_v1  ;;  %v3225_v15 = vld [vmem:[%s5318_s5 + $0xd8] sm:$0xff] }
 0x196   :  { %5439 = vst [vmem:[#allocation28_spill] sm:$0xff] %v3182_v16  ;;  %v3230_v16 = vld [vmem:[%s5318_s5 + $0xe0] sm:$0xff] }
 0x197   :  { %v1166_v55 = vmul.f32 %v3006_v32, %v3230_v16 }
 0x198   :  { %1276 = vadd.xlane.f32.xlu1 %v1159_v41  ;;  %1278 = vadd.xlane.f32.xlu0 %v1160_v9  ;;  %v3203_v9 = vld [vmem:[%s5318_s5 + $0xc8] sm:$0xff]  ;;  %v3208_v41 = vld [vmem:[%s5318_s5 + $0xd0] sm:$0xff] }
 0x199   :  { %v1163_v29 = vmul.f32 %v3006_v32, %v3203_v9  ;;  %v1164_v17 = vmul.f32 %v3006_v32, %v3208_v41 }
 0x19c   :  { %1280 = vadd.xlane.f32.xlu1 %v1161_v22  ;;  %1282 = vadd.xlane.f32.xlu0 %v1162_v2  ;;  %v3216_v22 = vmul.f32 %v3095_v48, %v3053_v12  ;;  %v3220_v2 = vmul.f32 %v3095_v48, %v3045_v45  ;;  %v1165_v12 = vmul.f32 %v3006_v32, %v3225_v15  ;;  %v3263_v45 = vld [vmem:[%s5318_s5 + $0xf8] sm:$0xff] }
 0x19e   :  { %5440 = vst [vmem:[#allocation29_spill] sm:$0xff] %v3216_v22  ;;  %5441 = vst [vmem:[#allocation30_spill] sm:$0xff] %v3220_v2  ;;  %v3268_v2 = vld [vmem:[%s5318_s5 + $0x100] sm:$0xff] }
 0x19f   :  { %5444 = vst [vmem:[#allocation33_spill] sm:$0xff] %v3268_v2  ;;  %v1170_v22 = vmul.f32 %v3006_v32, %v3268_v2  ;;  %v3315_v2 = vld [vmem:[%s5318_s5 + $0x128] sm:$0xff] }
 0x1a0   :  { %1284 = vadd.xlane.f32.xlu1 %v1163_v29  ;;  %1286 = vadd.xlane.f32.xlu0 %v1164_v17  ;;  %v3241_v17 = vld [vmem:[%s5318_s5 + $0xe8] sm:$0xff]  ;;  %v3246_v29 = vld [vmem:[%s5318_s5 + $0xf0] sm:$0xff]  ;;  %5451 = vst [vmem:[#allocation40_spill] sm:$0xff] %v3315_v2 }
 0x1a1   :  { %v1167_v53 = vmul.f32 %v3006_v32, %v3241_v17  ;;  %v1168_v47 = vmul.f32 %v3006_v32, %v3246_v29 }
 0x1a4   :  { %1288 = vadd.xlane.f32.xlu1 %v1165_v12  ;;  %1290 = vadd.xlane.f32.xlu0 %v1166_v55  ;;  %v3254_v12 = vmul.f32 %v3095_v48, %v3067_v54  ;;  %v3258_v55 = vmul.f32 %v3095_v48, %v3058_v24  ;;  %v1169_v54 = vmul.f32 %v3006_v32, %v3263_v45 }
 0x1a6   :  { %5442 = vst [vmem:[#allocation31_spill] sm:$0xff] %v3254_v12  ;;  %5443 = vst [vmem:[#allocation32_spill] sm:$0xff] %v3258_v55  ;;  %v3301_v55 = vld [vmem:[%s5318_s5 + $0x118] sm:$0xff]  ;;  %v3306_v12 = vld [vmem:[%s5318_s5 + $0x120] sm:$0xff] }
 0x1a7   :  { %5449 = vst [vmem:[#allocation38_spill] sm:$0xff] %v3301_v55  ;;  %5450 = vst [vmem:[#allocation39_spill] sm:$0xff] %v3306_v12 }
 0x1a8   :  { %1292 = vadd.xlane.f32.xlu1 %v1167_v53  ;;  %1294 = vadd.xlane.f32.xlu0 %v1168_v47  ;;  %v3279_v53 = vld [vmem:[%s5318_s5 + $0x108] sm:$0xff]  ;;  %v1172_v47 = vmul.f32 %v3006_v32, %v3284_v42 }
 0x1a9   :  { %5445 = vst [vmem:[#allocation34_spill] sm:$0xff] %v3279_v53  ;;  %v1171_v14 = vmul.f32 %v3006_v32, %v3279_v53 }
 0x1ac   :  { %1296 = vadd.xlane.f32.xlu1 %v1169_v54  ;;  %1298 = vadd.xlane.f32.xlu0 %v1170_v22  ;;  %v3292_v22 = vmul.f32 %v3095_v48, %v3081_v36  ;;  %v3296_v54 = vmul.f32 %v3095_v48, %v3072_v26  ;;  %v1173_v36 = vmul.f32 %v3006_v32, %v3301_v55 }
 0x1ad   :  { %v1175_v55 = vmul.f32 %v3006_v32, %v3315_v2 }
 0x1ae   :  { %5447 = vst [vmem:[#allocation36_spill] sm:$0xff] %v3292_v22  ;;  %5448 = vst [vmem:[#allocation37_spill] sm:$0xff] %v3296_v54  ;;  %v3334_v22 = vmul.f32 %v3095_v48, %v3106_v11  ;;  %v3347_v11 = vld [vmem:[%s5318_s5 + $0x138] sm:$0xff] }
 0x1af   :  { %5455 = vst [vmem:[#allocation44_spill] sm:$0xff] %v3347_v11  ;;  %v1177_v56 = vmul.f32 %v3006_v32, %v3347_v11 }
 0x1b0   :  { %1300 = vadd.xlane.f32.xlu1 %v1171_v14  ;;  %1302 = vadd.xlane.f32.xlu0 %v1172_v47  ;;  %v1174_v47 = vmul.f32 %v3006_v32, %v3306_v12  ;;  %5453 = vst [vmem:[#allocation42_spill] sm:$0xff] %v3334_v22  ;;  %v3338_v12 = vmul.f32 %v3095_v48, %v3086_v43  ;;  %v3352_v43 = vld [vmem:[%s5318_s5 + $0x140] sm:$0xff] }
 0x1b2   :  { %5454 = vst [vmem:[#allocation43_spill] sm:$0xff] %v3338_v12 }
 0x1b4   :  { %1304 = vadd.xlane.f32.xlu1 %v1173_v36  ;;  %1306 = vadd.xlane.f32.xlu0 %v1174_v47  ;;  %v1176_v36 = vmul.f32 %v3006_v32, %v3322_v49  ;;  %v3361_v49 = vld [vmem:[%s5318_s5 + $0x148] sm:$0xff] }
 0x1b5   :  { %v567_v24 = vpop.xlane.xlu0 %566 }
 0x1b6   :  { %v3328_v26 = vmul.f32 0.0051020407, %v567_v24 }
 0x1b8   :  { %1308 = vadd.xlane.f32.xlu1 %v1175_v55  ;;  %1310 = vadd.xlane.f32.xlu0 %v1176_v36  ;;  %v732_v24 = vmul.f32 %v3328_v26, %v3328_v26  ;;  %v3370_v55 = vld [vmem:[%s5318_s5 + $0x150] sm:$0xff] }
 0x1b9   :  { %v679_v23 = vpop.xlane.xlu0 %678  ;;  %v571_v52 = vpop.xlane.xlu1 %570  ;;  %5456 = vst [vmem:[#allocation45_spill] sm:$0xff] %v3370_v55  ;;  %v1180_v50 = vmul.f32 %v3006_v32, %v3370_v55 }
 0x1ba   :  { %v3330_v54 = vmul.f32 0.0051020407, %v571_v52  ;;  %v716_v61 = vmul.f32 0.0051020407, %v679_v23 }
 0x1bc   :  { %v733_v52 = vmul.f32 %v3330_v54, %v3330_v54  ;;  %1312 = vadd.xlane.f32.xlu1 %v1177_v56  ;;  %v3398_v56 = vmul.f32 %v3095_v48, %v3135_v33 }
 0x1bd   :  { %v683_v14 = vpop.xlane.xlu1 %682  ;;  %v575_v42 = vpop.xlane.xlu0 %574 }
 0x1be   :  { %v717_v62 = vmul.f32 0.0051020407, %v683_v14  ;;  %v3354_v23 = vmul.f32 0.0051020407, %v575_v42  ;;  %v748_v14 = vsub.f32 %v716_v61, %v732_v24  ;;  %v1178_v42 = vmul.f32 %v3006_v32, %v3352_v43  ;;  %5460 = vst [vmem:[#allocation49_spill] sm:$0xff] %v3398_v56 }
 0x1c0   :  { %v749_v36 = vsub.f32 %v717_v62, %v733_v52  ;;  %v3376_v62 = vmul.f32 %v3095_v48, %v3130_v5  ;;  %v734_v24 = vmul.f32 %v3354_v23, %v3354_v23  ;;  %1314 = vadd.xlane.f32.xlu0 %v1178_v42  ;;  %v764_v22 = vmax.f32 %v748_v14, 0.0 }
 0x1c1   :  { %v687_v44 = vpop.xlane.xlu0 %686  ;;  %v579_v53 = vpop.xlane.xlu1 %578 }
 0x1c2   :  { %v718_v63 = vmul.f32 0.0051020407, %v687_v44  ;;  %v3372_v61 = vmul.f32 0.0051020407, %v579_v53  ;;  %5457 = vst [vmem:[#allocation46_spill] sm:$0xff] %v3376_v62  ;;  %v3380_v44 = vmul.f32 %v3095_v48, %v3111_v38  ;;  %v1179_v53 = vmul.f32 %v3006_v32, %v3361_v49 }
 0x1c3   :  { %v765_v11 = vmax.f32 %v749_v36, 0.0  ;;  %v780_v36 = vadd.f32 0.001, %v764_v22  ;;  %v3529_v62 = vmul.f32 %v3095_v48, %v3230_v16  ;;  %v3541_v16 = vmul.f32 %v3095_v48, %v3361_v49 }
 0x1c4   :  { %5458 = vst [vmem:[#allocation47_spill] sm:$0xff] %v3380_v44  ;;  %v750_v38 = vsub.f32 %v718_v63, %v734_v24  ;;  %v3406_v63 = vmul.f32 %v3095_v48, %v3166_v60  ;;  %1316 = vadd.xlane.f32.xlu1 %v1179_v53  ;;  %1318 = vadd.xlane.f32.xlu0 %v1180_v50  ;;  %v3436_v50 = vld [vmem:[%s5318_s5 + $0x160] sm:$0xff] }
 0x1c5   :  { %v691_v2 = vpop.xlane.xlu1 %690  ;;  %v583_v47 = vpop.xlane.xlu0 %582  ;;  %v781_v42 = vadd.f32 0.001, %v765_v11  ;;  %v3525_v44 = vmul.f32 %v3095_v48, %v3241_v17  ;;  %5473 = vst [vmem:[#allocation62_spill] sm:$0xff] %v3541_v16  ;;  %v5483_v16 = vld [vmem:[#allocation45_spill] sm:$0xff] }
 0x1c6   :  { %v3384_v52 = vmul.f32 0.0051020407, %v583_v47  ;;  %v719_v5 = vmul.f32 0.0051020407, %v691_v2  ;;  %v3394_v47 = vmul.f32 %v3095_v48, %v3150_v8  ;;  %5461 = vst [vmem:[#allocation50_spill] sm:$0xff] %v3406_v63  ;;  %v766_v7 = vmax.f32 %v750_v38, 0.0 }
 0x1c7   :  { %v1182_v38 = vmul.f32 %v3006_v32, %v3436_v50  ;;  %2154 = vrsqrt.f32 %v781_v42  ;;  %v3463_v42 = vmul.f32 %v3095_v48, %v3203_v9 }
 0x1c8   :  { %5459 = vst [vmem:[#allocation48_spill] sm:$0xff] %v3394_v47  ;;  %v736_v8 = vmul.f32 %v3384_v52, %v3384_v52  ;;  %2156 = vrsqrt.f32 %v780_v36  ;;  %v3484_v36 = vmul.f32 %v3095_v48, %v3225_v15 }
 0x1c9   :  { %v695_v58 = vpop.xlane.xlu0 %694  ;;  %v587_v39 = vpop.xlane.xlu1 %586  ;;  %1322 = vadd.xlane.f32.xlu0 %v1182_v38  ;;  %5466 = vst [vmem:[#allocation55_spill] sm:$0xff] %v3463_v42 }
 0x1ca   :  { %v3386_v12 = vmul.f32 0.0051020407, %v587_v39  ;;  %v720_v28 = vmul.f32 0.0051020407, %v695_v58  ;;  %v735_v39 = vmul.f32 %v3372_v61, %v3372_v61  ;;  %v3411_v58 = vld [vmem:[%s5318_s5 + $0x158] sm:$0xff] }
 0x1cc   :  { %v737_v33 = vmul.f32 %v3386_v12, %v3386_v12  ;;  %v751_v24 = vsub.f32 %v719_v5, %v735_v39  ;;  %v752_v37 = vsub.f32 %v720_v28, %v736_v8  ;;  %v3441_v28 = vld [vmem:[%s5318_s5 + $0x168] sm:$0xff]  ;;  %v3447_v5 = vmul.f32 %v3095_v48, %v3187_v1 }
 0x1cd   :  { %v699_v0 = vpop.xlane.xlu1 %698  ;;  %v591_v34 = vpop.xlane.xlu0 %590  ;;  %5463 = vst [vmem:[#allocation52_spill] sm:$0xff] %v3441_v28  ;;  %v3455_v8 = vmul.f32 %v3095_v48, %v3171_v6  ;;  %v3467_v6 = vmul.f32 %v3095_v48, %v3192_v3 }
 0x1ce   :  { %v721_v14 = vmul.f32 0.0051020407, %v699_v0  ;;  %v3402_v2 = vmul.f32 0.0051020407, %v591_v34  ;;  %v3419_v0 = vmul.f32 %v3095_v48, %v3155_v40  ;;  %v1181_v40 = vmul.f32 %v3006_v32, %v3411_v58  ;;  %5464 = vst [vmem:[#allocation53_spill] sm:$0xff] %v3447_v5 }
 0x1cf   :  { %v767_v39 = vmax.f32 %v751_v24, 0.0  ;;  %5465 = vst [vmem:[#allocation54_spill] sm:$0xff] %v3455_v8  ;;  %v768_v53 = vmax.f32 %v752_v37, 0.0  ;;  %5467 = vst [vmem:[#allocation56_spill] sm:$0xff] %v3467_v6  ;;  %v3472_v37 = vld [vmem:[%s5318_s5 + $0x1e0] sm:$0xff]  ;;  %v3488_v24 = vmul.f32 %v3095_v48, %v3208_v41  ;;  %v5494_v5 = vsub.f32 %v2824_v35, %v3354_v23 }
 0x1d0   :  { %5462 = vst [vmem:[#allocation51_spill] sm:$0xff] %v3419_v0  ;;  %v753_v55 = vsub.f32 %v721_v14, %v737_v33  ;;  %v738_v22 = vmul.f32 %v3402_v2, %v3402_v2  ;;  %1320 = vadd.xlane.f32.xlu1 %v1181_v40  ;;  %v782_v33 = vadd.f32 0.001, %v766_v7  ;;  %v3502_v15 = vmul.f32 %v3095_v48, %v3472_v37 }
 0x1d1   :  { %v703_v30 = vpop.xlane.xlu1 %702  ;;  %v595_v21 = vpop.xlane.xlu0 %594  ;;  %v784_v38 = vadd.f32 0.001, %v768_v53 }
 0x1d2   :  { %v722_v34 = vmul.f32 0.0051020407, %v703_v30  ;;  %v1183_v30 = vmul.f32 %v3006_v32, %v3441_v28  ;;  %v769_v60 = vmax.f32 %v753_v55, 0.0  ;;  %v3459_v11 = vmul.f32 0.0051020407, %v595_v21  ;;  %5470 = vst [vmem:[#allocation59_spill] sm:$0xff] %v3502_v15 }
 0x1d3   :  { %2158 = vrsqrt.f32 %v782_v33 }
 0x1d4   :  { %v754_v14 = vsub.f32 %v722_v34, %v738_v22  ;;  %1324 = vadd.xlane.f32.xlu1 %v1183_v30  ;;  %v783_v34 = vadd.f32 0.001, %v767_v39  ;;  %v3493_v22 = vld [vmem:[%s5318_s5 + $0x1e8] sm:$0xff]  ;;  %v3498_v39 = vld [vmem:[%s5318_s5 + $0x178] sm:$0xff]  ;;  %v739_v40 = vmul.f32 %v3459_v11, %v3459_v11 }
 0x1d5   :  { %v563_v1 = vpop.xlane.xlu1 %562  ;;  %v559_v46 = vpop.xlane.xlu0 %558  ;;  %5468 = vst [vmem:[#allocation57_spill] sm:$0xff] %v3493_v22  ;;  %5469 = vst [vmem:[#allocation58_spill] sm:$0xff] %v3498_v39  ;;  %v3514_v55 = vmul.f32 %v3095_v48, %v3493_v22  ;;  %v1185_v7 = vmul.f32 %v3006_v32, %v3498_v39 }
 0x1d6   :  { %v3480_v9 = vmul.f32 0.0051020407, %v559_v46  ;;  %v770_v3 = vmax.f32 %v754_v14, 0.0  ;;  %v785_v46 = vadd.f32 0.001, %v769_v60  ;;  %2160 = vrsqrt.f32 %v783_v34  ;;  %v2155_v34 = vpop.eup %2154 }
 0x1d7   :  { %v3504_v41 = vmul.f32 0.0051020407, %v563_v1  ;;  %5471 = vst [vmem:[#allocation60_spill] sm:$0xff] %v3514_v55  ;;  %2162 = vrsqrt.f32 %v784_v38 }
 0x1d8   :  { %v730_v60 = vmul.f32 %v3480_v9, %v3480_v9  ;;  %v786_v1 = vadd.f32 0.001, %v770_v3  ;;  %1328 = vadd.xlane.f32.xlu1 %v1185_v7  ;;  %2164 = vrsqrt.f32 %v785_v46  ;;  %v5476_v7 = vsub.f32 %v2812_v25, %v3330_v54 }
 0x1d9   :  { %v707_v21 = vpop.xlane.xlu1 %706  ;;  %v671_v30 = vpop.xlane.xlu0 %670  ;;  %v731_v17 = vmul.f32 %v3504_v41, %v3504_v41 }
 0x1da   :  { %v723_v14 = vmul.f32 0.0051020407, %v707_v21  ;;  %v714_v33 = vmul.f32 0.0051020407, %v671_v30  ;;  %v3521_v30 = vld [vmem:[%s5318_s5 + $0x170] sm:$0xff]  ;;  %2166 = vrsqrt.f32 %v786_v1  ;;  %v855_v49 = vmul.f32 %v2155_v34, %v5476_v7 }
 0x1db   :  { %5472 = vst [vmem:[#allocation61_spill] sm:$0xff] %v3521_v30  ;;  %v5479_v7 = vsub.f32 %v2805_v20, %v3328_v26 }
 0x1dc   :  { %v755_v21 = vsub.f32 %v723_v14, %v739_v40  ;;  %v746_v53 = vsub.f32 %v714_v33, %v730_v60  ;;  %v1184_v40 = vmul.f32 %v3006_v32, %v3521_v30  ;;  %v3545_v60 = vmul.f32 %v3095_v48, %v3352_v43 }
 0x1dd   :  { %v675_v56 = vpop.xlane.xlu1 %674  ;;  %v551_v47 = vpop.xlane.xlu0 %550 }
 0x1de   :  { %v771_v3 = vmax.f32 %v755_v21, 0.0  ;;  %v715_v14 = vmul.f32 0.0051020407, %v675_v56  ;;  %v3537_v33 = vmul.f32 0.0051020407, %v551_v47  ;;  %5474 = vst [vmem:[#allocation63_spill] sm:$0xff] %v3545_v60  ;;  %1326 = vadd.xlane.f32.xlu0 %v1184_v40  ;;  %v2157_v40 = vpop.eup %2156 }
 0x1df   :  { %v762_v46 = vmax.f32 %v746_v53, 0.0  ;;  %v5477_v53 = vsub.f32 %v2803_v19, %v3328_v26  ;;  %v3599_v19 = vld [vmem:[%s5318_s5 + $0x1f0] sm:$0xff] }
 0x1e0   :  { %v787_v38 = vadd.f32 0.001, %v771_v3  ;;  %v747_v21 = vsub.f32 %v715_v14, %v731_v17  ;;  %v3559_v3 = vmul.f32 %v3095_v48, %v3263_v45  ;;  %v728_v17 = vmul.f32 %v3537_v33, %v3537_v33  ;;  %5480 = vst [vmem:[#allocation64_spill] sm:$0xff] %v3599_v19 }
 0x1e1   :  { %v555_v43 = vpop.xlane.xlu1 %554  ;;  %v663_v15 = vpop.xlane.xlu0 %662  ;;  %v3565_v14 = vmul.f32 %v3095_v48, %v3246_v29  ;;  %v778_v47 = vadd.f32 0.001, %v762_v46  ;;  %v853_v60 = vmul.f32 %v2157_v40, %v5477_v53  ;;  %v3594_v46 = vmul.f32 %v2157_v40, %v5479_v7 }
 0x1e2   :  { %2168 = vrsqrt.f32 %v787_v38  ;;  %v3555_v55 = vmul.f32 0.0051020407, %v555_v43  ;;  %v712_v1 = vmul.f32 0.0051020407, %v663_v15  ;;  %v5475_v43 = vld [vmem:[#allocation8_spill] sm:$0xff]  ;;  %v763_v56 = vmax.f32 %v747_v21, 0.0  ;;  %v3585_v15 = vpop.eup %2158 }
 0x1e3   :  { %v3583_v38 = vmul.f32 %v3095_v48, %v3411_v58  ;;  %v5481_v58 = vld [vmem:[#allocation12_spill] sm:$0xff]  ;;  %v3611_v40 = vpack.c.bf16 %v855_v49, %v853_v60  ;;  %v5485_v7 = vsub.f32 %v2815_v27, %v3330_v54  ;;  %v3628_v20 = vpop.eup %2160  ;;  %2170 = vrsqrt.f32 %v778_v47  ;;  %v3633_v27 = vld [vmem:[%s5318_s5 + $0x180] sm:$0xff]  ;;  %v3638_v54 = vld [vmem:[%s5318_s5 + $0x188] sm:$0xff] }
 0x1e4   :  { %v744_v29 = vsub.f32 %v712_v1, %v728_v17  ;;  %v729_v21 = vmul.f32 %v3555_v55, %v3555_v55  ;;  %v5482_v17 = vld [vmem:[#allocation11_spill] sm:$0xff]  ;;  %v779_v26 = vadd.f32 0.001, %v763_v56  ;;  %5488 = vst [vmem:[#allocation65_spill] sm:$0xff] %v3633_v27  ;;  %5489 = vst [vmem:[#allocation66_spill] sm:$0xff] %v3638_v54  ;;  %v2163_v8 = vpop.eup %2162  ;;  %v3671_v63 = vmul.f32 %v3585_v15, %v5494_v5 }
 0x1e5   :  { %v667_v39 = vpop.xlane.xlu1 %666  ;;  %v543_v30 = vpop.xlane.xlu0 %542  ;;  %5478 = vst [vmem:[#allocation8_spill] sm:$0xff] %v3583_v38  ;;  %v835_v53 = vsub.f32 %v5482_v17, %v3459_v11  ;;  %v3616_v0 = vmul.f32 %v2155_v34, %v5485_v7  ;;  %v3621_v17 = vld [vmem:[%s5318_s5 + $0x1f8] sm:$0xff]  ;;  %v3653_v1 = vld [vmem:[%s5318_s5 + $0x208] sm:$0xff]  ;;  %v5497_v35 = vsub.f32 %v5475_v43, %v3402_v2  ;;  %v5501_v43 = vsub.f32 %v5481_v58, %v3459_v11 }
 0x1e6   :  { %v713_v45 = vmul.f32 0.0051020407, %v667_v39  ;;  %v3589_v25 = vmul.f32 0.0051020407, %v543_v30  ;;  %v3607_v39 = vmul.f32 %v3095_v48, %v5483_v16  ;;  %5486 = vst [vmem:[#allocation11_spill] sm:$0xff] %v3621_v17  ;;  %v3626_v16 = vld [vmem:[%s5318_s5 + $0x200] sm:$0xff]  ;;  %v3657_v34 = vmul.f32 %v3095_v48, %v3621_v17 }
 0x1e7   :  { %5487 = vst [vmem:[#allocation45_spill] sm:$0xff] %v3626_v16  ;;  %v760_v60 = vmax.f32 %v744_v29, 0.0  ;;  %5491 = vst [vmem:[#allocation68_spill] sm:$0xff] %v3653_v1  ;;  %2172 = vrsqrt.f32 %v779_v26  ;;  %v5495_v17 = vsub.f32 %v2836_v4, %v3372_v61  ;;  %v3682_v26 = vld [vmem:[%s5318_s5 + $0x190] sm:$0xff]  ;;  %v3688_v4 = vmul.f32 %v3095_v48, %v3653_v1 }
 0x1e8   :  { %5484 = vst [vmem:[#allocation12_spill] sm:$0xff] %v3607_v39  ;;  %v745_v30 = vsub.f32 %v713_v45, %v729_v21  ;;  %v3644_v45 = vmul.f32 %v3095_v48, %v3599_v19  ;;  %v726_v21 = vmul.f32 %v3589_v25, %v3589_v25  ;;  %5492 = vst [vmem:[#allocation69_spill] sm:$0xff] %v3657_v34 }
 0x1e9   :  { %v547_v56 = vpop.xlane.xlu1 %546  ;;  %v655_v49 = vpop.xlane.xlu0 %654  ;;  %v1187_v39 = vmul.f32 %v3006_v32, %v3638_v54  ;;  %v3677_v54 = vmul.f32 %v3628_v20, %v5495_v17  ;;  %v776_v19 = vadd.f32 0.001, %v760_v60  ;;  %5496 = vst [vmem:[#allocation71_spill] sm:$0xff] %v3688_v4  ;;  %v5498_v34 = vsub.f32 %v2848_v13, %v3384_v52 }
 0x1ea   :  { %5490 = vst [vmem:[#allocation67_spill] sm:$0xff] %v3644_v45  ;;  %v761_v47 = vmax.f32 %v745_v30, 0.0  ;;  %v3646_v29 = vmul.f32 0.0051020407, %v547_v56  ;;  %v710_v7 = vmul.f32 0.0051020407, %v655_v49  ;;  %v1186_v30 = vmul.f32 %v3006_v32, %v3633_v27  ;;  %v2165_v49 = vpop.eup %2164 }
 0x1eb   :  { %v3665_v56 = vmul.f32 %v3095_v48, %v3626_v16  ;;  %v2167_v27 = vpop.eup %2166  ;;  %1332 = vadd.xlane.f32.xlu1 %v1187_v39  ;;  %v861_v1 = vmul.f32 %v2163_v8, %v5498_v34  ;;  %v5499_v39 = vsub.f32 %v2860_v57, %v3386_v12  ;;  %v5500_v4 = vsub.f32 %v2871_v18, %v3402_v2 }
 0x1ec   :  { %v742_v38 = vsub.f32 %v710_v7, %v726_v21  ;;  %v777_v22 = vadd.f32 0.001, %v761_v47  ;;  %1330 = vadd.xlane.f32.xlu0 %v1186_v30  ;;  %v727_v17 = vmul.f32 %v3646_v29, %v3646_v29  ;;  %v3697_v21 = vld [vmem:[%s5318_s5 + $0x198] sm:$0xff]  ;;  %v865_v45 = vmul.f32 %v2167_v27, %v5497_v35 }
 0x1ed   :  { %5493 = vst [vmem:[#allocation70_spill] sm:$0xff] %v3665_v56  ;;  %v659_v16 = vpop.xlane.xlu1 %658  ;;  %v535_v28 = vpop.xlane.xlu0 %534  ;;  %v863_v6 = vmul.f32 %v2165_v49, %v5499_v39  ;;  %v3740_v39 = vld [vmem:[%s5318_s5 + $0x218] sm:$0xff] }
 0x1ee   :  { %v758_v5 = vmax.f32 %v742_v38, 0.0  ;;  %v711_v60 = vmul.f32 0.0051020407, %v659_v16  ;;  %v3692_v47 = vmul.f32 0.0051020407, %v535_v28  ;;  %v1189_v38 = vmul.f32 %v3006_v32, %v3697_v21 }
 0x1ef   :  { %v2169_v7 = vpop.eup %2168  ;;  %v1188_v16 = vmul.f32 %v3006_v32, %v3682_v26  ;;  %2174 = vrsqrt.f32 %v777_v22  ;;  %v3729_v22 = vld [vmem:[%s5318_s5 + $0x210] sm:$0xff] }
 0x1f0   :  { %v743_v28 = vsub.f32 %v711_v60, %v727_v17  ;;  %v867_v56 = vmul.f32 %v2169_v7, %v835_v53  ;;  %v864_v17 = vmul.f32 %v2167_v27, %v5500_v4  ;;  %v866_v35 = vmul.f32 %v2169_v7, %v5501_v43  ;;  %1336 = vadd.xlane.f32.xlu1 %v1189_v38 }
 0x1f1   :  { %v539_v30 = vpop.xlane.xlu1 %538  ;;  %v647_v42 = vpop.xlane.xlu0 %646  ;;  %v724_v57 = vmul.f32 %v3692_v47, %v3692_v47  ;;  %1334 = vadd.xlane.f32.xlu0 %v1188_v16  ;;  %2176 = vrsqrt.f32 %v776_v19  ;;  %v774_v18 = vadd.f32 0.001, %v758_v5  ;;  %v5502_v27 = vsub.f32 %v2851_v31, %v3384_v52  ;;  %v3772_v16 = vld [vmem:[%s5318_s5 + $0x228] sm:$0xff] }
 0x1f2   :  { %v759_v60 = vmax.f32 %v743_v28, 0.0  ;;  %v3722_v13 = vmul.f32 0.0051020407, %v539_v30  ;;  %v708_v34 = vmul.f32 0.0051020407, %v647_v42  ;;  %v883_v2 = vpack.c.bf16 %v867_v56, %v865_v45  ;;  %v3748_v52 = vpop.eup %2170 }
 0x1f3   :  { %v882_v53 = vpack.c.bf16 %v866_v35, %v864_v17  ;;  %v860_v4 = vmul.f32 %v2163_v8, %v5502_v27  ;;  %v5503_v7 = vsub.f32 %v2863_v59, %v3386_v12  ;;  %v881_v56 = vpack.c.bf16 %v863_v6, %v861_v1  ;;  %v5506_v35 = vld [vmem:[#allocation10_spill] sm:$0xff] }
 0x1f4   :  { %v775_v11 = vadd.f32 0.001, %v759_v60  ;;  %v740_v58 = vsub.f32 %v708_v34, %v724_v57  ;;  %1426 = vmatprep.subr.bf16.mxu0 %v883_v2  ;;  %2137 = vmatprep.subr.bf16.mxu1 %v883_v2  ;;  %v725_v19 = vmul.f32 %v3722_v13, %v3722_v13  ;;  %v3746_v31 = vmul.f32 %v3095_v48, %v3729_v22  ;;  %v3807_v2 = vld [vmem:[%s5318_s5 + $0x230] sm:$0xff] }
 0x1f5   :  { %v862_v42 = vmul.f32 %v2165_v49, %v5503_v7  ;;  %v651_v45 = vpop.xlane.xlu1 %650  ;;  %1427 = vmatpush1.bf16.msra.mxu0 %v882_v53  ;;  %2145 = vmatpush1.bf16.msra.mxu1 %v882_v53  ;;  %v3755_v49 = vld [vmem:[%s5318_s5 + $0x220] sm:$0xff]  ;;  %v5504_v6 = vsub.f32 %v2827_v51, %v3354_v23  ;;  %v5505_v5 = vsub.f32 %v2839_v10, %v3372_v61  ;;  %v3784_v23 = vld [vmem:[%s5318_s5 + $0x1a8] sm:$0xff]  ;;  %v2173_v61 = vpop.eup %2172  ;;  %v3812_v53 = vld [vmem:[%s5318_s5 + $0x238] sm:$0xff] }
 0x1f6   :  { %2178 = vrsqrt.f32 %v775_v11  ;;  %v756_v59 = vmax.f32 %v740_v58, 0.0  ;;  %v709_v12 = vmul.f32 0.0051020407, %v651_v45  ;;  %1428 = vmatprep.subr.bf16.mxu0 %v881_v56  ;;  %2138 = vmatprep.subr.bf16.mxu1 %v881_v56  ;;  %v3767_v38 = vmul.f32 %v3095_v48, %v3740_v39  ;;  %v3779_v10 = vld [vmem:[%s5318_s5 + $0x1a0] sm:$0xff] }
 0x1f7   :  { %2180 = vrsqrt.f32 %v774_v18  ;;  %v856_v1 = vmul.f32 %v3585_v15, %v5504_v6  ;;  %v858_v30 = vmul.f32 %v3628_v20, %v5505_v5  ;;  %v880_v43 = vpack.c.bf16 %v862_v42, %v860_v4  ;;  %v5507_v45 = vld [vmem:[#allocation14_spill] sm:$0xff] }
 0x1f8   :  { %v772_v28 = vadd.f32 0.001, %v756_v59  ;;  %v741_v17 = vsub.f32 %v709_v12, %v725_v19  ;;  %v879_v51 = vpack.c.bf16 %v3677_v54, %v3671_v63  ;;  %v1191_v20 = vmul.f32 %v3006_v32, %v3784_v23  ;;  %v5508_v59 = vld [vmem:[#allocation9_spill] sm:$0xff]  ;;  %v4071_v15 = vld [vmem:[%s5318_s5 + $0x280] sm:$0xff] }
 0x1f9   :  { %v1190_v63 = vmul.f32 %v3006_v32, %v3779_v10  ;;  %v3794_v54 = vmul.f32 %v3095_v48, %v3755_v49  ;;  %v819_v60 = vsub.f32 %v5506_v35, %v3504_v41  ;;  %1429 = vmatpush1.bf16.msra.mxu0 %v880_v43  ;;  %2146 = vmatpush1.bf16.msra.mxu1 %v880_v43 }
 0x1fa   :  { %v757_v57 = vmax.f32 %v741_v17, 0.0  ;;  %v876_v34 = vpack.c.bf16 %v3616_v0, %v3594_v46  ;;  %v3802_v18 = vmul.f32 %v3095_v48, %v3772_v16  ;;  %2182 = vrsqrt.f32 %v772_v28  ;;  %1430 = vmatprep.subr.bf16.mxu0 %v879_v51  ;;  %2139 = vmatprep.subr.bf16.mxu1 %v879_v51  ;;  %v3817_v0 = vld [vmem:[%s5318_s5 + $0x1b0] sm:$0xff]  ;;  %v3822_v46 = vld [vmem:[%s5318_s5 + $0x1b8] sm:$0xff]  ;;  %v5511_v51 = vld [vmem:[#allocation15_spill] sm:$0xff] }
 0x1fb   :  { %v878_v11 = vpack.c.bf16 %v858_v30, %v856_v1  ;;  %v3826_v58 = vmul.f32 %v3095_v48, %v3807_v2  ;;  %v3830_v27 = vmul.f32 %v3095_v48, %v3812_v53  ;;  %1340 = vadd.xlane.f32.xlu1 %v1191_v20  ;;  %1338 = vadd.xlane.f32.xlu0 %v1190_v63  ;;  %v5509_v30 = vld [vmem:[#allocation13_spill] sm:$0xff]  ;;  %v5512_v63 = vld [vmem:[#allocation16_spill] sm:$0xff] }
 0x1fc   :  { %v773_v4 = vadd.f32 0.001, %v757_v57  ;;  %v1193_v42 = vmul.f32 %v3006_v32, %v3822_v46  ;;  %v1192_v19 = vmul.f32 %v3006_v32, %v3817_v0  ;;  %v818_v56 = vsub.f32 %v5507_v45, %v3504_v41  ;;  %v2175_v5 = vpop.eup %2174  ;;  %v5510_v17 = vld [vmem:[#allocation17_spill] sm:$0xff]  ;;  %v3865_v57 = vld [vmem:[%s5318_s5 + $0x1c8] sm:$0xff]  ;;  %v5513_v45 = vld [vmem:[#allocation18_spill] sm:$0xff] }
 0x1fd   :  { %v817_v12 = vsub.f32 %v5508_v59, %v3480_v9  ;;  %v851_v6 = vmul.f32 %v2173_v61, %v819_v60  ;;  %v816_v28 = vsub.f32 %v5509_v30, %v3480_v9  ;;  %v812_v43 = vsub.f32 %v5510_v17, %v3537_v33  ;;  %1431 = vmatpush1.bf16.msra.mxu0 %v878_v11  ;;  %v3860_v60 = vld [vmem:[%s5318_s5 + $0x1c0] sm:$0xff] }
 0x1fe   :  { %2184 = vrsqrt.f32 %v773_v4  ;;  %2147 = vmatpush1.bf16.msra.mxu1 %v878_v11  ;;  %v813_v20 = vsub.f32 %v5511_v51, %v3537_v33  ;;  %v815_v35 = vsub.f32 %v5512_v63, %v3555_v55  ;;  %1432 = vmatprep.subr.bf16.mxu0 %v3611_v40  ;;  %v2177_v33 = vpop.eup %2176  ;;  %v850_v11 = vmul.f32 %v2173_v61, %v818_v56  ;;  %v5515_v63 = vld [vmem:[#allocation7_spill] sm:$0xff]  ;;  %v3883_v56 = vld [vmem:[%s5318_s5 + $0x240] sm:$0xff] }
 0x1ff   :  { %2140 = vmatprep.subr.bf16.mxu1 %v3611_v40  ;;  %v849_v9 = vmul.f32 %v3748_v52, %v817_v12  ;;  %1344 = vadd.xlane.f32.xlu1 %v1193_v42  ;;  %v1195_v4 = vmul.f32 %v3006_v32, %v3865_v57  ;;  %v1194_v40 = vmul.f32 %v3006_v32, %v3860_v60  ;;  %v5514_v12 = vld [vmem:[#allocation5_spill] sm:$0xff]  ;;  %v5516_v61 = vld [vmem:[#allocation19_spill] sm:$0xff] }
 0x200   :  { %1342 = vadd.xlane.f32.xlu0 %v1192_v19  ;;  %v814_v59 = vsub.f32 %v5513_v45, %v3555_v55  ;;  %v808_v30 = vsub.f32 %v5514_v12, %v3589_v25  ;;  %v847_v51 = vmul.f32 %v2175_v5, %v815_v35  ;;  %v810_v41 = vsub.f32 %v5515_v63, %v3646_v29  ;;  %v3888_v55 = vld [vmem:[%s5318_s5 + $0x248] sm:$0xff]  ;;  %v5517_v12 = vld [vmem:[#allocation6_spill] sm:$0xff] }
 0x201   :  { %v875_v17 = vpack.c.bf16 %v851_v6, %v849_v9  ;;  %v811_v42 = vsub.f32 %v5516_v61, %v3646_v29  ;;  %1433 = vmatpush1.bf16.msra.mxu0 %v876_v34  ;;  %v848_v19 = vmul.f32 %v3748_v52, %v816_v28  ;;  %v845_v35 = vmul.f32 %v2177_v33, %v813_v20  ;;  %v3893_v29 = vld [vmem:[%s5318_s5 + $0x1d0] sm:$0xff] }
 0x202   :  { %2148 = vmatpush1.bf16.msra.mxu1 %v876_v34  ;;  %v3897_v52 = vmul.f32 %v3095_v48, %v3883_v56  ;;  %v3901_v34 = vmul.f32 %v3095_v48, %v3888_v55  ;;  %v846_v45 = vmul.f32 %v2175_v5, %v814_v59  ;;  %v1196_v20 = vmul.f32 %v3006_v32, %v3893_v29  ;;  %v3914_v32 = vld [vmem:[%s5318_s5 + $0x1d8] sm:$0xff]  ;;  %v5518_v59 = vld [vmem:[#allocation34_spill] sm:$0xff] }
 0x203   :  { %v2179_v6 = vpop.eup %2178  ;;  %1434 = vmatprep.subr.bf16.mxu0 %v875_v17  ;;  %2141 = vmatprep.subr.bf16.mxu1 %v875_v17  ;;  %v874_v9 = vpack.c.bf16 %v850_v11, %v848_v19  ;;  %v809_v17 = vsub.f32 %v5517_v12, %v3589_v25  ;;  %v873_v63 = vpack.c.bf16 %v847_v51, %v845_v35  ;;  %v5520_v19 = vld [vmem:[#allocation3_spill] sm:$0xff]  ;;  %v5546_v5 = vld [vmem:[#allocation66_spill] sm:$0xff] }
 0x204   :  { %v2181_v28 = vpop.eup %2180  ;;  %1348 = vadd.xlane.f32.xlu1 %v1195_v4  ;;  %1346 = vadd.xlane.f32.xlu0 %v1194_v40  ;;  %v843_v61 = vmul.f32 %v2179_v6, %v811_v42  ;;  %v844_v8 = vmul.f32 %v2177_v33, %v812_v43  ;;  %v842_v7 = vmul.f32 %v2179_v6, %v810_v41  ;;  %v3923_v43 = vld [vmem:[%s5317_s4] ss:$0 sm:$0xff]  ;;  %v5521_v6 = vld [vmem:[#allocation33_spill] sm:$0xff] }
 0x205   :  { %1435 = vmatpush1.bf16.msra.mxu0 %v874_v9  ;;  %v841_v11 = vmul.f32 %v2181_v28, %v809_v17  ;;  %v840_v40 = vmul.f32 %v2181_v28, %v808_v30  ;;  %v3918_v51 = vmul.f32 %v3095_v48, %v5518_v59  ;;  %v1197_v41 = vmul.f32 %v3923_v43, %v3914_v32  ;;  %v5519_v33 = vld [vmem:[#allocation2_spill] sm:$0xff]  ;;  %v5522_v28 = vld [vmem:[#allocation4_spill] sm:$0xff] }
 0x206   :  { %2149 = vmatpush1.bf16.msra.mxu1 %v874_v9  ;;  %1436 = vmatprep.subr.bf16.mxu0 %v873_v63  ;;  %v872_v4 = vpack.c.bf16 %v846_v45, %v844_v8  ;;  %v804_v42 = vsub.f32 %v5519_v33, %v3692_v47  ;;  %v805_v8 = vsub.f32 %v5520_v19, %v3692_v47  ;;  %v5523_v45 = vld [vmem:[#allocation20_spill] sm:$0xff]  ;;  %v3947_v47 = vld [vmem:[%s5318_s5 + $0x258] sm:$0xff] }
 0x207   :  { %2142 = vmatprep.subr.bf16.mxu1 %v873_v63  ;;  %v2183_v25 = vpop.eup %2182  ;;  %v871_v30 = vpack.c.bf16 %v843_v61, %v841_v11  ;;  %v3933_v35 = vmul.f32 %v3095_v48, %v5521_v6  ;;  %v806_v9 = vsub.f32 %v5522_v28, %v3722_v13  ;;  %v807_v12 = vsub.f32 %v5523_v45, %v3722_v13  ;;  %v3942_v17 = vld [vmem:[%s5318_s5 + $0x250] sm:$0xff]  ;;  %v5527_v45 = vld [vmem:[#allocation35_spill] sm:$0xff] }
 0x208   :  { %1350 = vadd.xlane.f32.xlu0 %v1196_v20  ;;  %v870_v20 = vpack.c.bf16 %v842_v7, %v840_v40  ;;  %v837_v61 = vmul.f32 %v2183_v25, %v805_v8  ;;  %v3951_v13 = vmul.f32 %v3095_v48, %v3942_v17  ;;  %v3955_v7 = vmul.f32 %v3095_v48, %v3947_v47  ;;  %v5524_v19 = vld [vmem:[#allocation52_spill] sm:$0xff] }
 0x209   :  { %1437 = vmatpush1.bf16.msra.mxu0 %v872_v4  ;;  %1352 = vadd.xlane.f32.xlu1 %v1197_v41  ;;  %v1198_v59 = vmul.f32 %v3923_v43, %v3472_v37  ;;  %v1031_v33 = vmul.f32 %v3095_v48, %v3436_v50  ;;  %v1032_v8 = vmul.f32 %v3095_v48, %v5524_v19  ;;  %v5525_v37 = vld [vmem:[#allocation57_spill] sm:$0xff]  ;;  %v3972_v48 = vld [vmem:[%s5319_s3] ss:$0 sm:$0xff] }
 0x20a   :  { %2150 = vmatpush1.bf16.msra.mxu1 %v872_v4  ;;  %1438 = vmatprep.subr.bf16.mxu0 %v871_v30  ;;  %v836_v4 = vmul.f32 %v2183_v25, %v804_v42  ;;  %v1199_v41 = vmul.f32 %v3923_v43, %v5525_v37  ;;  %v5526_v42 = vld [vmem:[#allocation38_spill] sm:$0xff]  ;;  %v5545_v25 = vld [vmem:[#allocation65_spill] sm:$0xff]  ;;  %v1036_v1 = vmul.f32 %v3972_v48, %v5546_v5 }
 0x20b   :  { %v2185_v63 = vpop.eup %2184  ;;  %2143 = vmatprep.subr.bf16.mxu1 %v871_v30  ;;  %v1105_v50 = vpack.c.bf16 %v1032_v8, %v1031_v33  ;;  %v5531_v33 = vld [vmem:[#allocation22_spill] sm:$0xff]  ;;  %v5533_v8 = vld [vmem:[#allocation61_spill] sm:$0xff]  ;;  %v1035_v30 = vmul.f32 %v3972_v48, %v5545_v25 }
 0x20c   :  { %v839_v11 = vmul.f32 %v2185_v63, %v807_v12  ;;  %v838_v40 = vmul.f32 %v2185_v63, %v806_v9  ;;  %1354 = vadd.xlane.f32.xlu0 %v1198_v59  ;;  %v3976_v9 = vmul.f32 %v3972_v48, %v5526_v42  ;;  %v3980_v12 = vmul.f32 %v3972_v48, %v5527_v45  ;;  %v3990_v63 = vld [vmem:[%s5318_s5 + $0x268] sm:$0xff]  ;;  %v5530_v59 = vld [vmem:[#allocation21_spill] sm:$0xff] }
 0x20d   :  { %1439 = vmatpush1.bf16.msra.mxu0 %v870_v20  ;;  %1356 = vadd.xlane.f32.xlu1 %v1199_v41  ;;  %v5532_v19 = vpack.c.bf16 %v5530_v59, %v5531_v33  ;;  %v5535_v42 = vmov 0   ;;  %v5537_v33 = vld [vmem:[#allocation40_spill] sm:$0xff]  ;;  %v5549_v5 = vld [vmem:[#allocation41_spill] sm:$0xff] }
 0x20e   :  { %2151 = vmatpush1.bf16.msra.mxu1 %v870_v20  ;;  %v869_v6 = vpack.c.bf16 %v839_v11, %v837_v61  ;;  %v868_v28 = vpack.c.bf16 %v838_v40, %v836_v4  ;;  %5528 = vst [vmem:[#allocation10_spill] sm:$0xff] %v3980_v12  ;;  %v3985_v20 = vld [vmem:[%s5318_s5 + $0x260] sm:$0xff]  ;;  %v3998_v11 = vmul.f32 %v3972_v48, %v3990_v63  ;;  %v5529_v4 = vld [vmem:[#allocation64_spill] sm:$0xff] }
 0x20f   :  { %v3994_v61 = vmul.f32 %v3972_v48, %v3985_v20  ;;  %v1200_v40 = vmul.f32 %v3923_v43, %v5529_v4  ;;  %v5536_v4 = vld [vmem:[#allocation11_spill] sm:$0xff]  ;;  %v4028_v41 = vld [vmem:[%s5318_s5 + $0x270] sm:$0xff]  ;;  %v4066_v12 = vmul.f32 %v3972_v48, %v5549_v5 }
 0x210   :  { %1440 = vmatprep.subr.bf16.mxu0 %v869_v6  ;;  %2144 = vmatprep.subr.bf16.mxu1 %v869_v6  ;;  %v1033_v6 = vmul.f32 %v3972_v48, %v5533_v8  ;;  %v5539_v8 = vld [vmem:[#allocation39_spill] sm:$0xff] }
 0x211   :  { %1441 = vmatpush1.bf16.msra.mxu0 %v868_v28  ;;  %1358 = vadd.xlane.f32.xlu0 %v1200_v40  ;;  %v4033_v40 = vld [vmem:[%s5318_s5 + $0x278] sm:$0xff] }
 0x212   :  { %2152 = vmatpush1.bf16.msra.mxu1 %v868_v28  ;;  %v5534_v28 = vld [vmem:[#allocation58_spill] sm:$0xff] }
 0x213   :  { %v1034_v37 = vmul.f32 %v3972_v48, %v5534_v28  ;;  %v4023_v28 = vmul.f32 %v3972_v48, %v5539_v8  ;;  %v5543_v8 = vld [vmem:[#allocation24_spill] sm:$0xff] }
 0x214   :  { %1459 = vmatmul.mubr.bf16.vlgmr.msra.gmra.mxu0 %v5532_v19  ;;  %v4019_v19 = vmul.f32 %v3972_v48, %v5537_v33  ;;  %v5542_v33 = vld [vmem:[#allocation23_spill] sm:$0xff] }
 0x215   :  { %1679 = vmatmul.mubr.bf16.vlgmr.msra.gmra.mxu1 %v1105_v50  ;;  %1468 = vmatprep.mubr.bf16.mxu0 %v5535_v42  ;;  %v1201_v50 = vmul.f32 %v3923_v43, %v5536_v4  ;;  %v1106_v59 = vpack.c.bf16 %v1034_v37, %v1033_v6  ;;  %5540 = vst [vmem:[#allocation9_spill] sm:$0xff] %v4023_v28  ;;  %v5541_v4 = vld [vmem:[#allocation45_spill] sm:$0xff] }
 0x216   :  { %1688 = vmatprep.mubr.bf16.mxu1 %v5535_v42  ;;  %5538 = vst [vmem:[#allocation14_spill] sm:$0xff] %v4019_v19  ;;  %v4037_v6 = vmul.f32 %v3972_v48, %v4028_v41  ;;  %v4041_v37 = vmul.f32 %v3972_v48, %v4033_v40  ;;  %v5544_v45 = vpack.c.bf16 %v5542_v33, %v5543_v8  ;;  %v5547_v33 = vld [vmem:[#allocation68_spill] sm:$0xff] }
 0x217   :  { %1360 = vadd.xlane.f32.xlu1 %v1201_v50  ;;  %v1202_v50 = vmul.f32 %v3923_v43, %v5541_v4  ;;  %v5548_v8 = vld [vmem:[#allocation44_spill] sm:$0xff]  ;;  %v1037_v4 = vmul.f32 %v3972_v48, %v3682_v26  ;;  %v1038_v28 = vmul.f32 %v3972_v48, %v3697_v21  ;;  %v4111_v21 = vld [vmem:[%s5318_s5 + $0x298] sm:$0xff]  ;;  %v1215_v19 = vmul.f32 %v3923_v43, %v3990_v63 }
 0x218   :  { %v4062_v25 = vmul.f32 %v3972_v48, %v5548_v8  ;;  %v5551_v8 = vld [vmem:[#allocation26_spill] sm:$0xff]  ;;  %v4106_v26 = vld [vmem:[%s5318_s5 + $0x290] sm:$0xff] }
 0x219   :  { %1362 = vadd.xlane.f32.xlu0 %v1202_v50  ;;  %v4076_v50 = vld [vmem:[%s5318_s5 + $0x288] sm:$0xff] }
 0x21c   :  { %1469 = vmatmul.mubr.bf16.gmra.mxu0 %v5544_v45  ;;  %v1203_v45 = vmul.f32 %v3923_v43, %v5547_v33  ;;  %v1204_v33 = vmul.f32 %v3923_v43, %v3729_v22  ;;  %v1040_v22 = vmul.f32 %v3972_v48, %v3784_v23  ;;  %v4144_v23 = vld [vmem:[%s5318_s5 + $0x2a8] sm:$0xff] }
 0x21d   :  { %1689 = vmatmul.mubr.bf16.gmra.mxu1 %v1106_v59  ;;  %1478 = vmatprep.mubr.bf16.mxu0 %v5535_v42  ;;  %v1107_v59 = vpack.c.bf16 %v1036_v1, %v1035_v30  ;;  %v4080_v1 = vmul.f32 %v3972_v48, %v4071_v15  ;;  %v4084_v30 = vmul.f32 %v3972_v48, %v4076_v50 }
 0x21e   :  { %1698 = vmatprep.mubr.bf16.mxu1 %v5535_v42  ;;  %1364 = vadd.xlane.f32.xlu1 %v1203_v45  ;;  %v5550_v45 = vld [vmem:[#allocation25_spill] sm:$0xff] }
 0x21f   :  { %v5552_v5 = vpack.c.bf16 %v5550_v45, %v5551_v8  ;;  %1366 = vadd.xlane.f32.xlu0 %v1204_v33  ;;  %v1108_v45 = vpack.c.bf16 %v1038_v28, %v1037_v4  ;;  %v4115_v8 = vmul.f32 %v3972_v48, %v4106_v26  ;;  %v4119_v33 = vmul.f32 %v3972_v48, %v4111_v21  ;;  %v5553_v28 = vld [vmem:[#allocation27_spill] sm:$0xff]  ;;  %v5554_v4 = vld [vmem:[#allocation28_spill] sm:$0xff] }
 0x224   :  { %1479 = vmatmul.mubr.bf16.gmra.mxu0 %v5552_v5  ;;  %v5555_v5 = vpack.c.bf16 %v5553_v28, %v5554_v4  ;;  %v5557_v4 = vld [vmem:[#allocation30_spill] sm:$0xff] }
 0x225   :  { %1699 = vmatmul.mubr.bf16.gmra.mxu1 %v1107_v59  ;;  %1488 = vmatprep.mubr.bf16.mxu0 %v5535_v42  ;;  %v1205_v59 = vmul.f32 %v3923_v43, %v3740_v39  ;;  %v1206_v39 = vmul.f32 %v3923_v43, %v3755_v49  ;;  %v1207_v49 = vmul.f32 %v3923_v43, %v3772_v16 }
 0x226   :  { %1708 = vmatprep.mubr.bf16.mxu1 %v5535_v42  ;;  %v1208_v16 = vmul.f32 %v3923_v43, %v3807_v2  ;;  %v1209_v2 = vmul.f32 %v3923_v43, %v3812_v53  ;;  %v1210_v53 = vmul.f32 %v3923_v43, %v3883_v56  ;;  %v1211_v56 = vmul.f32 %v3923_v43, %v3888_v55 }
 0x227   :  { %1368 = vadd.xlane.f32.xlu1 %v1205_v59  ;;  %v1039_v59 = vmul.f32 %v3972_v48, %v3779_v10  ;;  %1370 = vadd.xlane.f32.xlu0 %v1206_v39  ;;  %v4139_v10 = vld [vmem:[%s5318_s5 + $0x2a0] sm:$0xff]  ;;  %v4152_v39 = vmul.f32 %v3972_v48, %v4144_v23  ;;  %v1212_v55 = vmul.f32 %v3923_v43, %v3942_v17 }
 0x228   :  { %v1213_v17 = vmul.f32 %v3923_v43, %v3947_v47  ;;  %v1214_v47 = vmul.f32 %v3923_v43, %v3985_v20  ;;  %v4271_v20 = vld [vmem:[%s5318_s5 + $0x2e0] sm:$0xff] }
 0x229   :  { %v1109_v28 = vpack.c.bf16 %v1040_v22, %v1039_v59  ;;  %v5556_v22 = vld [vmem:[#allocation29_spill] sm:$0xff]  ;;  %v1041_v59 = vmul.f32 %v3972_v48, %v3817_v0  ;;  %v4172_v0 = vld [vmem:[%s5318_s5 + $0x2b0] sm:$0xff] }
 0x22b   :  { %1372 = vadd.xlane.f32.xlu1 %v1207_v49  ;;  %v1042_v49 = vmul.f32 %v3972_v48, %v3822_v46  ;;  %1374 = vadd.xlane.f32.xlu0 %v1208_v16  ;;  %v4177_v46 = vld [vmem:[%s5318_s5 + $0x2b8] sm:$0xff] }
 0x22c   :  { %1489 = vmatmul.mubr.bf16.gmra.mxu0 %v5555_v5  ;;  %v5558_v5 = vpack.c.bf16 %v5556_v22, %v5557_v4  ;;  %v4185_v16 = vmul.f32 %v3972_v48, %v4177_v46  ;;  %v5559_v4 = vld [vmem:[#allocation31_spill] sm:$0xff] }
 0x22d   :  { %1709 = vmatmul.mubr.bf16.gmra.mxu1 %v1108_v45  ;;  %1498 = vmatprep.mubr.bf16.mxu0 %v5535_v42  ;;  %v4148_v45 = vmul.f32 %v3972_v48, %v4139_v10  ;;  %v1110_v22 = vpack.c.bf16 %v1042_v49, %v1041_v59  ;;  %v1043_v49 = vmul.f32 %v3972_v48, %v3860_v60  ;;  %v4205_v60 = vld [vmem:[%s5318_s5 + $0x2c0] sm:$0xff] }
 0x22e   :  { %1718 = vmatprep.mubr.bf16.mxu1 %v5535_v42 }
 0x22f   :  { %1376 = vadd.xlane.f32.xlu1 %v1209_v2  ;;  %v1044_v2 = vmul.f32 %v3972_v48, %v3865_v57  ;;  %1378 = vadd.xlane.f32.xlu0 %v1210_v53  ;;  %v4210_v57 = vld [vmem:[%s5318_s5 + $0x2c8] sm:$0xff] }
 0x230   :  { %v4218_v53 = vmul.f32 %v3972_v48, %v4210_v57 }
 0x232   :  { %5563 = vst [vmem:[#allocation17_spill] sm:$0xff] %v4218_v53 }
 0x233   :  { %1380 = vadd.xlane.f32.xlu1 %v1211_v56  ;;  %v1046_v56 = vmul.f32 %v3972_v48, %v3914_v32  ;;  %1382 = vadd.xlane.f32.xlu0 %v1212_v55  ;;  %v4243_v32 = vld [vmem:[%s5318_s5 + $0x2d8] sm:$0xff] }
 0x234   :  { %1499 = vmatmul.mubr.bf16.gmra.mxu0 %v5558_v5  ;;  %v5560_v5 = vld [vmem:[#allocation32_spill] sm:$0xff]  ;;  %v4251_v55 = vmul.f32 %v3972_v48, %v4243_v32 }
 0x235   :  { %1719 = vmatmul.mubr.bf16.gmra.mxu1 %v1109_v28  ;;  %1508 = vmatprep.mubr.bf16.mxu0 %v5535_v42  ;;  %v4181_v28 = vmul.f32 %v3972_v48, %v4172_v0  ;;  %v5561_v59 = vpack.c.bf16 %v5559_v4, %v5560_v5  ;;  %v1111_v4 = vpack.c.bf16 %v1044_v2, %v1043_v49  ;;  %v5564_v5 = vld [vmem:[#allocation36_spill] sm:$0xff] }
 0x236   :  { %1728 = vmatprep.mubr.bf16.mxu1 %v5535_v42  ;;  %v1045_v2 = vmul.f32 %v3972_v48, %v3893_v29  ;;  %v4238_v29 = vld [vmem:[%s5318_s5 + $0x2d0] sm:$0xff]  ;;  %5568 = vst [vmem:[#allocation16_spill] sm:$0xff] %v4251_v55  ;;  %v5588_v55 = vld [vmem:[#allocation69_spill] sm:$0xff] }
 0x237   :  { %1384 = vadd.xlane.f32.xlu1 %v1213_v17  ;;  %v4262_v17 = vpop.xlane.xlu0 %1234  ;;  %1386 = vadd.xlane.f32.xlu0 %v1214_v47  ;;  %v5575_v47 = vld [vmem:[#allocation46_spill] sm:$0xff] }
 0x238   :  { %5572 = vst [vmem:[#allocation18_spill] sm:$0xff] %v4262_v17 }
 0x23b   :  { %1388 = vadd.xlane.f32.xlu1 %v1215_v19  ;;  %v1216_v19 = vmul.f32 %v3923_v43, %v4028_v41  ;;  %v1217_v41 = vmul.f32 %v3923_v43, %v4033_v40 }
 0x23c   :  { %1509 = vmatmul.mubr.bf16.gmra.mxu0 %v5561_v59  ;;  %v5565_v59 = vld [vmem:[#allocation37_spill] sm:$0xff] }
 0x23d   :  { %1729 = vmatmul.mubr.bf16.gmra.mxu1 %v1110_v22  ;;  %1518 = vmatprep.mubr.bf16.mxu0 %v5535_v42  ;;  %v4214_v22 = vmul.f32 %v3972_v48, %v4205_v60  ;;  %v5566_v49 = vpack.c.bf16 %v5564_v5, %v5565_v59  ;;  %v1112_v5 = vpack.c.bf16 %v1046_v56, %v1045_v2  ;;  %v5569_v59 = vld [vmem:[#allocation42_spill] sm:$0xff]  ;;  %v5578_v56 = vld [vmem:[#allocation60_spill] sm:$0xff] }
 0x23e   :  { %1738 = vmatprep.mubr.bf16.mxu1 %v5535_v42  ;;  %1390 = vadd.xlane.f32.xlu0 %v1216_v19 }
 0x23f   :  { %5562 = vst [vmem:[#allocation13_spill] sm:$0xff] %v4214_v22  ;;  %v4266_v22 = vpop.xlane.xlu1 %1236  ;;  %1392 = vadd.xlane.f32.xlu1 %v1217_v41 }
 0x240   :  { %5573 = vst [vmem:[#allocation5_spill] sm:$0xff] %v4266_v22  ;;  %v5579_v22 = vld [vmem:[#allocation59_spill] sm:$0xff] }
 0x241   :  { %v5580_v17 = vpack.c.bf16 %v5578_v56, %v5579_v22  ;;  %v4307_v22 = vld [vmem:[%s5318_s5 + $0x2f0] sm:$0xff]  ;;  %v4312_v56 = vld [vmem:[%s5318_s5 + $0x2f8] sm:$0xff] }
 0x242   :  { %v4318_v19 = vmul.f32 %v3972_v48, %v4307_v22  ;;  %v4322_v40 = vmul.f32 %v3972_v48, %v4312_v56 }
 0x243   :  { %v4300_v53 = vpop.xlane.xlu1 %1240 }
 0x244   :  { %1519 = vmatmul.mubr.bf16.gmra.mxu0 %v5566_v49  ;;  %v5570_v49 = vld [vmem:[#allocation43_spill] sm:$0xff]  ;;  %5582 = vst [vmem:[#allocation6_spill] sm:$0xff] %v4300_v53  ;;  %5584 = vst [vmem:[#allocation2_spill] sm:$0xff] %v4318_v19 }
 0x245   :  { %1739 = vmatmul.mubr.bf16.gmra.mxu1 %v1111_v4  ;;  %1528 = vmatprep.mubr.bf16.mxu0 %v5535_v42  ;;  %v4247_v4 = vmul.f32 %v3972_v48, %v4238_v29  ;;  %v5571_v2 = vpack.c.bf16 %v5569_v59, %v5570_v49  ;;  %v4280_v59 = vmul.f32 %v3972_v48, %v4271_v20  ;;  %v5576_v49 = vld [vmem:[#allocation47_spill] sm:$0xff] }
 0x246   :  { %1748 = vmatprep.mubr.bf16.mxu1 %v5535_v42  ;;  %v5589_v53 = vld [vmem:[#allocation67_spill] sm:$0xff] }
 0x247   :  { %5567 = vst [vmem:[#allocation15_spill] sm:$0xff] %v4247_v4  ;;  %5574 = vst [vmem:[#allocation7_spill] sm:$0xff] %v4280_v59  ;;  %v4294_v4 = vpop.xlane.xlu0 %1238 }
 0x248   :  { %5581 = vst [vmem:[#allocation19_spill] sm:$0xff] %v4294_v4  ;;  %v5590_v4 = vpack.c.bf16 %v5588_v55, %v5589_v53  ;;  %v1220_v53 = vmul.f32 %v3923_v43, %v4106_v26  ;;  %v5592_v55 = vld [vmem:[#allocation51_spill] sm:$0xff]  ;;  %v1222_v26 = vmul.f32 %v3923_v43, %v4139_v10  ;;  %v1223_v10 = vmul.f32 %v3923_v43, %v4144_v23 }
 0x249   :  { %v1225_v23 = vmul.f32 %v3923_v43, %v4177_v46 }
 0x24c   :  { %1529 = vmatmul.mubr.bf16.gmra.mxu0 %v5571_v2  ;;  %v5577_v2 = vpack.c.bf16 %v5575_v47, %v5576_v49  ;;  %v1218_v47 = vmul.f32 %v3923_v43, %v4071_v15  ;;  %v5585_v49 = vld [vmem:[#allocation48_spill] sm:$0xff]  ;;  %v1219_v15 = vmul.f32 %v3923_v43, %v4076_v50 }
 0x24d   :  { %1749 = vmatmul.mubr.bf16.gmra.mxu1 %v1112_v5  ;;  %1538 = vmatprep.mubr.bf16.mxu0 %v5535_v42  ;;  %v4276_v5 = vld [vmem:[%s5318_s5 + $0x2e8] sm:$0xff] }
 0x24e   :  { %1758 = vmatprep.mubr.bf16.mxu1 %v5535_v42  ;;  %v4284_v63 = vmul.f32 %v3972_v48, %v4276_v5  ;;  %v4336_v48 = vpop.xlane.xlu1 %1244  ;;  %1394 = vadd.xlane.f32.xlu0 %v1218_v47  ;;  %v1221_v47 = vmul.f32 %v3923_v43, %v4111_v21 }
 0x24f   :  { %1396 = vadd.xlane.f32.xlu1 %v1219_v15 }
 0x252   :  { %1398 = vadd.xlane.f32.xlu0 %v1220_v53 }
 0x253   :  { %1400 = vadd.xlane.f32.xlu1 %v1221_v47 }
 0x254   :  { %1539 = vmatmul.mubr.bf16.gmra.mxu0 %v5577_v2  ;;  %v5586_v2 = vld [vmem:[#allocation49_spill] sm:$0xff] }
 0x255   :  { %1759 = vmatmul.mubr.bf16.gmra.mxu1 %v5580_v17  ;;  %1548 = vmatprep.mubr.bf16.mxu0 %v5535_v42  ;;  %v4314_v17 = vpop.xlane.xlu0 %1242  ;;  %v5587_v41 = vpack.c.bf16 %v5585_v49, %v5586_v2  ;;  %v4342_v49 = vpop.xlane.xlu1 %1248 }
 0x256   :  { %1768 = vmatprep.mubr.bf16.mxu1 %v5535_v42  ;;  %5583 = vst [vmem:[#allocation34_spill] sm:$0xff] %v4314_v17  ;;  %v5595_v17 = vld [vmem:[#allocation70_spill] sm:$0xff]  ;;  %1402 = vadd.xlane.f32.xlu0 %v1222_v26 }
 0x257   :  { %1404 = vadd.xlane.f32.xlu1 %v1223_v10 }
 0x259   :  { %v4340_v59 = vpop.xlane.xlu0 %1246  ;;  %v4358_v15 = vpop.xlane.xlu1 %1252 }
 0x25b   :  { %1408 = vadd.xlane.f32.xlu1 %v1225_v23  ;;  %v5620_v23 = vpack.c.bf16 %v4062_v25, %v4066_v12  ;;  %v5625_v12 = vpack.c.bf16 %v4152_v39, %v4148_v45 }
 0x25c   :  { %1549 = vmatmul.mubr.bf16.gmra.mxu0 %v5587_v41  ;;  %v5594_v41 = vld [vmem:[#allocation71_spill] sm:$0xff] }
 0x25d   :  { %1769 = vmatmul.mubr.bf16.gmra.mxu1 %v5590_v4  ;;  %1558 = vmatprep.mubr.bf16.mxu0 %v5535_v42  ;;  %v5591_v4 = vld [vmem:[#allocation50_spill] sm:$0xff]  ;;  %v5596_v19 = vpack.c.bf16 %v5594_v41, %v5595_v17  ;;  %v4354_v50 = vpop.xlane.xlu0 %1250  ;;  %v4372_v21 = vpop.xlane.xlu1 %1256  ;;  %v1224_v41 = vmul.f32 %v3923_v43, %v4172_v0 }
 0x25e   :  { %1778 = vmatprep.mubr.bf16.mxu1 %v5535_v42  ;;  %v5593_v2 = vpack.c.bf16 %v5591_v4, %v5592_v55  ;;  %v5597_v4 = vld [vmem:[#allocation53_spill] sm:$0xff]  ;;  %v5598_v55 = vld [vmem:[#allocation54_spill] sm:$0xff] }
 0x25f   :  { %v5599_v17 = vpack.c.bf16 %v5597_v4, %v5598_v55  ;;  %v5604_v4 = vpack.c.bf16 %v3802_v18, %v3794_v54  ;;  %1406 = vadd.xlane.f32.xlu0 %v1224_v41  ;;  %v5605_v54 = vpack.c.bf16 %v3484_v36, %v3488_v24  ;;  %v5606_v18 = vpack.c.bf16 %v3830_v27, %v3826_v58 }
 0x260   :  { %v1228_v36 = vmul.f32 %v3923_v43, %v4238_v29  ;;  %v5607_v24 = vpack.c.bf16 %v3525_v44, %v3529_v62  ;;  %v5608_v58 = vpack.c.bf16 %v3901_v34, %v3897_v52  ;;  %v1230_v62 = vmul.f32 %v3923_v43, %v4271_v20 }
 0x261   :  { %v4388_v26 = vpop.xlane.xlu1 %1260  ;;  %v5609_v44 = vpack.c.bf16 %v3559_v3, %v3565_v14  ;;  %v5610_v52 = vpack.c.bf16 %v3955_v7, %v3951_v13  ;;  %v1232_v3 = vmul.f32 %v3923_v43, %v4307_v22  ;;  %v5611_v14 = vpack.c.bf16 %v3918_v51, %v3933_v35  ;;  %v5613_v51 = vld [vmem:[#allocation10_spill] sm:$0xff] }
 0x262   :  { %v5612_v13 = vpack.c.bf16 %v3998_v11, %v3994_v61  ;;  %v5614_v35 = vpack.c.bf16 %v3976_v9, %v5613_v51  ;;  %v5615_v61 = vpack.c.bf16 %v4041_v37, %v4037_v6  ;;  %v5619_v9 = vpack.c.bf16 %v4084_v30, %v4080_v1 }
 0x264   :  { %1559 = vmatmul.mubr.bf16.gmra.mxu0 %v5593_v2  ;;  %v4368_v2 = vpop.xlane.xlu0 %1254 }
 0x265   :  { %1779 = vmatmul.mubr.bf16.gmra.mxu1 %v5596_v19  ;;  %1568 = vmatprep.mubr.bf16.mxu0 %v5535_v42  ;;  %v5600_v19 = vpack.c.bf16 %v3767_v38, %v3746_v31  ;;  %v5601_v31 = vld [vmem:[#allocation55_spill] sm:$0xff]  ;;  %v5602_v38 = vld [vmem:[#allocation56_spill] sm:$0xff]  ;;  %v4394_v0 = vpop.xlane.xlu1 %1264 }
 0x266   :  { %1788 = vmatprep.mubr.bf16.mxu1 %v5535_v42  ;;  %v5603_v47 = vpack.c.bf16 %v5601_v31, %v5602_v38  ;;  %v5617_v38 = vld [vmem:[#allocation9_spill] sm:$0xff] }
 0x268   :  { %v4376_v53 = vpop.xlane.xlu0 %1258 }
 0x269   :  { %v4410_v10 = vpop.xlane.xlu1 %1268 }
 0x26c   :  { %1569 = vmatmul.mubr.bf16.gmra.mxu0 %v5599_v17  ;;  %v4392_v55 = vpop.xlane.xlu0 %1262  ;;  %v1226_v17 = vmul.f32 %v3923_v43, %v4205_v60 }
 0x26d   :  { %1789 = vmatmul.mubr.bf16.gmra.mxu1 %v5600_v19  ;;  %1578 = vmatprep.mubr.bf16.mxu0 %v5535_v42  ;;  %v1227_v19 = vmul.f32 %v3923_v43, %v4210_v57  ;;  %v4424_v60 = vpop.xlane.xlu1 %1272  ;;  %v1229_v57 = vmul.f32 %v3923_v43, %v4243_v32  ;;  %v1231_v32 = vmul.f32 %v3923_v43, %v4276_v5 }
 0x26e   :  { %1798 = vmatprep.mubr.bf16.mxu1 %v5535_v42  ;;  %1410 = vadd.xlane.f32.xlu0 %v1226_v17  ;;  %v1233_v5 = vmul.f32 %v3923_v43, %v4312_v56  ;;  %v5616_v56 = vld [vmem:[#allocation14_spill] sm:$0xff]  ;;  %v5621_v17 = vpack.c.bf16 %v4119_v33, %v4115_v8 }
 0x26f   :  { %1412 = vadd.xlane.f32.xlu1 %v1227_v19 }
 0x270   :  { %v4406_v46 = vpop.xlane.xlu0 %1266 }
 0x271   :  { %v4440_v34 = vpop.xlane.xlu1 %1276 }
 0x272   :  { %1414 = vadd.xlane.f32.xlu0 %v1228_v36  ;;  %v5626_v36 = vld [vmem:[#allocation8_spill] sm:$0xff] }
 0x273   :  { %1416 = vadd.xlane.f32.xlu1 %v1229_v57  ;;  %v5629_v57 = vpack.c.bf16 %v4185_v16, %v4181_v28  ;;  %v5633_v28 = vld [vmem:[#allocation16_spill] sm:$0xff]  ;;  %v5634_v16 = vld [vmem:[#allocation15_spill] sm:$0xff] }
 0x274   :  { %1579 = vmatmul.mubr.bf16.gmra.mxu0 %v5603_v47  ;;  %v4420_v27 = vpop.xlane.xlu0 %1270  ;;  %v5618_v47 = vpack.c.bf16 %v5616_v56, %v5617_v38  ;;  %v5636_v38 = vld [vmem:[#allocation7_spill] sm:$0xff] }
 0x275   :  { %1799 = vmatmul.mubr.bf16.gmra.mxu1 %v5604_v4  ;;  %1588 = vmatprep.mubr.bf16.mxu0 %v5535_v42  ;;  %v4446_v20 = vpop.xlane.xlu1 %1280 }
 0x276   :  { %1808 = vmatprep.mubr.bf16.mxu1 %v5535_v42  ;;  %1418 = vadd.xlane.f32.xlu0 %v1230_v62 }
 0x277   :  { %1420 = vadd.xlane.f32.xlu1 %v1231_v32 }
 0x278   :  { %v4428_v29 = vpop.xlane.xlu0 %1274 }
 0x279   :  { %v4462_v31 = vpop.xlane.xlu1 %1284 }
 0x27a   :  { %1422 = vadd.xlane.f32.xlu0 %v1232_v3 }
 0x27b   :  { %1424 = vadd.xlane.f32.xlu1 %v1233_v5 }
 0x27c   :  { %1589 = vmatmul.mubr.bf16.gmra.mxu0 %v5605_v54  ;;  %v4444_v41 = vpop.xlane.xlu0 %1278  ;;  %v5622_v54 = vld [vmem:[#allocation62_spill] sm:$0xff] }
 0x27d   :  { %1809 = vmatmul.mubr.bf16.gmra.mxu1 %v5606_v18  ;;  %1598 = vmatprep.mubr.bf16.mxu0 %v5535_v42  ;;  %v4474_v22 = vpop.xlane.xlu1 %1288  ;;  %v5623_v18 = vld [vmem:[#allocation63_spill] sm:$0xff] }
 0x27e   :  { %1818 = vmatprep.mubr.bf16.mxu1 %v5535_v42  ;;  %v5624_v19 = vpack.c.bf16 %v5622_v54, %v5623_v18 }
 0x280   :  { %v4458_v7 = vpop.xlane.xlu0 %1282 }
 0x281   :  { %v4486_v6 = vpop.xlane.xlu1 %1292 }
 0x284   :  { %1599 = vmatmul.mubr.bf16.gmra.mxu0 %v5607_v24  ;;  %v4470_v11 = vpop.xlane.xlu0 %1286  ;;  %v5627_v24 = vld [vmem:[#allocation12_spill] sm:$0xff] }
 0x285   :  { %1819 = vmatmul.mubr.bf16.gmra.mxu1 %v5608_v58  ;;  %1608 = vmatprep.mubr.bf16.mxu0 %v5535_v42  ;;  %v4490_v4 = vpop.xlane.xlu1 %1296  ;;  %v5628_v58 = vpack.c.bf16 %v5626_v36, %v5627_v24 }
 0x286   :  { %1828 = vmatprep.mubr.bf16.mxu1 %v5535_v42 }
 0x288   :  { %v4476_v43 = vpop.xlane.xlu0 %1290 }
 0x289   :  { %v4502_v30 = vpop.xlane.xlu1 %1300 }
 0x28c   :  { %1609 = vmatmul.mubr.bf16.gmra.mxu0 %v5609_v44  ;;  %v4488_v37 = vpop.xlane.xlu0 %1294  ;;  %v5630_v44 = vld [vmem:[#allocation17_spill] sm:$0xff] }
 0x28d   :  { %1829 = vmatmul.mubr.bf16.gmra.mxu1 %v5610_v52  ;;  %1618 = vmatprep.mubr.bf16.mxu0 %v5535_v42  ;;  %v4514_v8 = vpop.xlane.xlu1 %1304  ;;  %v5631_v52 = vld [vmem:[#allocation13_spill] sm:$0xff] }
 0x28e   :  { %1838 = vmatprep.mubr.bf16.mxu1 %v5535_v42  ;;  %v5632_v32 = vpack.c.bf16 %v5630_v44, %v5631_v52 }
 0x290   :  { %v4500_v1 = vpop.xlane.xlu0 %1298 }
 0x291   :  { %v4525_v45 = vpop.xlane.xlu1 %1308 }
 0x294   :  { %1619 = vmatmul.mubr.bf16.gmra.mxu0 %v5611_v14  ;;  %v4510_v25 = vpop.xlane.xlu0 %1302 }
 0x295   :  { %1839 = vmatmul.mubr.bf16.gmra.mxu1 %v5612_v13  ;;  %1628 = vmatprep.mubr.bf16.mxu0 %v5535_v42  ;;  %v4529_v62 = vpop.xlane.xlu1 %1312  ;;  %v5635_v13 = vpack.c.bf16 %v5633_v28, %v5634_v16 }
 0x296   :  { %1848 = vmatprep.mubr.bf16.mxu1 %v5535_v42 }
 0x298   :  { %v4516_v33 = vpop.xlane.xlu0 %1306 }
 0x299   :  { %v4537_v14 = vpop.xlane.xlu1 %1316 }
 0x29c   :  { %1629 = vmatmul.mubr.bf16.gmra.mxu0 %v5614_v35  ;;  %v4527_v39 = vpop.xlane.xlu0 %1310 }
 0x29d   :  { %1849 = vmatmul.mubr.bf16.gmra.mxu1 %v5615_v61  ;;  %1638 = vmatprep.mubr.bf16.mxu0 %v5535_v42  ;;  %v4545_v51 = vpop.xlane.xlu1 %1320 }
 0x29e   :  { %1858 = vmatprep.mubr.bf16.mxu1 %v5535_v42 }
 0x2a0   :  { %v4535_v3 = vpop.xlane.xlu0 %1314 }
 0x2a4   :  { %1639 = vmatmul.mubr.bf16.gmra.mxu0 %v5618_v47  ;;  %v4542_v5 = vpop.xlane.xlu0 %1318  ;;  %v5637_v47 = vpack.c.bf16 %v4284_v63, %v5636_v38  ;;  %v5642_v38 = vld [vmem:[#allocation19_spill] sm:$0xff] }
 0x2a5   :  { %1859 = vmatmul.mubr.bf16.gmra.mxu1 %v5619_v9  ;;  %1648 = vmatprep.mubr.bf16.mxu0 %v5535_v42  ;;  %v5638_v9 = vld [vmem:[#allocation18_spill] sm:$0xff] }
 0x2a6   :  { %1868 = vmatprep.mubr.bf16.mxu1 %v5535_v42 }
 0x2a8   :  { %v1323_v35 = vpop.xlane.xlu0 %1322 }
 0x2ac   :  { %1649 = vmatmul.mubr.bf16.gmra.mxu0 %v5620_v23  ;;  %v1327_v44 = vpop.xlane.xlu0 %1326 }
 0x2ad   :  { %1869 = vmatmul.mubr.bf16.gmra.mxu1 %v5621_v17  ;;  %1658 = vmatprep.mubr.bf16.mxu0 %v5535_v42  ;;  %v1325_v17 = vpop.xlane.xlu1 %1324 }
 0x2ae   :  { %1878 = vmatprep.mubr.bf16.mxu1 %v5535_v42 }
 0x2b4   :  { %1659 = vmatmul.mubr.bf16.gmra.mxu0 %v5624_v19 }
 0x2b5   :  { %1879 = vmatmul.mubr.bf16.gmra.mxu1 %v5625_v12  ;;  %1668 = vmatprep.mubr.bf16.mxu0 %v5535_v42 }
 0x2b6   :  { %1888 = vmatprep.mubr.bf16.mxu1 %v5535_v42 }
 0x2bc   :  { %1669 = vmatmul.mubr.bf16.gmra.mxu0 %v5628_v58 }
 0x2bd   :  { %1889 = vmatmul.mubr.bf16.gmra.mxu1 %v5629_v57 }
 0x2be   :  { %1898 = vmatprep.mubr.bf16.mxu1 %v5535_v42 }
 0x2c5   :  { %1899 = vmatmul.mubr.bf16.gmra.mxu1 %v5632_v32 }
 0x2c6   :  { %1908 = vmatprep.mubr.bf16.mxu1 %v5535_v42 }
 0x2cd   :  { %1909 = vmatmul.mubr.bf16.gmra.mxu1 %v5635_v13 }
 0x2ce   :  { %1918 = vmatprep.mubr.bf16.mxu1 %v5535_v42 }
 0x2d4   :  { %v1460_v61 = vpop.f32.mrf.mxu0 }
 0x2d5   :  { %v1680_v56 = vpop.f32.mrf.mxu1  ;;  %1919 = vmatmul.mubr.bf16.gmra.mxu1 %v5637_v47  ;;  %v1461_v23 = vadd.f32 %v1460_v61, %v5638_v9  ;;  %v5640_v61 = vld [vmem:[#allocation2_spill] sm:$0xff] }
 0x2d6   :  { %v1681_v54 = vadd.f32 %v1680_v56, %v1323_v35  ;;  %1928 = vmatprep.mubr.bf16.mxu1 %v5535_v42  ;;  %v1462_v18 = vpop.f32.mrf.mxu0  ;;  %v5639_v42 = vld [vmem:[#allocation5_spill] sm:$0xff]  ;;  %v5641_v56 = vpack.c.bf16 %v4322_v40, %v5640_v61 }
 0x2d7   :  { %v1682_v19 = vpop.f32.mrf.mxu1  ;;  %1939 = vst [vmem:[%s5320_s6] sm:$0xff] %v1461_v23  ;;  %v1463_v12 = vadd.f32 %v1462_v18, %v5638_v9  ;;  %v1329_v9 = vpop.xlane.xlu1 %1328 }
 0x2d8   :  { %v1683_v36 = vadd.f32 %v1682_v19, %v1323_v35  ;;  %2027 = vst [vmem:[%s5320_s6 + $0x2c0] sm:$0xff] %v1681_v54  ;;  %v1464_v63 = vpop.f32.mrf.mxu0 }
 0x2d9   :  { %v1684_v24 = vpop.f32.mrf.mxu1  ;;  %1940 = vst.msk [vmem:[%s5320_s6 + $0x8] sm:$0xff] %vm531_vm0, %v1463_v12  ;;  %v1465_v58 = vadd.f32 %v1464_v63, %v5639_v42 }
 0x2da   :  { %v1685_v57 = vadd.f32 %v1684_v24, %v1325_v17  ;;  %2028 = vst.msk [vmem:[%s5320_s6 + $0x2c8] sm:$0xff] %vm531_vm0, %v1683_v36  ;;  %v1466_v52 = vpop.f32.mrf.mxu0  ;;  %v5643_v36 = vld [vmem:[#allocation6_spill] sm:$0xff] }
 0x2db   :  { %v1686_v32 = vpop.f32.mrf.mxu1  ;;  %1941 = vst [vmem:[%s5320_s6 + $0x10] sm:$0xff] %v1465_v58  ;;  %v1467_v28 = vadd.f32 %v1466_v52, %v5639_v42  ;;  %v1331_v42 = vpop.xlane.xlu0 %1330 }
 0x2dc   :  { %2029 = vst [vmem:[%s5320_s6 + $0x2d0] sm:$0xff] %v1685_v57  ;;  %v1687_v16 = vadd.f32 %v1686_v32, %v1325_v17  ;;  %v1470_v13 = vpop.f32.mrf.mxu0 }
 0x2dd   :  { %v1690_v35 = vpop.f32.mrf.mxu1  ;;  %1929 = vmatmul.mubr.bf16.gmra.mxu1 %v5641_v56  ;;  %1942 = vst.msk [vmem:[%s5320_s6 + $0x18] sm:$0xff] %vm531_vm0, %v1467_v28  ;;  %v1471_v47 = vadd.f32 %v1470_v13, %v5642_v38 }
 0x2de   :  { %2030 = vst.msk [vmem:[%s5320_s6 + $0x2d8] sm:$0xff] %vm531_vm0, %v1687_v16  ;;  %v1691_v23 = vadd.f32 %v1690_v35, %v1327_v44  ;;  %v1472_v17 = vpop.f32.mrf.mxu0  ;;  %v5644_v16 = vld [vmem:[#allocation34_spill] sm:$0xff]  ;;  %v1333_v35 = vpop.xlane.xlu1 %1332 }
 0x2df   :  { %v1692_v54 = vpop.f32.mrf.mxu1  ;;  %1943 = vst [vmem:[%s5320_s6 + $0x20] sm:$0xff] %v1471_v47  ;;  %v1473_v40 = vadd.f32 %v1472_v17, %v5642_v38 }
 0x2e0   :  { %v1693_v18 = vadd.f32 %v1692_v54, %v1327_v44  ;;  %2031 = vst [vmem:[%s5320_s6 + $0x2e0] sm:$0xff] %v1691_v23  ;;  %v1474_v19 = vpop.f32.mrf.mxu0 }
 0x2e1   :  { %v1694_v12 = vpop.f32.mrf.mxu1  ;;  %1944 = vst.msk [vmem:[%s5320_s6 + $0x28] sm:$0xff] %vm531_vm0, %v1473_v40  ;;  %v1475_v63 = vadd.f32 %v1474_v19, %v5643_v36 }
 0x2e2   :  { %v1695_v24 = vadd.f32 %v1694_v12, %v1329_v9  ;;  %2032 = vst.msk [vmem:[%s5320_s6 + $0x2e8] sm:$0xff] %vm531_vm0, %v1693_v18  ;;  %v1476_v58 = vpop.f32.mrf.mxu0  ;;  %v1335_v18 = vpop.xlane.xlu0 %1334 }
 0x2e3   :  { %v1696_v57 = vpop.f32.mrf.mxu1  ;;  %1945 = vst [vmem:[%s5320_s6 + $0x30] sm:$0xff] %v1475_v63  ;;  %v1477_v44 = vadd.f32 %v1476_v58, %v5643_v36 }
 0x2e4   :  { %2033 = vst [vmem:[%s5320_s6 + $0x2f0] sm:$0xff] %v1695_v24  ;;  %v1697_v52 = vadd.f32 %v1696_v57, %v1329_v9  ;;  %v1480_v32 = vpop.f32.mrf.mxu0 }
 0x2e5   :  { %v1700_v28 = vpop.f32.mrf.mxu1  ;;  %1946 = vst.msk [vmem:[%s5320_s6 + $0x38] sm:$0xff] %vm531_vm0, %v1477_v44  ;;  %v1481_v13 = vadd.f32 %v1480_v32, %v5644_v16 }
 0x2e6   :  { %2034 = vst.msk [vmem:[%s5320_s6 + $0x2f8] sm:$0xff] %vm531_vm0, %v1697_v52  ;;  %v1701_v61 = vadd.f32 %v1700_v28, %v1331_v42  ;;  %v1482_v56 = vpop.f32.mrf.mxu0 }
 0x2e7   :  { %v1702_v38 = vpop.f32.mrf.mxu1  ;;  %1947 = vst [vmem:[%s5320_s6 + $0x40] sm:$0xff] %v1481_v13  ;;  %v1483_v47 = vadd.f32 %v1482_v56, %v5644_v16 }
 0x2e8   :  { %v1703_v9 = vadd.f32 %v1702_v38, %v1331_v42  ;;  %2035 = vst [vmem:[%s5320_s6 + $0x300] sm:$0xff] %v1701_v61  ;;  %v1484_v23 = vpop.f32.mrf.mxu0 }
 0x2e9   :  { %v1704_v17 = vpop.f32.mrf.mxu1  ;;  %1948 = vst.msk [vmem:[%s5320_s6 + $0x48] sm:$0xff] %vm531_vm0, %v1483_v47  ;;  %v1485_v54 = vadd.f32 %v1484_v23, %v4336_v48 }
 0x2ea   :  { %v1705_v40 = vadd.f32 %v1704_v17, %v1333_v35  ;;  %2036 = vst.msk [vmem:[%s5320_s6 + $0x308] sm:$0xff] %vm531_vm0, %v1703_v9  ;;  %v1486_v19 = vpop.f32.mrf.mxu0 }
 0x2eb   :  { %v1706_v12 = vpop.f32.mrf.mxu1  ;;  %1949 = vst [vmem:[%s5320_s6 + $0x50] sm:$0xff] %v1485_v54  ;;  %v1487_v36 = vadd.f32 %v1486_v19, %v4336_v48  ;;  %v1337_v48 = vpop.xlane.xlu1 %1336 }
 0x2ec   :  { %2037 = vst [vmem:[%s5320_s6 + $0x310] sm:$0xff] %v1705_v40  ;;  %v1707_v63 = vadd.f32 %v1706_v12, %v1333_v35  ;;  %v1490_v24 = vpop.f32.mrf.mxu0 }
 0x2ed   :  { %v1710_v42 = vpop.f32.mrf.mxu1  ;;  %1950 = vst.msk [vmem:[%s5320_s6 + $0x58] sm:$0xff] %vm531_vm0, %v1487_v36  ;;  %v1491_v58 = vadd.f32 %v1490_v24, %v4340_v59 }
 0x2ee   :  { %2038 = vst.msk [vmem:[%s5320_s6 + $0x318] sm:$0xff] %vm531_vm0, %v1707_v63  ;;  %v1711_v57 = vadd.f32 %v1710_v42, %v1335_v18  ;;  %v1492_v44 = vpop.f32.mrf.mxu0 }
 0x2ef   :  { %v1712_v52 = vpop.f32.mrf.mxu1  ;;  %1951 = vst [vmem:[%s5320_s6 + $0x60] sm:$0xff] %v1491_v58  ;;  %v1493_v32 = vadd.f32 %v1492_v44, %v4340_v59  ;;  %v1339_v59 = vpop.xlane.xlu0 %1338 }
 0x2f0   :  { %v1713_v28 = vadd.f32 %v1712_v52, %v1335_v18  ;;  %2039 = vst [vmem:[%s5320_s6 + $0x320] sm:$0xff] %v1711_v57  ;;  %v1494_v16 = vpop.f32.mrf.mxu0 }
 0x2f1   :  { %v1714_v13 = vpop.f32.mrf.mxu1  ;;  %1952 = vst.msk [vmem:[%s5320_s6 + $0x68] sm:$0xff] %vm531_vm0, %v1493_v32  ;;  %v1495_v35 = vadd.f32 %v1494_v16, %v4342_v49 }
 0x2f2   :  { %v1715_v61 = vadd.f32 %v1714_v13, %v1337_v48  ;;  %2040 = vst.msk [vmem:[%s5320_s6 + $0x328] sm:$0xff] %vm531_vm0, %v1713_v28  ;;  %v1496_v56 = vpop.f32.mrf.mxu0 }
 0x2f3   :  { %v1716_v38 = vpop.f32.mrf.mxu1  ;;  %1953 = vst [vmem:[%s5320_s6 + $0x70] sm:$0xff] %v1495_v35  ;;  %v1497_v47 = vadd.f32 %v1496_v56, %v4342_v49  ;;  %v1341_v49 = vpop.xlane.xlu1 %1340 }
 0x2f4   :  { %2041 = vst [vmem:[%s5320_s6 + $0x330] sm:$0xff] %v1715_v61  ;;  %v1717_v9 = vadd.f32 %v1716_v38, %v1337_v48  ;;  %v1500_v23 = vpop.f32.mrf.mxu0 }
 0x2f5   :  { %v1720_v17 = vpop.f32.mrf.mxu1  ;;  %1954 = vst.msk [vmem:[%s5320_s6 + $0x78] sm:$0xff] %vm531_vm0, %v1497_v47  ;;  %v1501_v54 = vadd.f32 %v1500_v23, %v4354_v50 }
 0x2f6   :  { %2042 = vst.msk [vmem:[%s5320_s6 + $0x338] sm:$0xff] %vm531_vm0, %v1717_v9  ;;  %v1721_v40 = vadd.f32 %v1720_v17, %v1339_v59  ;;  %v1502_v18 = vpop.f32.mrf.mxu0 }
 0x2f7   :  { %v1722_v19 = vpop.f32.mrf.mxu1  ;;  %1955 = vst [vmem:[%s5320_s6 + $0x80] sm:$0xff] %v1501_v54  ;;  %v1503_v12 = vadd.f32 %v1502_v18, %v4354_v50  ;;  %v1343_v50 = vpop.xlane.xlu0 %1342 }
 0x2f8   :  { %v1723_v36 = vadd.f32 %v1722_v19, %v1339_v59  ;;  %2043 = vst [vmem:[%s5320_s6 + $0x340] sm:$0xff] %v1721_v40  ;;  %v1504_v63 = vpop.f32.mrf.mxu0 }
 0x2f9   :  { %v1724_v24 = vpop.f32.mrf.mxu1  ;;  %1956 = vst.msk [vmem:[%s5320_s6 + $0x88] sm:$0xff] %vm531_vm0, %v1503_v12  ;;  %v1505_v42 = vadd.f32 %v1504_v63, %v4358_v15 }
 0x2fa   :  { %v1725_v58 = vadd.f32 %v1724_v24, %v1341_v49  ;;  %2044 = vst.msk [vmem:[%s5320_s6 + $0x348] sm:$0xff] %vm531_vm0, %v1723_v36  ;;  %v1506_v48 = vpop.f32.mrf.mxu0 }
 0x2fb   :  { %v1726_v57 = vpop.f32.mrf.mxu1  ;;  %1957 = vst [vmem:[%s5320_s6 + $0x90] sm:$0xff] %v1505_v42  ;;  %v1507_v44 = vadd.f32 %v1506_v48, %v4358_v15  ;;  %v1345_v15 = vpop.xlane.xlu1 %1344 }
 0x2fc   :  { %2045 = vst [vmem:[%s5320_s6 + $0x350] sm:$0xff] %v1725_v58  ;;  %v1727_v52 = vadd.f32 %v1726_v57, %v1341_v49  ;;  %v1510_v32 = vpop.f32.mrf.mxu0 }
 0x2fd   :  { %v1730_v28 = vpop.f32.mrf.mxu1  ;;  %1958 = vst.msk [vmem:[%s5320_s6 + $0x98] sm:$0xff] %vm531_vm0, %v1507_v44  ;;  %v1511_v16 = vadd.f32 %v1510_v32, %v4368_v2 }
 0x2fe   :  { %2046 = vst.msk [vmem:[%s5320_s6 + $0x358] sm:$0xff] %vm531_vm0, %v1727_v52  ;;  %v1731_v13 = vadd.f32 %v1730_v28, %v1343_v50  ;;  %v1512_v35 = vpop.f32.mrf.mxu0 }
 0x2ff   :  { %v1732_v61 = vpop.f32.mrf.mxu1  ;;  %1959 = vst [vmem:[%s5320_s6 + $0xa0] sm:$0xff] %v1511_v16  ;;  %v1513_v59 = vadd.f32 %v1512_v35, %v4368_v2  ;;  %v1347_v2 = vpop.xlane.xlu0 %1346 }
 0x300   :  { %v1733_v56 = vadd.f32 %v1732_v61, %v1343_v50  ;;  %2047 = vst [vmem:[%s5320_s6 + $0x360] sm:$0xff] %v1731_v13  ;;  %v1514_v38 = vpop.f32.mrf.mxu0 }
 0x301   :  { %v1734_v47 = vpop.f32.mrf.mxu1  ;;  %1960 = vst.msk [vmem:[%s5320_s6 + $0xa8] sm:$0xff] %vm531_vm0, %v1513_v59  ;;  %v1515_v9 = vadd.f32 %v1514_v38, %v4372_v21 }
 0x302   :  { %v1735_v23 = vadd.f32 %v1734_v47, %v1345_v15  ;;  %2048 = vst.msk [vmem:[%s5320_s6 + $0x368] sm:$0xff] %vm531_vm0, %v1733_v56  ;;  %v1516_v17 = vpop.f32.mrf.mxu0 }
 0x303   :  { %v1736_v54 = vpop.f32.mrf.mxu1  ;;  %1961 = vst [vmem:[%s5320_s6 + $0xb0] sm:$0xff] %v1515_v9  ;;  %v1517_v49 = vadd.f32 %v1516_v17, %v4372_v21  ;;  %v1349_v21 = vpop.xlane.xlu1 %1348 }
 0x304   :  { %2049 = vst [vmem:[%s5320_s6 + $0x370] sm:$0xff] %v1735_v23  ;;  %v1737_v40 = vadd.f32 %v1736_v54, %v1345_v15  ;;  %v1520_v18 = vpop.f32.mrf.mxu0 }
 0x305   :  { %v1740_v19 = vpop.f32.mrf.mxu1  ;;  %1962 = vst.msk [vmem:[%s5320_s6 + $0xb8] sm:$0xff] %vm531_vm0, %v1517_v49  ;;  %v1521_v12 = vadd.f32 %v1520_v18, %v4376_v53 }
 0x306   :  { %2050 = vst.msk [vmem:[%s5320_s6 + $0x378] sm:$0xff] %vm531_vm0, %v1737_v40  ;;  %v1741_v36 = vadd.f32 %v1740_v19, %v1347_v2  ;;  %v1522_v63 = vpop.f32.mrf.mxu0 }
 0x307   :  { %v1742_v24 = vpop.f32.mrf.mxu1  ;;  %1963 = vst [vmem:[%s5320_s6 + $0xc0] sm:$0xff] %v1521_v12  ;;  %v1523_v42 = vadd.f32 %v1522_v63, %v4376_v53  ;;  %v1351_v53 = vpop.xlane.xlu0 %1350 }
 0x308   :  { %v1743_v58 = vadd.f32 %v1742_v24, %v1347_v2  ;;  %2051 = vst [vmem:[%s5320_s6 + $0x380] sm:$0xff] %v1741_v36  ;;  %v1524_v50 = vpop.f32.mrf.mxu0 }
 0x309   :  { %v1744_v48 = vpop.f32.mrf.mxu1  ;;  %1964 = vst.msk [vmem:[%s5320_s6 + $0xc8] sm:$0xff] %vm531_vm0, %v1523_v42  ;;  %v1525_v57 = vadd.f32 %v1524_v50, %v4388_v26 }
 0x30a   :  { %v1745_v44 = vadd.f32 %v1744_v48, %v1349_v21  ;;  %2052 = vst.msk [vmem:[%s5320_s6 + $0x388] sm:$0xff] %vm531_vm0, %v1743_v58  ;;  %v1526_v52 = vpop.f32.mrf.mxu0 }
 0x30b   :  { %v1746_v32 = vpop.f32.mrf.mxu1  ;;  %1965 = vst [vmem:[%s5320_s6 + $0xd0] sm:$0xff] %v1525_v57  ;;  %v1527_v28 = vadd.f32 %v1526_v52, %v4388_v26  ;;  %v1353_v26 = vpop.xlane.xlu1 %1352 }
 0x30c   :  { %2053 = vst [vmem:[%s5320_s6 + $0x390] sm:$0xff] %v1745_v44  ;;  %v1747_v16 = vadd.f32 %v1746_v32, %v1349_v21  ;;  %v1530_v15 = vpop.f32.mrf.mxu0 }
 0x30d   :  { %v1750_v13 = vpop.f32.mrf.mxu1  ;;  %1966 = vst.msk [vmem:[%s5320_s6 + $0xd8] sm:$0xff] %vm531_vm0, %v1527_v28  ;;  %v1531_v35 = vadd.f32 %v1530_v15, %v4392_v55 }
 0x30e   :  { %2054 = vst.msk [vmem:[%s5320_s6 + $0x398] sm:$0xff] %vm531_vm0, %v1747_v16  ;;  %v1751_v61 = vadd.f32 %v1750_v13, %v1351_v53  ;;  %v1532_v59 = vpop.f32.mrf.mxu0 }
 0x30f   :  { %v1752_v56 = vpop.f32.mrf.mxu1  ;;  %1967 = vst [vmem:[%s5320_s6 + $0xe0] sm:$0xff] %v1531_v35  ;;  %v1533_v38 = vadd.f32 %v1532_v59, %v4392_v55  ;;  %v1355_v55 = vpop.xlane.xlu0 %1354 }
 0x310   :  { %v1753_v47 = vadd.f32 %v1752_v56, %v1351_v53  ;;  %2055 = vst [vmem:[%s5320_s6 + $0x3a0] sm:$0xff] %v1751_v61  ;;  %v1534_v9 = vpop.f32.mrf.mxu0 }
 0x311   :  { %v1754_v23 = vpop.f32.mrf.mxu1  ;;  %1968 = vst.msk [vmem:[%s5320_s6 + $0xe8] sm:$0xff] %vm531_vm0, %v1533_v38  ;;  %v1535_v2 = vadd.f32 %v1534_v9, %v4394_v0 }
 0x312   :  { %v1755_v17 = vadd.f32 %v1754_v23, %v1353_v26  ;;  %2056 = vst.msk [vmem:[%s5320_s6 + $0x3a8] sm:$0xff] %vm531_vm0, %v1753_v47  ;;  %v1536_v54 = vpop.f32.mrf.mxu0 }
 0x313   :  { %v1756_v49 = vpop.f32.mrf.mxu1  ;;  %1969 = vst [vmem:[%s5320_s6 + $0xf0] sm:$0xff] %v1535_v2  ;;  %v1537_v40 = vadd.f32 %v1536_v54, %v4394_v0  ;;  %v1357_v0 = vpop.xlane.xlu1 %1356 }
 0x314   :  { %2057 = vst [vmem:[%s5320_s6 + $0x3b0] sm:$0xff] %v1755_v17  ;;  %v1757_v18 = vadd.f32 %v1756_v49, %v1353_v26  ;;  %v1540_v19 = vpop.f32.mrf.mxu0 }
 0x315   :  { %v1760_v12 = vpop.f32.mrf.mxu1  ;;  %1970 = vst.msk [vmem:[%s5320_s6 + $0xf8] sm:$0xff] %vm531_vm0, %v1537_v40  ;;  %v1541_v21 = vadd.f32 %v1540_v19, %v4406_v46 }
 0x316   :  { %2058 = vst.msk [vmem:[%s5320_s6 + $0x3b8] sm:$0xff] %vm531_vm0, %v1757_v18  ;;  %v1761_v36 = vadd.f32 %v1760_v12, %v1355_v55  ;;  %v1542_v63 = vpop.f32.mrf.mxu0 }
 0x317   :  { %v1762_v24 = vpop.f32.mrf.mxu1  ;;  %1971 = vst [vmem:[%s5320_s6 + $0x100] sm:$0xff] %v1541_v21  ;;  %v1543_v42 = vadd.f32 %v1542_v63, %v4406_v46  ;;  %v1359_v46 = vpop.xlane.xlu0 %1358 }
 0x318   :  { %v1763_v58 = vadd.f32 %v1762_v24, %v1355_v55  ;;  %2059 = vst [vmem:[%s5320_s6 + $0x3c0] sm:$0xff] %v1761_v36  ;;  %v1544_v50 = vpop.f32.mrf.mxu0 }
 0x319   :  { %v1764_v48 = vpop.f32.mrf.mxu1  ;;  %1972 = vst.msk [vmem:[%s5320_s6 + $0x108] sm:$0xff] %vm531_vm0, %v1543_v42  ;;  %v1545_v57 = vadd.f32 %v1544_v50, %v4410_v10 }
 0x31a   :  { %v1765_v44 = vadd.f32 %v1764_v48, %v1357_v0  ;;  %2060 = vst.msk [vmem:[%s5320_s6 + $0x3c8] sm:$0xff] %vm531_vm0, %v1763_v58  ;;  %v1546_v53 = vpop.f32.mrf.mxu0 }
 0x31b   :  { %v1766_v52 = vpop.f32.mrf.mxu1  ;;  %1973 = vst [vmem:[%s5320_s6 + $0x110] sm:$0xff] %v1545_v57  ;;  %v1547_v32 = vadd.f32 %v1546_v53, %v4410_v10  ;;  %v1361_v10 = vpop.xlane.xlu1 %1360 }
 0x31c   :  { %2061 = vst [vmem:[%s5320_s6 + $0x3d0] sm:$0xff] %v1765_v44  ;;  %v1767_v28 = vadd.f32 %v1766_v52, %v1357_v0  ;;  %v1550_v16 = vpop.f32.mrf.mxu0 }
 0x31d   :  { %v1770_v15 = vpop.f32.mrf.mxu1  ;;  %1974 = vst.msk [vmem:[%s5320_s6 + $0x118] sm:$0xff] %vm531_vm0, %v1547_v32  ;;  %v1551_v13 = vadd.f32 %v1550_v16, %v4420_v27 }
 0x31e   :  { %2062 = vst.msk [vmem:[%s5320_s6 + $0x3d8] sm:$0xff] %vm531_vm0, %v1767_v28  ;;  %v1771_v35 = vadd.f32 %v1770_v15, %v1359_v46  ;;  %v1552_v26 = vpop.f32.mrf.mxu0 }
 0x31f   :  { %v1772_v61 = vpop.f32.mrf.mxu1  ;;  %1975 = vst [vmem:[%s5320_s6 + $0x120] sm:$0xff] %v1551_v13  ;;  %v1553_v59 = vadd.f32 %v1552_v26, %v4420_v27  ;;  %v1363_v27 = vpop.xlane.xlu0 %1362 }
 0x320   :  { %v1773_v56 = vadd.f32 %v1772_v61, %v1359_v46  ;;  %2063 = vst [vmem:[%s5320_s6 + $0x3e0] sm:$0xff] %v1771_v35  ;;  %v1554_v38 = vpop.f32.mrf.mxu0 }
 0x321   :  { %v1774_v47 = vpop.f32.mrf.mxu1  ;;  %1976 = vst.msk [vmem:[%s5320_s6 + $0x128] sm:$0xff] %vm531_vm0, %v1553_v59  ;;  %v1555_v9 = vadd.f32 %v1554_v38, %v4424_v60 }
 0x322   :  { %v1775_v23 = vadd.f32 %v1774_v47, %v1361_v10  ;;  %2064 = vst.msk [vmem:[%s5320_s6 + $0x3e8] sm:$0xff] %vm531_vm0, %v1773_v56  ;;  %v1556_v2 = vpop.f32.mrf.mxu0 }
 0x323   :  { %v1776_v17 = vpop.f32.mrf.mxu1  ;;  %1977 = vst [vmem:[%s5320_s6 + $0x130] sm:$0xff] %v1555_v9  ;;  %v1557_v55 = vadd.f32 %v1556_v2, %v4424_v60  ;;  %v1365_v60 = vpop.xlane.xlu1 %1364 }
 0x324   :  { %2065 = vst [vmem:[%s5320_s6 + $0x3f0] sm:$0xff] %v1775_v23  ;;  %v1777_v54 = vadd.f32 %v1776_v17, %v1361_v10  ;;  %v1560_v49 = vpop.f32.mrf.mxu0 }
 0x325   :  { %v1780_v40 = vpop.f32.mrf.mxu1  ;;  %1978 = vst.msk [vmem:[%s5320_s6 + $0x138] sm:$0xff] %vm531_vm0, %v1557_v55  ;;  %v1561_v18 = vadd.f32 %v1560_v49, %v4428_v29 }
 0x326   :  { %2066 = vst.msk [vmem:[%s5320_s6 + $0x3f8] sm:$0xff] %vm531_vm0, %v1777_v54  ;;  %v1781_v19 = vadd.f32 %v1780_v40, %v1363_v27  ;;  %v1562_v12 = vpop.f32.mrf.mxu0 }
 0x327   :  { %v1782_v21 = vpop.f32.mrf.mxu1  ;;  %1979 = vst [vmem:[%s5320_s6 + $0x140] sm:$0xff] %v1561_v18  ;;  %v1563_v0 = vadd.f32 %v1562_v12, %v4428_v29  ;;  %v1367_v29 = vpop.xlane.xlu0 %1366 }
 0x328   :  { %v1783_v36 = vadd.f32 %v1782_v21, %v1363_v27  ;;  %2067 = vst [vmem:[%s5320_s6 + $0x400] sm:$0xff] %v1781_v19  ;;  %v1564_v63 = vpop.f32.mrf.mxu0 }
 0x329   :  { %v1784_v24 = vpop.f32.mrf.mxu1  ;;  %1980 = vst.msk [vmem:[%s5320_s6 + $0x148] sm:$0xff] %vm531_vm0, %v1563_v0  ;;  %v1565_v42 = vadd.f32 %v1564_v63, %v4440_v34 }
 0x32a   :  { %v1785_v58 = vadd.f32 %v1784_v24, %v1365_v60  ;;  %2068 = vst.msk [vmem:[%s5320_s6 + $0x408] sm:$0xff] %vm531_vm0, %v1783_v36  ;;  %v1566_v50 = vpop.f32.mrf.mxu0 }
 0x32b   :  { %v1786_v48 = vpop.f32.mrf.mxu1  ;;  %1981 = vst [vmem:[%s5320_s6 + $0x150] sm:$0xff] %v1565_v42  ;;  %v1567_v57 = vadd.f32 %v1566_v50, %v4440_v34  ;;  %v1369_v34 = vpop.xlane.xlu1 %1368 }
 0x32c   :  { %2069 = vst [vmem:[%s5320_s6 + $0x410] sm:$0xff] %v1785_v58  ;;  %v1787_v44 = vadd.f32 %v1786_v48, %v1365_v60  ;;  %v1570_v46 = vpop.f32.mrf.mxu0 }
 0x32d   :  { %v1790_v53 = vpop.f32.mrf.mxu1  ;;  %1982 = vst.msk [vmem:[%s5320_s6 + $0x158] sm:$0xff] %vm531_vm0, %v1567_v57  ;;  %v1571_v52 = vadd.f32 %v1570_v46, %v4444_v41 }
 0x32e   :  { %2070 = vst.msk [vmem:[%s5320_s6 + $0x418] sm:$0xff] %vm531_vm0, %v1787_v44  ;;  %v1791_v32 = vadd.f32 %v1790_v53, %v1367_v29  ;;  %v1572_v28 = vpop.f32.mrf.mxu0 }
 0x32f   :  { %v1792_v16 = vpop.f32.mrf.mxu1  ;;  %1983 = vst [vmem:[%s5320_s6 + $0x160] sm:$0xff] %v1571_v52  ;;  %v1573_v15 = vadd.f32 %v1572_v28, %v4444_v41  ;;  %v1371_v41 = vpop.xlane.xlu0 %1370 }
 0x330   :  { %v1793_v13 = vadd.f32 %v1792_v16, %v1367_v29  ;;  %2071 = vst [vmem:[%s5320_s6 + $0x420] sm:$0xff] %v1791_v32  ;;  %v1574_v10 = vpop.f32.mrf.mxu0 }
 0x331   :  { %v1794_v35 = vpop.f32.mrf.mxu1  ;;  %1984 = vst.msk [vmem:[%s5320_s6 + $0x168] sm:$0xff] %vm531_vm0, %v1573_v15  ;;  %v1575_v26 = vadd.f32 %v1574_v10, %v4446_v20 }
 0x332   :  { %v1795_v61 = vadd.f32 %v1794_v35, %v1369_v34  ;;  %2072 = vst.msk [vmem:[%s5320_s6 + $0x428] sm:$0xff] %vm531_vm0, %v1793_v13  ;;  %v1576_v59 = vpop.f32.mrf.mxu0 }
 0x333   :  { %v1796_v56 = vpop.f32.mrf.mxu1  ;;  %1985 = vst [vmem:[%s5320_s6 + $0x170] sm:$0xff] %v1575_v26  ;;  %v1577_v38 = vadd.f32 %v1576_v59, %v4446_v20  ;;  %v1373_v20 = vpop.xlane.xlu1 %1372 }
 0x334   :  { %2073 = vst [vmem:[%s5320_s6 + $0x430] sm:$0xff] %v1795_v61  ;;  %v1797_v47 = vadd.f32 %v1796_v56, %v1369_v34  ;;  %v1580_v9 = vpop.f32.mrf.mxu0 }
 0x335   :  { %v1800_v23 = vpop.f32.mrf.mxu1  ;;  %1986 = vst.msk [vmem:[%s5320_s6 + $0x178] sm:$0xff] %vm531_vm0, %v1577_v38  ;;  %v1581_v27 = vadd.f32 %v1580_v9, %v4458_v7 }
 0x336   :  { %2074 = vst.msk [vmem:[%s5320_s6 + $0x438] sm:$0xff] %vm531_vm0, %v1797_v47  ;;  %v1801_v2 = vadd.f32 %v1800_v23, %v1371_v41  ;;  %v1582_v17 = vpop.f32.mrf.mxu0 }
 0x337   :  { %v1802_v55 = vpop.f32.mrf.mxu1  ;;  %1987 = vst [vmem:[%s5320_s6 + $0x180] sm:$0xff] %v1581_v27  ;;  %v1583_v54 = vadd.f32 %v1582_v17, %v4458_v7  ;;  %v1375_v7 = vpop.xlane.xlu0 %1374 }
 0x338   :  { %v1803_v49 = vadd.f32 %v1802_v55, %v1371_v41  ;;  %2075 = vst [vmem:[%s5320_s6 + $0x440] sm:$0xff] %v1801_v2  ;;  %v1584_v40 = vpop.f32.mrf.mxu0 }
 0x339   :  { %v1804_v18 = vpop.f32.mrf.mxu1  ;;  %1988 = vst.msk [vmem:[%s5320_s6 + $0x188] sm:$0xff] %vm531_vm0, %v1583_v54  ;;  %v1585_v60 = vadd.f32 %v1584_v40, %v4462_v31 }
 0x33a   :  { %v1805_v19 = vadd.f32 %v1804_v18, %v1373_v20  ;;  %2076 = vst.msk [vmem:[%s5320_s6 + $0x448] sm:$0xff] %vm531_vm0, %v1803_v49  ;;  %v1586_v12 = vpop.f32.mrf.mxu0 }
 0x33b   :  { %v1806_v21 = vpop.f32.mrf.mxu1  ;;  %1989 = vst [vmem:[%s5320_s6 + $0x190] sm:$0xff] %v1585_v60  ;;  %v1587_v0 = vadd.f32 %v1586_v12, %v4462_v31  ;;  %v1377_v31 = vpop.xlane.xlu1 %1376 }
 0x33c   :  { %2077 = vst [vmem:[%s5320_s6 + $0x450] sm:$0xff] %v1805_v19  ;;  %v1807_v36 = vadd.f32 %v1806_v21, %v1373_v20  ;;  %v1590_v63 = vpop.f32.mrf.mxu0 }
 0x33d   :  { %v1810_v24 = vpop.f32.mrf.mxu1  ;;  %1990 = vst.msk [vmem:[%s5320_s6 + $0x198] sm:$0xff] %vm531_vm0, %v1587_v0  ;;  %v1591_v42 = vadd.f32 %v1590_v63, %v4470_v11 }
 0x33e   :  { %2078 = vst.msk [vmem:[%s5320_s6 + $0x458] sm:$0xff] %vm531_vm0, %v1807_v36  ;;  %v1811_v58 = vadd.f32 %v1810_v24, %v1375_v7  ;;  %v1592_v29 = vpop.f32.mrf.mxu0 }
 0x33f   :  { %v1812_v50 = vpop.f32.mrf.mxu1  ;;  %1991 = vst [vmem:[%s5320_s6 + $0x1a0] sm:$0xff] %v1591_v42  ;;  %v1593_v48 = vadd.f32 %v1592_v29, %v4470_v11  ;;  %v1379_v11 = vpop.xlane.xlu0 %1378 }
 0x340   :  { %v1813_v57 = vadd.f32 %v1812_v50, %v1375_v7  ;;  %2079 = vst [vmem:[%s5320_s6 + $0x460] sm:$0xff] %v1811_v58  ;;  %v1594_v44 = vpop.f32.mrf.mxu0 }
 0x341   :  { %v1814_v46 = vpop.f32.mrf.mxu1  ;;  %1992 = vst.msk [vmem:[%s5320_s6 + $0x1a8] sm:$0xff] %vm531_vm0, %v1593_v48  ;;  %v1595_v53 = vadd.f32 %v1594_v44, %v4474_v22 }
 0x342   :  { %v1815_v52 = vadd.f32 %v1814_v46, %v1377_v31  ;;  %2080 = vst.msk [vmem:[%s5320_s6 + $0x468] sm:$0xff] %vm531_vm0, %v1813_v57  ;;  %v1596_v34 = vpop.f32.mrf.mxu0 }
 0x343   :  { %v1816_v32 = vpop.f32.mrf.mxu1  ;;  %1993 = vst [vmem:[%s5320_s6 + $0x1b0] sm:$0xff] %v1595_v53  ;;  %v1597_v28 = vadd.f32 %v1596_v34, %v4474_v22  ;;  %v1381_v22 = vpop.xlane.xlu1 %1380 }
 0x344   :  { %2081 = vst [vmem:[%s5320_s6 + $0x470] sm:$0xff] %v1815_v52  ;;  %v1817_v16 = vadd.f32 %v1816_v32, %v1377_v31  ;;  %v1600_v15 = vpop.f32.mrf.mxu0 }
 0x345   :  { %v1820_v13 = vpop.f32.mrf.mxu1  ;;  %1994 = vst.msk [vmem:[%s5320_s6 + $0x1b8] sm:$0xff] %vm531_vm0, %v1597_v28  ;;  %v1601_v10 = vadd.f32 %v1600_v15, %v4476_v43 }
 0x346   :  { %2082 = vst.msk [vmem:[%s5320_s6 + $0x478] sm:$0xff] %vm531_vm0, %v1817_v16  ;;  %v1821_v35 = vadd.f32 %v1820_v13, %v1379_v11  ;;  %v1602_v26 = vpop.f32.mrf.mxu0 }
 0x347   :  { %v1822_v61 = vpop.f32.mrf.mxu1  ;;  %1995 = vst [vmem:[%s5320_s6 + $0x1c0] sm:$0xff] %v1601_v10  ;;  %v1603_v41 = vadd.f32 %v1602_v26, %v4476_v43  ;;  %v1383_v43 = vpop.xlane.xlu0 %1382 }
 0x348   :  { %v1823_v59 = vadd.f32 %v1822_v61, %v1379_v11  ;;  %2083 = vst [vmem:[%s5320_s6 + $0x480] sm:$0xff] %v1821_v35  ;;  %v1604_v56 = vpop.f32.mrf.mxu0 }
 0x349   :  { %v1824_v38 = vpop.f32.mrf.mxu1  ;;  %1996 = vst.msk [vmem:[%s5320_s6 + $0x1c8] sm:$0xff] %vm531_vm0, %v1603_v41  ;;  %v1605_v47 = vadd.f32 %v1604_v56, %v4486_v6 }
 0x34a   :  { %v1825_v9 = vadd.f32 %v1824_v38, %v1381_v22  ;;  %2084 = vst.msk [vmem:[%s5320_s6 + $0x488] sm:$0xff] %vm531_vm0, %v1823_v59  ;;  %v1606_v23 = vpop.f32.mrf.mxu0 }
 0x34b   :  { %v1826_v27 = vpop.f32.mrf.mxu1  ;;  %1997 = vst [vmem:[%s5320_s6 + $0x1d0] sm:$0xff] %v1605_v47  ;;  %v1607_v20 = vadd.f32 %v1606_v23, %v4486_v6  ;;  %v1385_v6 = vpop.xlane.xlu1 %1384 }
 0x34c   :  { %2085 = vst [vmem:[%s5320_s6 + $0x490] sm:$0xff] %v1825_v9  ;;  %v1827_v2 = vadd.f32 %v1826_v27, %v1381_v22  ;;  %v1610_v17 = vpop.f32.mrf.mxu0 }
 0x34d   :  { %v1830_v55 = vpop.f32.mrf.mxu1  ;;  %1998 = vst.msk [vmem:[%s5320_s6 + $0x1d8] sm:$0xff] %vm531_vm0, %v1607_v20  ;;  %v1611_v54 = vadd.f32 %v1610_v17, %v4488_v37 }
 0x34e   :  { %2086 = vst.msk [vmem:[%s5320_s6 + $0x498] sm:$0xff] %vm531_vm0, %v1827_v2  ;;  %v1831_v49 = vadd.f32 %v1830_v55, %v1383_v43  ;;  %v1612_v40 = vpop.f32.mrf.mxu0 }
 0x34f   :  { %v1832_v18 = vpop.f32.mrf.mxu1  ;;  %1999 = vst [vmem:[%s5320_s6 + $0x1e0] sm:$0xff] %v1611_v54  ;;  %v1613_v60 = vadd.f32 %v1612_v40, %v4488_v37  ;;  %v1387_v37 = vpop.xlane.xlu0 %1386 }
 0x350   :  { %v1833_v19 = vadd.f32 %v1832_v18, %v1383_v43  ;;  %2087 = vst [vmem:[%s5320_s6 + $0x4a0] sm:$0xff] %v1831_v49  ;;  %v1614_v7 = vpop.f32.mrf.mxu0 }
 0x351   :  { %v1834_v12 = vpop.f32.mrf.mxu1  ;;  %2000 = vst.msk [vmem:[%s5320_s6 + $0x1e8] sm:$0xff] %vm531_vm0, %v1613_v60  ;;  %v1615_v21 = vadd.f32 %v1614_v7, %v4490_v4 }
 0x352   :  { %v1835_v0 = vadd.f32 %v1834_v12, %v1385_v6  ;;  %2088 = vst.msk [vmem:[%s5320_s6 + $0x4a8] sm:$0xff] %vm531_vm0, %v1833_v19  ;;  %v1616_v36 = vpop.f32.mrf.mxu0 }
 0x353   :  { %v1836_v63 = vpop.f32.mrf.mxu1  ;;  %2001 = vst [vmem:[%s5320_s6 + $0x1f0] sm:$0xff] %v1615_v21  ;;  %v1617_v24 = vadd.f32 %v1616_v36, %v4490_v4  ;;  %v1389_v4 = vpop.xlane.xlu1 %1388 }
 0x354   :  { %2089 = vst [vmem:[%s5320_s6 + $0x4b0] sm:$0xff] %v1835_v0  ;;  %v1837_v42 = vadd.f32 %v1836_v63, %v1385_v6  ;;  %v1620_v31 = vpop.f32.mrf.mxu0 }
 0x355   :  { %v1840_v58 = vpop.f32.mrf.mxu1  ;;  %2002 = vst.msk [vmem:[%s5320_s6 + $0x1f8] sm:$0xff] %vm531_vm0, %v1617_v24  ;;  %v1621_v29 = vadd.f32 %v1620_v31, %v4500_v1 }
 0x356   :  { %2090 = vst.msk [vmem:[%s5320_s6 + $0x4b8] sm:$0xff] %vm531_vm0, %v1837_v42  ;;  %v1841_v50 = vadd.f32 %v1840_v58, %v1387_v37  ;;  %v1622_v48 = vpop.f32.mrf.mxu0 }
 0x357   :  { %v1842_v57 = vpop.f32.mrf.mxu1  ;;  %2003 = vst [vmem:[%s5320_s6 + $0x200] sm:$0xff] %v1621_v29  ;;  %v1623_v44 = vadd.f32 %v1622_v48, %v4500_v1  ;;  %v1391_v1 = vpop.xlane.xlu0 %1390 }
 0x358   :  { %v1843_v46 = vadd.f32 %v1842_v57, %v1387_v37  ;;  %2091 = vst [vmem:[%s5320_s6 + $0x4c0] sm:$0xff] %v1841_v50  ;;  %v1624_v53 = vpop.f32.mrf.mxu0 }
 0x359   :  { %v1844_v52 = vpop.f32.mrf.mxu1  ;;  %2004 = vst.msk [vmem:[%s5320_s6 + $0x208] sm:$0xff] %vm531_vm0, %v1623_v44  ;;  %v1625_v11 = vadd.f32 %v1624_v53, %v4502_v30 }
 0x35a   :  { %v1845_v34 = vadd.f32 %v1844_v52, %v1389_v4  ;;  %2092 = vst.msk [vmem:[%s5320_s6 + $0x4c8] sm:$0xff] %vm531_vm0, %v1843_v46  ;;  %v1626_v32 = vpop.f32.mrf.mxu0 }
 0x35b   :  { %v1846_v28 = vpop.f32.mrf.mxu1  ;;  %2005 = vst [vmem:[%s5320_s6 + $0x210] sm:$0xff] %v1625_v11  ;;  %v1627_v16 = vadd.f32 %v1626_v32, %v4502_v30  ;;  %v1393_v30 = vpop.xlane.xlu1 %1392 }
 0x35c   :  { %2093 = vst [vmem:[%s5320_s6 + $0x4d0] sm:$0xff] %v1845_v34  ;;  %v1847_v15 = vadd.f32 %v1846_v28, %v1389_v4  ;;  %v1630_v13 = vpop.f32.mrf.mxu0 }
 0x35d   :  { %v1850_v10 = vpop.f32.mrf.mxu1  ;;  %2006 = vst.msk [vmem:[%s5320_s6 + $0x218] sm:$0xff] %vm531_vm0, %v1627_v16  ;;  %v1631_v22 = vadd.f32 %v1630_v13, %v4510_v25 }
 0x35e   :  { %2094 = vst.msk [vmem:[%s5320_s6 + $0x4d8] sm:$0xff] %vm531_vm0, %v1847_v15  ;;  %v1851_v35 = vadd.f32 %v1850_v10, %v1391_v1  ;;  %v1632_v26 = vpop.f32.mrf.mxu0 }
 0x35f   :  { %v1852_v61 = vpop.f32.mrf.mxu1  ;;  %2007 = vst [vmem:[%s5320_s6 + $0x220] sm:$0xff] %v1631_v22  ;;  %v1633_v41 = vadd.f32 %v1632_v26, %v4510_v25  ;;  %v1395_v25 = vpop.xlane.xlu0 %1394 }
 0x360   :  { %v1853_v59 = vadd.f32 %v1852_v61, %v1391_v1  ;;  %2095 = vst [vmem:[%s5320_s6 + $0x4e0] sm:$0xff] %v1851_v35  ;;  %v1634_v56 = vpop.f32.mrf.mxu0 }
 0x361   :  { %v1854_v38 = vpop.f32.mrf.mxu1  ;;  %2008 = vst.msk [vmem:[%s5320_s6 + $0x228] sm:$0xff] %vm531_vm0, %v1633_v41  ;;  %v1635_v47 = vadd.f32 %v1634_v56, %v4514_v8 }
 0x362   :  { %v1855_v9 = vadd.f32 %v1854_v38, %v1393_v30  ;;  %2096 = vst.msk [vmem:[%s5320_s6 + $0x4e8] sm:$0xff] %vm531_vm0, %v1853_v59  ;;  %v1636_v43 = vpop.f32.mrf.mxu0 }
 0x363   :  { %v1856_v23 = vpop.f32.mrf.mxu1  ;;  %2009 = vst [vmem:[%s5320_s6 + $0x230] sm:$0xff] %v1635_v47  ;;  %v1637_v27 = vadd.f32 %v1636_v43, %v4514_v8  ;;  %v1397_v8 = vpop.xlane.xlu1 %1396 }
 0x364   :  { %2097 = vst [vmem:[%s5320_s6 + $0x4f0] sm:$0xff] %v1855_v9  ;;  %v1857_v20 = vadd.f32 %v1856_v23, %v1393_v30  ;;  %v1640_v2 = vpop.f32.mrf.mxu0 }
 0x365   :  { %v1860_v17 = vpop.f32.mrf.mxu1  ;;  %2010 = vst.msk [vmem:[%s5320_s6 + $0x238] sm:$0xff] %vm531_vm0, %v1637_v27  ;;  %v1641_v55 = vadd.f32 %v1640_v2, %v4516_v33 }
 0x366   :  { %2098 = vst.msk [vmem:[%s5320_s6 + $0x4f8] sm:$0xff] %vm531_vm0, %v1857_v20  ;;  %v1861_v54 = vadd.f32 %v1860_v17, %v1395_v25  ;;  %v1642_v6 = vpop.f32.mrf.mxu0 }
 0x367   :  { %v1862_v49 = vpop.f32.mrf.mxu1  ;;  %2011 = vst [vmem:[%s5320_s6 + $0x240] sm:$0xff] %v1641_v55  ;;  %v1643_v40 = vadd.f32 %v1642_v6, %v4516_v33  ;;  %v1399_v33 = vpop.xlane.xlu0 %1398 }
 0x368   :  { %v1863_v18 = vadd.f32 %v1862_v49, %v1395_v25  ;;  %2099 = vst [vmem:[%s5320_s6 + $0x500] sm:$0xff] %v1861_v54  ;;  %v1644_v60 = vpop.f32.mrf.mxu0 }
 0x369   :  { %v1864_v19 = vpop.f32.mrf.mxu1  ;;  %2012 = vst.msk [vmem:[%s5320_s6 + $0x248] sm:$0xff] %vm531_vm0, %v1643_v40  ;;  %v1645_v7 = vadd.f32 %v1644_v60, %v4525_v45 }
 0x36a   :  { %v1865_v12 = vadd.f32 %v1864_v19, %v1397_v8  ;;  %2100 = vst.msk [vmem:[%s5320_s6 + $0x508] sm:$0xff] %vm531_vm0, %v1863_v18  ;;  %v1646_v21 = vpop.f32.mrf.mxu0 }
 0x36b   :  { %v1866_v0 = vpop.f32.mrf.mxu1  ;;  %2013 = vst [vmem:[%s5320_s6 + $0x250] sm:$0xff] %v1645_v7  ;;  %v1647_v37 = vadd.f32 %v1646_v21, %v4525_v45  ;;  %v1401_v45 = vpop.xlane.xlu1 %1400 }
 0x36c   :  { %2101 = vst [vmem:[%s5320_s6 + $0x510] sm:$0xff] %v1865_v12  ;;  %v1867_v36 = vadd.f32 %v1866_v0, %v1397_v8  ;;  %v1650_v63 = vpop.f32.mrf.mxu0 }
 0x36d   :  { %v1870_v24 = vpop.f32.mrf.mxu1  ;;  %2014 = vst.msk [vmem:[%s5320_s6 + $0x258] sm:$0xff] %vm531_vm0, %v1647_v37  ;;  %v1651_v42 = vadd.f32 %v1650_v63, %v4527_v39 }
 0x36e   :  { %2102 = vst.msk [vmem:[%s5320_s6 + $0x518] sm:$0xff] %vm531_vm0, %v1867_v36  ;;  %v1871_v31 = vadd.f32 %v1870_v24, %v1399_v33  ;;  %v1652_v58 = vpop.f32.mrf.mxu0 }
 0x36f   :  { %v1872_v29 = vpop.f32.mrf.mxu1  ;;  %2015 = vst [vmem:[%s5320_s6 + $0x260] sm:$0xff] %v1651_v42  ;;  %v1653_v4 = vadd.f32 %v1652_v58, %v4527_v39  ;;  %v1403_v39 = vpop.xlane.xlu0 %1402 }
 0x370   :  { %v1873_v50 = vadd.f32 %v1872_v29, %v1399_v33  ;;  %2103 = vst [vmem:[%s5320_s6 + $0x520] sm:$0xff] %v1871_v31  ;;  %v1654_v48 = vpop.f32.mrf.mxu0 }
 0x371   :  { %v1874_v57 = vpop.f32.mrf.mxu1  ;;  %2016 = vst.msk [vmem:[%s5320_s6 + $0x268] sm:$0xff] %vm531_vm0, %v1653_v4  ;;  %v1655_v44 = vadd.f32 %v1654_v48, %v4529_v62 }
 0x372   :  { %v1875_v46 = vadd.f32 %v1874_v57, %v1401_v45  ;;  %2104 = vst.msk [vmem:[%s5320_s6 + $0x528] sm:$0xff] %vm531_vm0, %v1873_v50  ;;  %v1656_v53 = vpop.f32.mrf.mxu0 }
 0x373   :  { %v1876_v52 = vpop.f32.mrf.mxu1  ;;  %2017 = vst [vmem:[%s5320_s6 + $0x270] sm:$0xff] %v1655_v44  ;;  %v1657_v11 = vadd.f32 %v1656_v53, %v4529_v62  ;;  %v1405_v62 = vpop.xlane.xlu1 %1404 }
 0x374   :  { %2105 = vst [vmem:[%s5320_s6 + $0x530] sm:$0xff] %v1875_v46  ;;  %v1877_v34 = vadd.f32 %v1876_v52, %v1401_v45  ;;  %v1660_v1 = vpop.f32.mrf.mxu0 }
 0x375   :  { %v1880_v32 = vpop.f32.mrf.mxu1  ;;  %2018 = vst.msk [vmem:[%s5320_s6 + $0x278] sm:$0xff] %vm531_vm0, %v1657_v11  ;;  %v1661_v28 = vadd.f32 %v1660_v1, %v4535_v3 }
 0x376   :  { %2106 = vst.msk [vmem:[%s5320_s6 + $0x538] sm:$0xff] %vm531_vm0, %v1877_v34  ;;  %v1881_v16 = vadd.f32 %v1880_v32, %v1403_v39  ;;  %v1662_v15 = vpop.f32.mrf.mxu0 }
 0x377   :  { %v1882_v13 = vpop.f32.mrf.mxu1  ;;  %2019 = vst [vmem:[%s5320_s6 + $0x280] sm:$0xff] %v1661_v28  ;;  %v1663_v10 = vadd.f32 %v1662_v15, %v4535_v3  ;;  %v1407_v3 = vpop.xlane.xlu0 %1406 }
 0x378   :  { %v1883_v22 = vadd.f32 %v1882_v13, %v1403_v39  ;;  %2107 = vst [vmem:[%s5320_s6 + $0x540] sm:$0xff] %v1881_v16  ;;  %v1664_v30 = vpop.f32.mrf.mxu0 }
 0x379   :  { %v1884_v35 = vpop.f32.mrf.mxu1  ;;  %2020 = vst.msk [vmem:[%s5320_s6 + $0x288] sm:$0xff] %vm531_vm0, %v1663_v10  ;;  %v1665_v26 = vadd.f32 %v1664_v30, %v4537_v14 }
 0x37a   :  { %v1885_v61 = vadd.f32 %v1884_v35, %v1405_v62  ;;  %2108 = vst.msk [vmem:[%s5320_s6 + $0x548] sm:$0xff] %vm531_vm0, %v1883_v22  ;;  %v1666_v41 = vpop.f32.mrf.mxu0 }
 0x37b   :  { %v1886_v59 = vpop.f32.mrf.mxu1  ;;  %2021 = vst [vmem:[%s5320_s6 + $0x290] sm:$0xff] %v1665_v26  ;;  %v1667_v56 = vadd.f32 %v1666_v41, %v4537_v14  ;;  %v1409_v14 = vpop.xlane.xlu1 %1408 }
 0x37c   :  { %2109 = vst [vmem:[%s5320_s6 + $0x550] sm:$0xff] %v1885_v61  ;;  %v1887_v38 = vadd.f32 %v1886_v59, %v1405_v62  ;;  %v1670_v47 = vpop.f32.mrf.mxu0 }
 0x37d   :  { %v1890_v9 = vpop.f32.mrf.mxu1  ;;  %2022 = vst.msk [vmem:[%s5320_s6 + $0x298] sm:$0xff] %vm531_vm0, %v1667_v56  ;;  %v1671_v25 = vadd.f32 %v1670_v47, %v4542_v5 }
 0x37e   :  { %2110 = vst.msk [vmem:[%s5320_s6 + $0x558] sm:$0xff] %vm531_vm0, %v1887_v38  ;;  %v1891_v43 = vadd.f32 %v1890_v9, %v1407_v3  ;;  %v1672_v23 = vpop.f32.mrf.mxu0 }
 0x37f   :  { %v1892_v27 = vpop.f32.mrf.mxu1  ;;  %2023 = vst [vmem:[%s5320_s6 + $0x2a0] sm:$0xff] %v1671_v25  ;;  %v1673_v20 = vadd.f32 %v1672_v23, %v4542_v5  ;;  %v1411_v5 = vpop.xlane.xlu0 %1410 }
 0x380   :  { %v1893_v2 = vadd.f32 %v1892_v27, %v1407_v3  ;;  %2111 = vst [vmem:[%s5320_s6 + $0x560] sm:$0xff] %v1891_v43  ;;  %v1674_v17 = vpop.f32.mrf.mxu0  ;;  %v1413_v12 = vpop.xlane.xlu1 %1412 }
 0x381   :  { %v1894_v55 = vpop.f32.mrf.mxu1  ;;  %2024 = vst.msk [vmem:[%s5320_s6 + $0x2a8] sm:$0xff] %vm531_vm0, %v1673_v20  ;;  %v1675_v8 = vadd.f32 %v1674_v17, %v4545_v51 }
 0x382   :  { %v1895_v54 = vadd.f32 %v1894_v55, %v1409_v14  ;;  %2112 = vst.msk [vmem:[%s5320_s6 + $0x568] sm:$0xff] %vm531_vm0, %v1893_v2  ;;  %v1676_v6 = vpop.f32.mrf.mxu0 }
 0x383   :  { %v1896_v49 = vpop.f32.mrf.mxu1  ;;  %2025 = vst [vmem:[%s5320_s6 + $0x2b0] sm:$0xff] %v1675_v8  ;;  %v1677_v40 = vadd.f32 %v1676_v6, %v4545_v51  ;;  %v1415_v37 = vpop.xlane.xlu0 %1414 }
 0x384   :  { %2113 = vst [vmem:[%s5320_s6 + $0x570] sm:$0xff] %v1895_v54  ;;  %v1897_v18 = vadd.f32 %v1896_v49, %v1409_v14  ;;  %v1417_v45 = vpop.xlane.xlu1 %1416 }
 0x385   :  { %v1900_v60 = vpop.f32.mrf.mxu1  ;;  %2026 = vst.msk [vmem:[%s5320_s6 + $0x2b8] sm:$0xff] %vm531_vm0, %v1677_v40 }
 0x386   :  { %2114 = vst.msk [vmem:[%s5320_s6 + $0x578] sm:$0xff] %vm531_vm0, %v1897_v18  ;;  %v1901_v19 = vadd.f32 %v1900_v60, %v1411_v5 }
 0x387   :  { %v1902_v7 = vpop.f32.mrf.mxu1  ;;  %v1419_v50 = vpop.xlane.xlu0 %1418 }
 0x388   :  { %v1903_v51 = vadd.f32 %v1902_v7, %v1411_v5  ;;  %2115 = vst [vmem:[%s5320_s6 + $0x580] sm:$0xff] %v1901_v19  ;;  %v1421_v39 = vpop.xlane.xlu1 %1420 }
 0x389   :  { %v1904_v33 = vpop.f32.mrf.mxu1 }
 0x38a   :  { %v1905_v21 = vadd.f32 %v1904_v33, %v1413_v12  ;;  %2116 = vst.msk [vmem:[%s5320_s6 + $0x588] sm:$0xff] %vm531_vm0, %v1903_v51 }
 0x38b   :  { %v1906_v0 = vpop.f32.mrf.mxu1  ;;  %v1423_v1 = vpop.xlane.xlu0 %1422 }
 0x38c   :  { %2117 = vst [vmem:[%s5320_s6 + $0x590] sm:$0xff] %v1905_v21  ;;  %v1907_v36 = vadd.f32 %v1906_v0, %v1413_v12  ;;  %v1425_v15 = vpop.xlane.xlu1 %1424 }
 0x38d   :  { %v1910_v63 = vpop.f32.mrf.mxu1 }
 0x38e   :  { %2118 = vst.msk [vmem:[%s5320_s6 + $0x598] sm:$0xff] %vm531_vm0, %v1907_v36  ;;  %v1911_v24 = vadd.f32 %v1910_v63, %v1415_v37 }
 0x38f   :  { %v1912_v42 = vpop.f32.mrf.mxu1 }
 0x390   :  { %v1913_v31 = vadd.f32 %v1912_v42, %v1415_v37  ;;  %2119 = vst [vmem:[%s5320_s6 + $0x5a0] sm:$0xff] %v1911_v24 }
 0x391   :  { %v1914_v58 = vpop.f32.mrf.mxu1 }
 0x392   :  { %v1915_v29 = vadd.f32 %v1914_v58, %v1417_v45  ;;  %2120 = vst.msk [vmem:[%s5320_s6 + $0x5a8] sm:$0xff] %vm531_vm0, %v1913_v31 }
 0x393   :  { %v1916_v4 = vpop.f32.mrf.mxu1 }
 0x394   :  { %2121 = vst [vmem:[%s5320_s6 + $0x5b0] sm:$0xff] %v1915_v29  ;;  %v1917_v48 = vadd.f32 %v1916_v4, %v1417_v45 }
 0x395   :  { %v1920_v57 = vpop.f32.mrf.mxu1 }
 0x396   :  { %2122 = vst.msk [vmem:[%s5320_s6 + $0x5b8] sm:$0xff] %vm531_vm0, %v1917_v48  ;;  %v1921_v44 = vadd.f32 %v1920_v57, %v1419_v50 }
 0x397   :  { %v1922_v46 = vpop.f32.mrf.mxu1 }
 0x398   :  { %v1923_v53 = vadd.f32 %v1922_v46, %v1419_v50  ;;  %2123 = vst [vmem:[%s5320_s6 + $0x5c0] sm:$0xff] %v1921_v44 }
 0x399   :  { %v1924_v52 = vpop.f32.mrf.mxu1 }
 0x39a   :  { %v1925_v11 = vadd.f32 %v1924_v52, %v1421_v39  ;;  %2124 = vst.msk [vmem:[%s5320_s6 + $0x5c8] sm:$0xff] %vm531_vm0, %v1923_v53 }
 0x39b   :  { %v1926_v34 = vpop.f32.mrf.mxu1 }
 0x39c   :  { %2125 = vst [vmem:[%s5320_s6 + $0x5d0] sm:$0xff] %v1925_v11  ;;  %v1927_v32 = vadd.f32 %v1926_v34, %v1421_v39 }
 0x39d   :  { %v1930_v28 = vpop.f32.mrf.mxu1 }
 0x39e   :  { %2126 = vst.msk [vmem:[%s5320_s6 + $0x5d8] sm:$0xff] %vm531_vm0, %v1927_v32  ;;  %v1931_v62 = vadd.f32 %v1930_v28, %v1423_v1 }
 0x39f   :  { %v1932_v16 = vpop.f32.mrf.mxu1 }
 0x3a0   :  { %v1933_v13 = vadd.f32 %v1932_v16, %v1423_v1  ;;  %2127 = vst [vmem:[%s5320_s6 + $0x5e0] sm:$0xff] %v1931_v62 }
 0x3a1   :  { %v1934_v10 = vpop.f32.mrf.mxu1 }
 0x3a2   :  { %v1935_v22 = vadd.f32 %v1934_v10, %v1425_v15  ;;  %2128 = vst.msk [vmem:[%s5320_s6 + $0x5e8] sm:$0xff] %vm531_vm0, %v1933_v13 }
 0x3a3   :  { %v1936_v30 = vpop.f32.mrf.mxu1 }
 0x3a4   :  { %2129 = vst [vmem:[%s5320_s6 + $0x5f0] sm:$0xff] %v1935_v22  ;;  %v1937_v35 = vadd.f32 %v1936_v30, %v1425_v15 }
 0x3a6   :  { %2130 = vst.msk [vmem:[%s5320_s6 + $0x5f8] sm:$0xff] %vm531_vm0, %v1937_v35 }

</bundles_post_ra>
